<compile_context>
chip_gen: v6e
topology: v6e:2x2x1
jax: 0.10.0
libtpu: 0.0.40
codegen_flags: <defaults>
</compile_context>

<pallas_src>
import jax
import jax.numpy as jnp
from jax.experimental import pallas as pl
from jax.experimental.pallas import tpu as pltpu

N, C, H, W = 2, 3, 32, 32
KSIZE = 17                    # GaussianBlur(kernel_size=17)
PAD = (KSIZE - 1) // 2        # 8
MAX_EPOCHS = 10
NOISE_STD = 0.01
NOISE_MEAN = 0.0


def _gray(r, g, b):
    # torchvision rgb_to_grayscale weights
    return 0.2989 * r + 0.587 * g + 0.114 * b


# -----------------------------------------------------------------------------
# In-kernel helpers (pure jnp/lax -> lower cleanly on Mosaic and in interpret)
# -----------------------------------------------------------------------------
def _color_jitter(r, g, b, bf, cf, sf, hf):
    """ColorJitter(0.25,0.25,0.25,0.25) on one image; r,g,b are (H, W)."""
    # TODO(synk): torchvision applies the four jitter ops in a random
    # permutation; here the order is fixed (brightness, contrast, saturation,
    # hue).

    # brightness: blend(img, 0, bf)
    r = jnp.clip(r * bf, 0.0, 1.0)
    g = jnp.clip(g * bf, 0.0, 1.0)
    b = jnp.clip(b * bf, 0.0, 1.0)

    # contrast: blend(img, mean(grayscale(img)), cf)   (per-image reduction)
    m = jnp.mean(_gray(r, g, b))
    r = jnp.clip(cf * r + (1.0 - cf) * m, 0.0, 1.0)
    g = jnp.clip(cf * g + (1.0 - cf) * m, 0.0, 1.0)
    b = jnp.clip(cf * b + (1.0 - cf) * m, 0.0, 1.0)

    # saturation: blend(img, grayscale(img), sf)
    gray = _gray(r, g, b)
    r = jnp.clip(sf * r + (1.0 - sf) * gray, 0.0, 1.0)
    g = jnp.clip(sf * g + (1.0 - sf) * gray, 0.0, 1.0)
    b = jnp.clip(sf * b + (1.0 - sf) * gray, 0.0, 1.0)

    # hue: rgb -> hsv, shift hue by hf (mod 1), hsv -> rgb
    maxc = jnp.maximum(jnp.maximum(r, g), b)
    minc = jnp.minimum(jnp.minimum(r, g), b)
    eqc = maxc == minc
    cr = maxc - minc
    ones = jnp.ones_like(maxc)
    s = cr * (1.0 / jnp.where(eqc, ones, maxc))
    inv_cr = 1.0 / jnp.where(eqc, ones, cr)     # one reciprocal, three muls
    rc = (maxc - r) * inv_cr
    gc = (maxc - g) * inv_cr
    bc = (maxc - b) * inv_cr
    hr = jnp.where(maxc == r, bc - gc, 0.0)
    hg = jnp.where((maxc == g) & (maxc != r), 2.0 + rc - bc, 0.0)
    hb = jnp.where((maxc != g) & (maxc != r), 4.0 + gc - rc, 0.0)
    h = (hr + hg + hb) * (1.0 / 6.0) + 1.0
    h = h - jnp.floor(h)          # fmod(., 1.0) for positive values

    h = h + hf
    h = h - jnp.floor(h)          # (h + hue_factor) % 1.0

    v = maxc
    h6 = h * 6.0
    i = jnp.floor(h6)
    f = h6 - i
    i = jnp.where(i >= 6.0, i - 6.0, i)
    p = jnp.clip(v * (1.0 - s), 0.0, 1.0)
    q = jnp.clip(v * (1.0 - s * f), 0.0, 1.0)
    t = jnp.clip(v * (1.0 - s * (1.0 - f)), 0.0, 1.0)

    def sel(a0, a1, a2, a3, a4, a5):
        return jnp.where(
            i == 0.0, a0,
            jnp.where(i == 1.0, a1,
                      jnp.where(i == 2.0, a2,
                                jnp.where(i == 3.0, a3,
                                          jnp.where(i == 4.0, a4, a5)))))

    return sel(v, q, p, p, t, v), sel(t, v, v, q, p, p), sel(p, p, t, v, v, q)


def _degenerate(ch, tri_h, tri_w, interior):
    """torchvision _blurred_degenerate_image on one (H, W) channel.

    3x3 [[1,1,1],[1,5,1],[1,1,1]]/13 conv on the interior, expressed as a 3x3
    box sum via two tridiagonal matmuls plus 4*identity (MXU work, no shifted
    slices / scratch round trips); border pixels keep the input.
    """
    box = jnp.dot(jnp.dot(tri_h, ch, preferred_element_type=jnp.float32),
                  tri_w, preferred_element_type=jnp.float32)
    deg = (box + 4.0 * ch) * (1.0 / 13.0)
    return jnp.where(interior, deg, ch)


# -----------------------------------------------------------------------------
# Fused kernel: jitter + blur + sharpness + noise + select + normalize
# -----------------------------------------------------------------------------
def _augment_kernel(fac_ref, flags_ref, x_ref, noise_ref, bv_ref, bh_ref, o_ref):
    # fac_ref:   SMEM f32[4] = [brightness, contrast, saturation, hue]
    # flags_ref: SMEM i32[4] = [apply_aug, apply_sharp, apply_sharpblur, apply_noise]
    # x_ref / noise_ref / o_ref: VMEM (1, C, H, W)
    # bv_ref: VMEM (H, H) vertical blur band matrix (reflect folded in)
    # bh_ref: VMEM (W, W) horizontal blur band matrix (reflect folded in)

    @pl.when(flags_ref[0] == 0)
    def _passthrough():
        # p >= epoch/max_epochs: only Normalize([0.5], [0.5]).
        o_ref[0] = 2.0 * x_ref[0] - 1.0

    @pl.when(flags_ref[0] != 0)
    def _augment():
        # ---- ColorJitter(0.25, 0.25, 0.25, 0.25) ---------------------------
        r, g, b = _color_jitter(x_ref[0, 0], x_ref[0, 1], x_ref[0, 2],
                                fac_ref[0], fac_ref[1], fac_ref[2], fac_ref[3])

        # ---- GaussianBlur(17, sigma) on the MXU ----------------------------
        # blur = Bv @ img @ Bh  (reflect padding + separable taps folded into
        # the band matrices built wrapper-side).  The output block doubles as
        # the working buffer for the rest of the pipeline.
        bv = bv_ref[...]
        bh = bh_ref[...]
        for c, ch in enumerate((r, g, b)):
            t = jnp.dot(bv, ch, preferred_element_type=jnp.float32)
            o_ref[0, c] = jnp.dot(t, bh, preferred_element_type=jnp.float32)

        # Constants for the 3x3 degenerate blur (only used by the gated paths).
        ri = jax.lax.broadcasted_iota(jnp.int32, (H, H), 0)
        ci = jax.lax.broadcasted_iota(jnp.int32, (H, H), 1)
        tri_h = (jnp.abs(ri - ci) <= 1).astype(jnp.float32)
        rj = jax.lax.broadcasted_iota(jnp.int32, (W, W), 0)
        cj = jax.lax.broadcasted_iota(jnp.int32, (W, W), 1)
        tri_w = (jnp.abs(rj - cj) <= 1).astype(jnp.float32)
        row = jax.lax.broadcasted_iota(jnp.int32, (H, W), 0)
        col = jax.lax.broadcasted_iota(jnp.int32, (H, W), 1)
        interior = (row > 0) & (row < H - 1) & (col > 0) & (col < W - 1)

        # ---- RandomAdjustSharpness(sharpness_factor=2, p=0.25) -------------
        @pl.when(flags_ref[1] != 0)
        def _sharp():
            for c in range(C):
                im = o_ref[0, c]
                deg = _degenerate(im, tri_h, tri_w, interior)
                o_ref[0, c] = jnp.clip(2.0 * im - deg, 0.0, 1.0)

        # ---- RandomAdjustSharpness(sharpness_factor=0, p=0.1) --------------
        @pl.when(flags_ref[2] != 0)
        def _sharpblur():
            for c in range(C):
                im = o_ref[0, c]
                o_ref[0, c] = jnp.clip(
                    _degenerate(im, tri_h, tri_w, interior), 0.0, 1.0)

        # ---- additive gaussian noise (p=0.5) -------------------------------
        @pl.when(flags_ref[3] != 0)
        def _noise():
            o_ref[0] = o_ref[0] + noise_ref[0]

        # ---- Normalize([0.5], [0.5]) ----------------------------------------
        o_ref[0] = 2.0 * o_ref[0] - 1.0


# -----------------------------------------------------------------------------
# Wrapper
# -----------------------------------------------------------------------------
def _blur_matrix(dim, taps1d):
    """(dim, dim) band matrix applying the reflect-padded 17-tap blur along one
    axis: vertical blur = B @ img, horizontal blur = img @ B.T."""
    pos = jnp.arange(dim + 2 * PAD) - PAD
    refl = jnp.where(pos < 0, -pos, pos)
    refl = jnp.where(refl > dim - 1, 2 * (dim - 1) - refl, refl)
    onehot = (refl[:, None] == jnp.arange(dim)[None, :]).astype(jnp.float32)
    diff = jnp.arange(dim + 2 * PAD)[None, :] - jnp.arange(dim)[:, None]
    band = jnp.where((diff >= 0) & (diff < KSIZE),
                     taps1d[jnp.clip(diff, 0, KSIZE - 1)], 0.0)
    return (band @ onehot).astype(jnp.float32)


def data_augmentation_image(x, epoch, key, max_epochs=MAX_EPOCHS):
    """JAX/Pallas port of DataAugmentationImage.forward(x, epoch)."""
    n, c, h, w = x.shape
    keys = jax.random.split(key, 10)

    # if p < epoch/max_epochs: augment (per call, like the torch module)
    apply_aug = jax.random.uniform(keys[0]) < (epoch / max_epochs)

    # ColorJitter(0.25, 0.25, 0.25, 0.25) factors (parameter-setup glue)
    bf = jax.random.uniform(keys[1], minval=0.75, maxval=1.25)
    cf = jax.random.uniform(keys[2], minval=0.75, maxval=1.25)
    sf = jax.random.uniform(keys[3], minval=0.75, maxval=1.25)
    hf = jax.random.uniform(keys[4], minval=-0.25, maxval=0.25)
    factors = jnp.stack([bf, cf, sf, hf]).astype(jnp.float32)

    # GaussianBlur(kernel_size=17, sigma=(0.2, 2)): 1-D taps -> band matrices
    sigma = jax.random.uniform(keys[5], minval=0.2, maxval=2.0)
    xs = jnp.arange(KSIZE, dtype=jnp.float32) - (KSIZE - 1) / 2.0
    pdf = jnp.exp(-0.5 * jnp.square(xs / sigma))
    taps = (pdf / jnp.sum(pdf)).astype(jnp.float32)
    bv = _blur_matrix(h, taps)          # vertical:  Bv @ img
    bh = _blur_matrix(w, taps).T        # horizontal: img @ Bh

    apply_sharp = jax.random.uniform(keys[6]) < 0.25
    apply_sblur = jax.random.uniform(keys[7]) < 0.10
    apply_noise = jax.random.uniform(keys[8]) < 0.50
    flags = jnp.stack([apply_aug, apply_sharp, apply_sblur,
                       apply_noise]).astype(jnp.int32)

    # Gaussian noise drawn wrapper-side (matches torch.randn; avoids in-kernel
    # TPU PRNG which has no interpret-mode lowering).
    noise = (jax.random.normal(keys[9], x.shape, dtype=jnp.float32)
             * NOISE_STD + NOISE_MEAN)

    return pl.pallas_call(
        _augment_kernel,
        out_shape=jax.ShapeDtypeStruct((n, c, h, w), jnp.float32),
        grid_spec=pltpu.PrefetchScalarGridSpec(
            num_scalar_prefetch=0,
            grid=(n,),
            in_specs=[
                pl.BlockSpec(memory_space=pltpu.MemorySpace.SMEM),   # factors
                pl.BlockSpec(memory_space=pltpu.MemorySpace.SMEM),   # flags
                pl.BlockSpec((1, c, h, w), lambda i: (i, 0, 0, 0)),  # x
                pl.BlockSpec((1, c, h, w), lambda i: (i, 0, 0, 0)),  # noise
                pl.BlockSpec((h, h), lambda i: (0, 0)),              # Bv
                pl.BlockSpec((w, w), lambda i: (0, 0)),              # Bh
            ],
            out_specs=pl.BlockSpec((1, c, h, w), lambda i: (i, 0, 0, 0)),
        ),
        compiler_params=pltpu.CompilerParams(
            dimension_semantics=("parallel",)),   # 2x on v7x dual-TC; no-op v5e/v6e
    )(factors, flags, x, noise, bv, bh)


if __name__ == "__main__":
    key = jax.random.PRNGKey(0)
    kx, kr = jax.random.split(key)
    x = jax.random.uniform(kx, (N, C, H, W), dtype=jnp.float32)

    out = data_augmentation_image(x, epoch=7, key=kr, max_epochs=MAX_EPOCHS)
    out = jax.block_until_ready(out)
    assert out.shape == (N, C, H, W) and out.dtype == jnp.float32
    assert bool(jnp.all(jnp.isfinite(out)))
    print("KERNEL_OK")
</pallas_src>

<mosaic_0001>
module attributes {stable_mosaic.version = 11 : i64} {
  func.func @_augment_kernel(%arg0: i32, %arg1: memref<4xf32, #tpu.memory_space<smem>>, %arg2: memref<4xi32, #tpu.memory_space<smem>>, %arg3: memref<1x3x32x32xf32, #tpu.memory_space<vmem>>, %arg4: memref<1x3x32x32xf32, #tpu.memory_space<vmem>>, %arg5: memref<32x32xf32, #tpu.memory_space<vmem>>, %arg6: memref<32x32xf32, #tpu.memory_space<vmem>>, %arg7: memref<1x3x32x32xf32, #tpu.memory_space<vmem>>) attributes {dimension_semantics = [#tpu.dimension_semantics<parallel>], iteration_bounds = array<i64: 2>, scalar_prefetch = 0 : i64, scratch_operands = 0 : i64, tpu.core_type = #tpu.core_type<tc>, window_params = [{transform_indices = @transform_0, window_bounds = array<i64: 4>}, {transform_indices = @transform_1, window_bounds = array<i64: 4>}, {transform_indices = @transform_2, window_bounds = array<i64: 1, 3, 32, 32>}, {transform_indices = @transform_3, window_bounds = array<i64: 1, 3, 32, 32>}, {pipeline_mode = #tpu.pipeline_mode<synchronous>, transform_indices = @transform_4, window_bounds = array<i64: 32, 32>}, {pipeline_mode = #tpu.pipeline_mode<synchronous>, transform_indices = @transform_5, window_bounds = array<i64: 32, 32>}, {transform_indices = @transform_6, window_bounds = array<i64: 1, 3, 32, 32>}]} {
    %c0 = arith.constant 0 : index
    %0 = memref.load %arg2[%c0] : memref<4xi32, #tpu.memory_space<smem>>
    %c0_i32 = arith.constant 0 : i32
    %1 = arith.cmpi eq, %0, %c0_i32 : i32
    %2 = arith.extui %1 : i1 to i32
    %c0_i32_0 = arith.constant 0 : i32
    %3 = arith.cmpi ne, %2, %c0_i32_0 : i32
    scf.if %3 {
      %c0_4 = arith.constant 0 : index
      %c0_5 = arith.constant 0 : index
      %c0_6 = arith.constant 0 : index
      %c0_7 = arith.constant 0 : index
      %8 = vector.load %arg3[%c0_4, %c0_5, %c0_6, %c0_7] : memref<1x3x32x32xf32, #tpu.memory_space<vmem>>, vector<1x3x32x32xf32>
      %9 = vector.shape_cast %8 : vector<1x3x32x32xf32> to vector<3x32x32xf32>
      %cst = arith.constant 2.000000e+00 : f32
      %10 = vector.broadcast %cst : f32 to vector<3x32x32xf32>
      %11 = arith.mulf %10, %9 : vector<3x32x32xf32>
      %cst_8 = arith.constant 1.000000e+00 : f32
      %12 = vector.broadcast %cst_8 : f32 to vector<3x32x32xf32>
      %13 = arith.subf %11, %12 : vector<3x32x32xf32>
      %c0_9 = arith.constant 0 : index
      %c0_10 = arith.constant 0 : index
      %c0_11 = arith.constant 0 : index
      %c0_12 = arith.constant 0 : index
      %14 = vector.load %arg7[%c0_9, %c0_10, %c0_11, %c0_12] : memref<1x3x32x32xf32, #tpu.memory_space<vmem>>, vector<1x3x32x32xf32>
      %15 = vector.shape_cast %14 : vector<1x3x32x32xf32> to vector<3x32x32xf32>
      %16 = vector.shape_cast %13 : vector<3x32x32xf32> to vector<1x3x32x32xf32>
      tpu.vector_store %arg7[%c0_9, %c0_10, %c0_11, %c0_12], %16 {strides = array<i32>} : memref<1x3x32x32xf32, #tpu.memory_space<vmem>>, vector<1x3x32x32xf32>,
    } else {
    }
    %c0_1 = arith.constant 0 : index
    %4 = memref.load %arg2[%c0_1] : memref<4xi32, #tpu.memory_space<smem>>
    %c0_i32_2 = arith.constant 0 : i32
    %5 = arith.cmpi ne, %4, %c0_i32_2 : i32
    %6 = arith.extui %5 : i1 to i32
    %c0_i32_3 = arith.constant 0 : i32
    %7 = arith.cmpi ne, %6, %c0_i32_3 : i32
    scf.if %7 {
      %c0_4 = arith.constant 0 : index
      %c0_5 = arith.constant 0 : index
      %c0_6 = arith.constant 0 : index
      %c0_7 = arith.constant 0 : index
      %8 = vector.load %arg3[%c0_4, %c0_5, %c0_6, %c0_7] : memref<1x3x32x32xf32, #tpu.memory_space<vmem>>, vector<1x1x32x32xf32>
      %9 = vector.shape_cast %8 : vector<1x1x32x32xf32> to vector<32x32xf32>
      %c0_8 = arith.constant 0 : index
      %c1 = arith.constant 1 : index
      %c0_9 = arith.constant 0 : index
      %c0_10 = arith.constant 0 : index
      %10 = vector.load %arg3[%c0_8, %c1, %c0_9, %c0_10] : memref<1x3x32x32xf32, #tpu.memory_space<vmem>>, vector<1x1x32x32xf32>
      %11 = vector.shape_cast %10 : vector<1x1x32x32xf32> to vector<32x32xf32>
      %c0_11 = arith.constant 0 : index
      %c2 = arith.constant 2 : index
      %c0_12 = arith.constant 0 : index
      %c0_13 = arith.constant 0 : index
      %12 = vector.load %arg3[%c0_11, %c2, %c0_12, %c0_13] : memref<1x3x32x32xf32, #tpu.memory_space<vmem>>, vector<1x1x32x32xf32>
      %13 = vector.shape_cast %12 : vector<1x1x32x32xf32> to vector<32x32xf32>
      %c0_14 = arith.constant 0 : index
      %14 = memref.load %arg1[%c0_14] : memref<4xf32, #tpu.memory_space<smem>>
      %c1_15 = arith.constant 1 : index
      %15 = memref.load %arg1[%c1_15] : memref<4xf32, #tpu.memory_space<smem>>
      %c2_16 = arith.constant 2 : index
      %16 = memref.load %arg1[%c2_16] : memref<4xf32, #tpu.memory_space<smem>>
      %c3 = arith.constant 3 : index
      %17 = memref.load %arg1[%c3] : memref<4xf32, #tpu.memory_space<smem>>
      %18 = vector.broadcast %14 : f32 to vector<32x32xf32>
      %19 = arith.mulf %9, %18 : vector<32x32xf32>
      %cst = arith.constant 0.000000e+00 : f32
      %cst_17 = arith.constant 1.000000e+00 : f32
      %20 = vector.broadcast %cst : f32 to vector<32x32xf32>
      %21 = arith.maximumf %20, %19 : vector<32x32xf32>
      %22 = vector.broadcast %cst_17 : f32 to vector<32x32xf32>
      %23 = arith.minimumf %22, %21 : vector<32x32xf32>
      %24 = vector.broadcast %14 : f32 to vector<32x32xf32>
      %25 = arith.mulf %11, %24 : vector<32x32xf32>
      %cst_18 = arith.constant 0.000000e+00 : f32
      %cst_19 = arith.constant 1.000000e+00 : f32
      %26 = vector.broadcast %cst_18 : f32 to vector<32x32xf32>
      %27 = arith.maximumf %26, %25 : vector<32x32xf32>
      %28 = vector.broadcast %cst_19 : f32 to vector<32x32xf32>
      %29 = arith.minimumf %28, %27 : vector<32x32xf32>
      %30 = vector.broadcast %14 : f32 to vector<32x32xf32>
      %31 = arith.mulf %13, %30 : vector<32x32xf32>
      %cst_20 = arith.constant 0.000000e+00 : f32
      %cst_21 = arith.constant 1.000000e+00 : f32
      %32 = vector.broadcast %cst_20 : f32 to vector<32x32xf32>
      %33 = arith.maximumf %32, %31 : vector<32x32xf32>
      %34 = vector.broadcast %cst_21 : f32 to vector<32x32xf32>
      %35 = arith.minimumf %34, %33 : vector<32x32xf32>
      %cst_22 = arith.constant 2.989000e-01 : f32
      %36 = vector.broadcast %cst_22 : f32 to vector<32x32xf32>
      %37 = arith.mulf %36, %23 : vector<32x32xf32>
      %cst_23 = arith.constant 5.870000e-01 : f32
      %38 = vector.broadcast %cst_23 : f32 to vector<32x32xf32>
      %39 = arith.mulf %38, %29 : vector<32x32xf32>
      %40 = arith.addf %37, %39 : vector<32x32xf32>
      %cst_24 = arith.constant 1.140000e-01 : f32
      %41 = vector.broadcast %cst_24 : f32 to vector<32x32xf32>
      %42 = arith.mulf %41, %35 : vector<32x32xf32>
      %43 = arith.addf %40, %42 : vector<32x32xf32>
      %44 = vector.shape_cast %43 : vector<32x32xf32> to vector<1x32x32xf32>
      %cst_25 = arith.constant dense<0.000000e+00> : vector<1xf32>
      %45 = vector.multi_reduction <add>, %44, %cst_25 [1, 2] : vector<1x32x32xf32> to vector<1xf32>
      %46 = vector.shape_cast %45 : vector<1xf32> to vector<1x1x1xf32>
      %47 = vector.extract %46[0, 0, 0] : f32 from vector<1x1x1xf32>
      %cst_26 = arith.constant 1.024000e+03 : f32
      %48 = arith.divf %47, %cst_26 : f32
      %49 = vector.broadcast %15 : f32 to vector<32x32xf32>
      %50 = arith.mulf %49, %23 : vector<32x32xf32>
      %cst_27 = arith.constant 1.000000e+00 : f32
      %51 = arith.subf %cst_27, %15 : f32
      %52 = arith.mulf %51, %48 : f32
      %53 = vector.broadcast %52 : f32 to vector<32x32xf32>
      %54 = arith.addf %50, %53 : vector<32x32xf32>
      %cst_28 = arith.constant 0.000000e+00 : f32
      %cst_29 = arith.constant 1.000000e+00 : f32
      %55 = vector.broadcast %cst_28 : f32 to vector<32x32xf32>
      %56 = arith.maximumf %55, %54 : vector<32x32xf32>
      %57 = vector.broadcast %cst_29 : f32 to vector<32x32xf32>
      %58 = arith.minimumf %57, %56 : vector<32x32xf32>
      %59 = vector.broadcast %15 : f32 to vector<32x32xf32>
      %60 = arith.mulf %59, %29 : vector<32x32xf32>
      %cst_30 = arith.constant 1.000000e+00 : f32
      %61 = arith.subf %cst_30, %15 : f32
      %62 = arith.mulf %61, %48 : f32
      %63 = vector.broadcast %62 : f32 to vector<32x32xf32>
      %64 = arith.addf %60, %63 : vector<32x32xf32>
      %cst_31 = arith.constant 0.000000e+00 : f32
      %cst_32 = arith.constant 1.000000e+00 : f32
      %65 = vector.broadcast %cst_31 : f32 to vector<32x32xf32>
      %66 = arith.maximumf %65, %64 : vector<32x32xf32>
      %67 = vector.broadcast %cst_32 : f32 to vector<32x32xf32>
      %68 = arith.minimumf %67, %66 : vector<32x32xf32>
      %69 = vector.broadcast %15 : f32 to vector<32x32xf32>
      %70 = arith.mulf %69, %35 : vector<32x32xf32>
      %cst_33 = arith.constant 1.000000e+00 : f32
      %71 = arith.subf %cst_33, %15 : f32
      %72 = arith.mulf %71, %48 : f32
      %73 = vector.broadcast %72 : f32 to vector<32x32xf32>
      %74 = arith.addf %70, %73 : vector<32x32xf32>
      %cst_34 = arith.constant 0.000000e+00 : f32
      %cst_35 = arith.constant 1.000000e+00 : f32
      %75 = vector.broadcast %cst_34 : f32 to vector<32x32xf32>
      %76 = arith.maximumf %75, %74 : vector<32x32xf32>
      %77 = vector.broadcast %cst_35 : f32 to vector<32x32xf32>
      %78 = arith.minimumf %77, %76 : vector<32x32xf32>
      %cst_36 = arith.constant 2.989000e-01 : f32
      %79 = vector.broadcast %cst_36 : f32 to vector<32x32xf32>
      %80 = arith.mulf %79, %58 : vector<32x32xf32>
      %cst_37 = arith.constant 5.870000e-01 : f32
      %81 = vector.broadcast %cst_37 : f32 to vector<32x32xf32>
      %82 = arith.mulf %81, %68 : vector<32x32xf32>
      %83 = arith.addf %80, %82 : vector<32x32xf32>
      %cst_38 = arith.constant 1.140000e-01 : f32
      %84 = vector.broadcast %cst_38 : f32 to vector<32x32xf32>
      %85 = arith.mulf %84, %78 : vector<32x32xf32>
      %86 = arith.addf %83, %85 : vector<32x32xf32>
      %87 = vector.broadcast %16 : f32 to vector<32x32xf32>
      %88 = arith.mulf %87, %58 : vector<32x32xf32>
      %cst_39 = arith.constant 1.000000e+00 : f32
      %89 = arith.subf %cst_39, %16 : f32
      %90 = vector.broadcast %89 : f32 to vector<32x32xf32>
      %91 = arith.mulf %90, %86 : vector<32x32xf32>
      %92 = arith.addf %88, %91 : vector<32x32xf32>
      %cst_40 = arith.constant 0.000000e+00 : f32
      %cst_41 = arith.constant 1.000000e+00 : f32
      %93 = vector.broadcast %cst_40 : f32 to vector<32x32xf32>
      %94 = arith.maximumf %93, %92 : vector<32x32xf32>
      %95 = vector.broadcast %cst_41 : f32 to vector<32x32xf32>
      %96 = arith.minimumf %95, %94 : vector<32x32xf32>
      %97 = vector.broadcast %16 : f32 to vector<32x32xf32>
      %98 = arith.mulf %97, %68 : vector<32x32xf32>
      %cst_42 = arith.constant 1.000000e+00 : f32
      %99 = arith.subf %cst_42, %16 : f32
      %100 = vector.broadcast %99 : f32 to vector<32x32xf32>
      %101 = arith.mulf %100, %86 : vector<32x32xf32>
      %102 = arith.addf %98, %101 : vector<32x32xf32>
      %cst_43 = arith.constant 0.000000e+00 : f32
      %cst_44 = arith.constant 1.000000e+00 : f32
      %103 = vector.broadcast %cst_43 : f32 to vector<32x32xf32>
      %104 = arith.maximumf %103, %102 : vector<32x32xf32>
      %105 = vector.broadcast %cst_44 : f32 to vector<32x32xf32>
      %106 = arith.minimumf %105, %104 : vector<32x32xf32>
      %107 = vector.broadcast %16 : f32 to vector<32x32xf32>
      %108 = arith.mulf %107, %78 : vector<32x32xf32>
      %cst_45 = arith.constant 1.000000e+00 : f32
      %109 = arith.subf %cst_45, %16 : f32
      %110 = vector.broadcast %109 : f32 to vector<32x32xf32>
      %111 = arith.mulf %110, %86 : vector<32x32xf32>
      %112 = arith.addf %108, %111 : vector<32x32xf32>
      %cst_46 = arith.constant 0.000000e+00 : f32
      %cst_47 = arith.constant 1.000000e+00 : f32
      %113 = vector.broadcast %cst_46 : f32 to vector<32x32xf32>
      %114 = arith.maximumf %113, %112 : vector<32x32xf32>
      %115 = vector.broadcast %cst_47 : f32 to vector<32x32xf32>
      %116 = arith.minimumf %115, %114 : vector<32x32xf32>
      %117 = arith.maximumf %96, %106 : vector<32x32xf32>
      %118 = arith.maximumf %117, %116 : vector<32x32xf32>
      %119 = arith.minimumf %96, %106 : vector<32x32xf32>
      %120 = arith.minimumf %119, %116 : vector<32x32xf32>
      %121 = arith.cmpf oeq, %118, %120 : vector<32x32xf32>
      %122 = arith.subf %118, %120 : vector<32x32xf32>
      %cst_48 = arith.constant 1.000000e+00 : f32
      %123 = vector.broadcast %cst_48 : f32 to vector<32x32xf32>
      %124 = arith.select %121, %123, %118 : vector<32x32xi1>, vector<32x32xf32>
      %cst_49 = arith.constant 1.000000e+00 : f32
      %125 = vector.broadcast %cst_49 : f32 to vector<32x32xf32>
      %126 = arith.divf %125, %124 : vector<32x32xf32>
      %127 = arith.mulf %122, %126 : vector<32x32xf32>
      %128 = arith.select %121, %123, %122 : vector<32x32xi1>, vector<32x32xf32>
      %cst_50 = arith.constant 1.000000e+00 : f32
      %129 = vector.broadcast %cst_50 : f32 to vector<32x32xf32>
      %130 = arith.divf %129, %128 : vector<32x32xf32>
      %131 = arith.subf %118, %96 : vector<32x32xf32>
      %132 = arith.mulf %131, %130 : vector<32x32xf32>
      %133 = arith.subf %118, %106 : vector<32x32xf32>
      %134 = arith.mulf %133, %130 : vector<32x32xf32>
      %135 = arith.subf %118, %116 : vector<32x32xf32>
      %136 = arith.mulf %135, %130 : vector<32x32xf32>
      %137 = arith.cmpf oeq, %118, %96 : vector<32x32xf32>
      %138 = arith.subf %136, %134 : vector<32x32xf32>
      %cst_51 = arith.constant 0.000000e+00 : f32
      %139 = vector.broadcast %cst_51 : f32 to vector<32x32xf32>
      %140 = arith.select %137, %138, %139 : vector<32x32xi1>, vector<32x32xf32>
      %141 = arith.cmpf oeq, %118, %106 : vector<32x32xf32>
      %142 = arith.cmpf one, %118, %96 : vector<32x32xf32>
      %143 = arith.andi %141, %142 : vector<32x32xi1>
      %cst_52 = arith.constant 2.000000e+00 : f32
      %144 = vector.broadcast %cst_52 : f32 to vector<32x32xf32>
      %145 = arith.addf %144, %132 : vector<32x32xf32>
      %146 = arith.subf %145, %136 : vector<32x32xf32>
      %cst_53 = arith.constant 0.000000e+00 : f32
      %147 = vector.broadcast %cst_53 : f32 to vector<32x32xf32>
      %148 = arith.select %143, %146, %147 : vector<32x32xi1>, vector<32x32xf32>
      %149 = arith.cmpf one, %118, %106 : vector<32x32xf32>
      %150 = arith.cmpf one, %118, %96 : vector<32x32xf32>
      %151 = arith.andi %149, %150 : vector<32x32xi1>
      %cst_54 = arith.constant 4.000000e+00 : f32
      %152 = vector.broadcast %cst_54 : f32 to vector<32x32xf32>
      %153 = arith.addf %152, %134 : vector<32x32xf32>
      %154 = arith.subf %153, %132 : vector<32x32xf32>
      %cst_55 = arith.constant 0.000000e+00 : f32
      %155 = vector.broadcast %cst_55 : f32 to vector<32x32xf32>
      %156 = arith.select %151, %154, %155 : vector<32x32xi1>, vector<32x32xf32>
      %157 = arith.addf %140, %148 : vector<32x32xf32>
      %158 = arith.addf %157, %156 : vector<32x32xf32>
      %cst_56 = arith.constant 0.166666672 : f32
      %159 = vector.broadcast %cst_56 : f32 to vector<32x32xf32>
      %160 = arith.mulf %158, %159 : vector<32x32xf32>
      %cst_57 = arith.constant 1.000000e+00 : f32
      %161 = vector.broadcast %cst_57 : f32 to vector<32x32xf32>
      %162 = arith.addf %160, %161 : vector<32x32xf32>
      %163 = math.floor %162 : vector<32x32xf32>
      %164 = arith.subf %162, %163 : vector<32x32xf32>
      %165 = vector.broadcast %17 : f32 to vector<32x32xf32>
      %166 = arith.addf %164, %165 : vector<32x32xf32>
      %167 = math.floor %166 : vector<32x32xf32>
      %168 = arith.subf %166, %167 : vector<32x32xf32>
      %cst_58 = arith.constant 6.000000e+00 : f32
      %169 = vector.broadcast %cst_58 : f32 to vector<32x32xf32>
      %170 = arith.mulf %168, %169 : vector<32x32xf32>
      %171 = math.floor %170 : vector<32x32xf32>
      %172 = arith.subf %170, %171 : vector<32x32xf32>
      %cst_59 = arith.constant 6.000000e+00 : f32
      %173 = vector.broadcast %cst_59 : f32 to vector<32x32xf32>
      %174 = arith.cmpf oge, %171, %173 : vector<32x32xf32>
      %cst_60 = arith.constant 6.000000e+00 : f32
      %175 = vector.broadcast %cst_60 : f32 to vector<32x32xf32>
      %176 = arith.subf %171, %175 : vector<32x32xf32>
      %177 = arith.select %174, %176, %171 : vector<32x32xi1>, vector<32x32xf32>
      %cst_61 = arith.constant 1.000000e+00 : f32
      %178 = vector.broadcast %cst_61 : f32 to vector<32x32xf32>
      %179 = arith.subf %178, %127 : vector<32x32xf32>
      %180 = arith.mulf %118, %179 : vector<32x32xf32>
      %cst_62 = arith.constant 0.000000e+00 : f32
      %cst_63 = arith.constant 1.000000e+00 : f32
      %181 = vector.broadcast %cst_62 : f32 to vector<32x32xf32>
      %182 = arith.maximumf %181, %180 : vector<32x32xf32>
      %183 = vector.broadcast %cst_63 : f32 to vector<32x32xf32>
      %184 = arith.minimumf %183, %182 : vector<32x32xf32>
      %185 = arith.mulf %127, %172 : vector<32x32xf32>
      %cst_64 = arith.constant 1.000000e+00 : f32
      %186 = vector.broadcast %cst_64 : f32 to vector<32x32xf32>
      %187 = arith.subf %186, %185 : vector<32x32xf32>
      %188 = arith.mulf %118, %187 : vector<32x32xf32>
      %cst_65 = arith.constant 0.000000e+00 : f32
      %cst_66 = arith.constant 1.000000e+00 : f32
      %189 = vector.broadcast %cst_65 : f32 to vector<32x32xf32>
      %190 = arith.maximumf %189, %188 : vector<32x32xf32>
      %191 = vector.broadcast %cst_66 : f32 to vector<32x32xf32>
      %192 = arith.minimumf %191, %190 : vector<32x32xf32>
      %cst_67 = arith.constant 1.000000e+00 : f32
      %193 = vector.broadcast %cst_67 : f32 to vector<32x32xf32>
      %194 = arith.subf %193, %172 : vector<32x32xf32>
      %195 = arith.mulf %127, %194 : vector<32x32xf32>
      %cst_68 = arith.constant 1.000000e+00 : f32
      %196 = vector.broadcast %cst_68 : f32 to vector<32x32xf32>
      %197 = arith.subf %196, %195 : vector<32x32xf32>
      %198 = arith.mulf %118, %197 : vector<32x32xf32>
      %cst_69 = arith.constant 0.000000e+00 : f32
      %cst_70 = arith.constant 1.000000e+00 : f32
      %199 = vector.broadcast %cst_69 : f32 to vector<32x32xf32>
      %200 = arith.maximumf %199, %198 : vector<32x32xf32>
      %201 = vector.broadcast %cst_70 : f32 to vector<32x32xf32>
      %202 = arith.minimumf %201, %200 : vector<32x32xf32>
      %cst_71 = arith.constant 0.000000e+00 : f32
      %203 = vector.broadcast %cst_71 : f32 to vector<32x32xf32>
      %204 = arith.cmpf oeq, %177, %203 : vector<32x32xf32>
      %cst_72 = arith.constant 1.000000e+00 : f32
      %205 = vector.broadcast %cst_72 : f32 to vector<32x32xf32>
      %206 = arith.cmpf oeq, %177, %205 : vector<32x32xf32>
      %cst_73 = arith.constant 2.000000e+00 : f32
      %207 = vector.broadcast %cst_73 : f32 to vector<32x32xf32>
      %208 = arith.cmpf oeq, %177, %207 : vector<32x32xf32>
      %cst_74 = arith.constant 3.000000e+00 : f32
      %209 = vector.broadcast %cst_74 : f32 to vector<32x32xf32>
      %210 = arith.cmpf oeq, %177, %209 : vector<32x32xf32>
      %cst_75 = arith.constant 4.000000e+00 : f32
      %211 = vector.broadcast %cst_75 : f32 to vector<32x32xf32>
      %212 = arith.cmpf oeq, %177, %211 : vector<32x32xf32>
      %213 = arith.select %212, %202, %118 : vector<32x32xi1>, vector<32x32xf32>
      %214 = arith.select %210, %184, %213 : vector<32x32xi1>, vector<32x32xf32>
      %215 = arith.select %208, %184, %214 : vector<32x32xi1>, vector<32x32xf32>
      %216 = arith.select %206, %192, %215 : vector<32x32xi1>, vector<32x32xf32>
      %217 = arith.select %204, %118, %216 : vector<32x32xi1>, vector<32x32xf32>
      %cst_76 = arith.constant 0.000000e+00 : f32
      %218 = vector.broadcast %cst_76 : f32 to vector<32x32xf32>
      %219 = arith.cmpf oeq, %177, %218 : vector<32x32xf32>
      %cst_77 = arith.constant 1.000000e+00 : f32
      %220 = vector.broadcast %cst_77 : f32 to vector<32x32xf32>
      %221 = arith.cmpf oeq, %177, %220 : vector<32x32xf32>
      %cst_78 = arith.constant 2.000000e+00 : f32
      %222 = vector.broadcast %cst_78 : f32 to vector<32x32xf32>
      %223 = arith.cmpf oeq, %177, %222 : vector<32x32xf32>
      %cst_79 = arith.constant 3.000000e+00 : f32
      %224 = vector.broadcast %cst_79 : f32 to vector<32x32xf32>
      %225 = arith.cmpf oeq, %177, %224 : vector<32x32xf32>
      %cst_80 = arith.constant 4.000000e+00 : f32
      %226 = vector.broadcast %cst_80 : f32 to vector<32x32xf32>
      %227 = arith.cmpf oeq, %177, %226 : vector<32x32xf32>
      %228 = arith.select %227, %184, %184 : vector<32x32xi1>, vector<32x32xf32>
      %229 = arith.select %225, %192, %228 : vector<32x32xi1>, vector<32x32xf32>
      %230 = arith.select %223, %118, %229 : vector<32x32xi1>, vector<32x32xf32>
      %231 = arith.select %221, %118, %230 : vector<32x32xi1>, vector<32x32xf32>
      %232 = arith.select %219, %202, %231 : vector<32x32xi1>, vector<32x32xf32>
      %cst_81 = arith.constant 0.000000e+00 : f32
      %233 = vector.broadcast %cst_81 : f32 to vector<32x32xf32>
      %234 = arith.cmpf oeq, %177, %233 : vector<32x32xf32>
      %cst_82 = arith.constant 1.000000e+00 : f32
      %235 = vector.broadcast %cst_82 : f32 to vector<32x32xf32>
      %236 = arith.cmpf oeq, %177, %235 : vector<32x32xf32>
      %cst_83 = arith.constant 2.000000e+00 : f32
      %237 = vector.broadcast %cst_83 : f32 to vector<32x32xf32>
      %238 = arith.cmpf oeq, %177, %237 : vector<32x32xf32>
      %cst_84 = arith.constant 3.000000e+00 : f32
      %239 = vector.broadcast %cst_84 : f32 to vector<32x32xf32>
      %240 = arith.cmpf oeq, %177, %239 : vector<32x32xf32>
      %cst_85 = arith.constant 4.000000e+00 : f32
      %241 = vector.broadcast %cst_85 : f32 to vector<32x32xf32>
      %242 = arith.cmpf oeq, %177, %241 : vector<32x32xf32>
      %243 = arith.select %242, %118, %192 : vector<32x32xi1>, vector<32x32xf32>
      %244 = arith.select %240, %118, %243 : vector<32x32xi1>, vector<32x32xf32>
      %245 = arith.select %238, %202, %244 : vector<32x32xi1>, vector<32x32xf32>
      %246 = arith.select %236, %184, %245 : vector<32x32xi1>, vector<32x32xf32>
      %247 = arith.select %234, %184, %246 : vector<32x32xi1>, vector<32x32xf32>
      %c0_86 = arith.constant 0 : index
      %c0_87 = arith.constant 0 : index
      %248 = vector.load %arg5[%c0_86, %c0_87] : memref<32x32xf32, #tpu.memory_space<vmem>>, vector<32x32xf32>
      %c0_88 = arith.constant 0 : index
      %c0_89 = arith.constant 0 : index
      %249 = vector.load %arg6[%c0_88, %c0_89] : memref<32x32xf32, #tpu.memory_space<vmem>>, vector<32x32xf32>
      %cst_90 = arith.constant dense<0.000000e+00> : vector<32x32xf32>
      %250 = tpu.matmul %248, %217, %cst_90 {dimension_numbers = #tpu.dot_dimension_numbers<[1], [0], [0], [1], [0, 0, 1, 1], [], []>} : vector<32x32xf32>, vector<32x32xf32>, vector<32x32xf32> -> vector<32x32xf32>
      %cst_91 = arith.constant dense<0.000000e+00> : vector<32x32xf32>
      %251 = tpu.matmul %250, %249, %cst_91 {dimension_numbers = #tpu.dot_dimension_numbers<[1], [0], [0], [1], [0, 0, 1, 1], [], []>} : vector<32x32xf32>, vector<32x32xf32>, vector<32x32xf32> -> vector<32x32xf32>
      %c0_92 = arith.constant 0 : index
      %c0_93 = arith.constant 0 : index
      %c0_94 = arith.constant 0 : index
      %c0_95 = arith.constant 0 : index
      %252 = vector.load %arg7[%c0_92, %c0_93, %c0_94, %c0_95] : memref<1x3x32x32xf32, #tpu.memory_space<vmem>>, vector<1x1x32x32xf32>
      %253 = vector.shape_cast %252 : vector<1x1x32x32xf32> to vector<32x32xf32>
      %254 = vector.shape_cast %251 : vector<32x32xf32> to vector<1x1x32x32xf32>
      tpu.vector_store %arg7[%c0_92, %c0_93, %c0_94, %c0_95], %254 {strides = array<i32>} : memref<1x3x32x32xf32, #tpu.memory_space<vmem>>, vector<1x1x32x32xf32>,
      %cst_96 = arith.constant dense<0.000000e+00> : vector<32x32xf32>
      %255 = tpu.matmul %248, %232, %cst_96 {dimension_numbers = #tpu.dot_dimension_numbers<[1], [0], [0], [1], [0, 0, 1, 1], [], []>} : vector<32x32xf32>, vector<32x32xf32>, vector<32x32xf32> -> vector<32x32xf32>
      %cst_97 = arith.constant dense<0.000000e+00> : vector<32x32xf32>
      %256 = tpu.matmul %255, %249, %cst_97 {dimension_numbers = #tpu.dot_dimension_numbers<[1], [0], [0], [1], [0, 0, 1, 1], [], []>} : vector<32x32xf32>, vector<32x32xf32>, vector<32x32xf32> -> vector<32x32xf32>
      %c0_98 = arith.constant 0 : index
      %c1_99 = arith.constant 1 : index
      %c0_100 = arith.constant 0 : index
      %c0_101 = arith.constant 0 : index
      %257 = vector.load %arg7[%c0_98, %c1_99, %c0_100, %c0_101] : memref<1x3x32x32xf32, #tpu.memory_space<vmem>>, vector<1x1x32x32xf32>
      %258 = vector.shape_cast %257 : vector<1x1x32x32xf32> to vector<32x32xf32>
      %259 = vector.shape_cast %256 : vector<32x32xf32> to vector<1x1x32x32xf32>
      tpu.vector_store %arg7[%c0_98, %c1_99, %c0_100, %c0_101], %259 {strides = array<i32>} : memref<1x3x32x32xf32, #tpu.memory_space<vmem>>, vector<1x1x32x32xf32>,
      %cst_102 = arith.constant dense<0.000000e+00> : vector<32x32xf32>
      %260 = tpu.matmul %248, %247, %cst_102 {dimension_numbers = #tpu.dot_dimension_numbers<[1], [0], [0], [1], [0, 0, 1, 1], [], []>} : vector<32x32xf32>, vector<32x32xf32>, vector<32x32xf32> -> vector<32x32xf32>
      %cst_103 = arith.constant dense<0.000000e+00> : vector<32x32xf32>
      %261 = tpu.matmul %260, %249, %cst_103 {dimension_numbers = #tpu.dot_dimension_numbers<[1], [0], [0], [1], [0, 0, 1, 1], [], []>} : vector<32x32xf32>, vector<32x32xf32>, vector<32x32xf32> -> vector<32x32xf32>
      %c0_104 = arith.constant 0 : index
      %c2_105 = arith.constant 2 : index
      %c0_106 = arith.constant 0 : index
      %c0_107 = arith.constant 0 : index
      %262 = vector.load %arg7[%c0_104, %c2_105, %c0_106, %c0_107] : memref<1x3x32x32xf32, #tpu.memory_space<vmem>>, vector<1x1x32x32xf32>
      %263 = vector.shape_cast %262 : vector<1x1x32x32xf32> to vector<32x32xf32>
      %264 = vector.shape_cast %261 : vector<32x32xf32> to vector<1x1x32x32xf32>
      tpu.vector_store %arg7[%c0_104, %c2_105, %c0_106, %c0_107], %264 {strides = array<i32>} : memref<1x3x32x32xf32, #tpu.memory_space<vmem>>, vector<1x1x32x32xf32>,
      %265 = tpu.iota {dimensions = array<i32: 0>} : vector<32x32xi32>
      %266 = tpu.iota {dimensions = array<i32: 1>} : vector<32x32xi32>
      %267 = arith.subi %265, %266 : vector<32x32xi32>
      %268 = math.absi %267 : vector<32x32xi32>
      %c1_i32 = arith.constant 1 : i32
      %269 = vector.broadcast %c1_i32 : i32 to vector<32x32xi32>
      %270 = arith.cmpi sle, %268, %269 : vector<32x32xi32>
      %271 = arith.extui %270 : vector<32x32xi1> to vector<32x32xi32>
      %272 = arith.sitofp %271 : vector<32x32xi32> to vector<32x32xf32>
      %273 = tpu.iota {dimensions = array<i32: 0>} : vector<32x32xi32>
      %274 = tpu.iota {dimensions = array<i32: 1>} : vector<32x32xi32>
      %275 = arith.subi %273, %274 : vector<32x32xi32>
      %276 = math.absi %275 : vector<32x32xi32>
      %c1_i32_108 = arith.constant 1 : i32
      %277 = vector.broadcast %c1_i32_108 : i32 to vector<32x32xi32>
      %278 = arith.cmpi sle, %276, %277 : vector<32x32xi32>
      %279 = arith.extui %278 : vector<32x32xi1> to vector<32x32xi32>
      %280 = arith.sitofp %279 : vector<32x32xi32> to vector<32x32xf32>
      %281 = tpu.iota {dimensions = array<i32: 0>} : vector<32x32xi32>
      %282 = tpu.iota {dimensions = array<i32: 1>} : vector<32x32xi32>
      %c0_i32_109 = arith.constant 0 : i32
      %283 = vector.broadcast %c0_i32_109 : i32 to vector<32x32xi32>
      %284 = arith.cmpi sgt, %281, %283 : vector<32x32xi32>
      %c31_i32 = arith.constant 31 : i32
      %285 = vector.broadcast %c31_i32 : i32 to vector<32x32xi32>
      %286 = arith.cmpi slt, %281, %285 : vector<32x32xi32>
      %287 = arith.andi %284, %286 : vector<32x32xi1>
      %c0_i32_110 = arith.constant 0 : i32
      %288 = vector.broadcast %c0_i32_110 : i32 to vector<32x32xi32>
      %289 = arith.cmpi sgt, %282, %288 : vector<32x32xi32>
      %290 = arith.andi %287, %289 : vector<32x32xi1>
      %c31_i32_111 = arith.constant 31 : i32
      %291 = vector.broadcast %c31_i32_111 : i32 to vector<32x32xi32>
      %292 = arith.cmpi slt, %282, %291 : vector<32x32xi32>
      %293 = arith.andi %290, %292 : vector<32x32xi1>
      %c1_112 = arith.constant 1 : index
      %294 = memref.load %arg2[%c1_112] : memref<4xi32, #tpu.memory_space<smem>>
      %c0_i32_113 = arith.constant 0 : i32
      %295 = arith.cmpi ne, %294, %c0_i32_113 : i32
      %296 = arith.extui %295 : i1 to i32
      %c0_i32_114 = arith.constant 0 : i32
      %297 = arith.cmpi ne, %296, %c0_i32_114 : i32
      scf.if %297 {
        %c0_131 = arith.constant 0 : index
        %c0_132 = arith.constant 0 : index
        %c0_133 = arith.constant 0 : index
        %c0_134 = arith.constant 0 : index
        %315 = vector.load %arg7[%c0_131, %c0_132, %c0_133, %c0_134] : memref<1x3x32x32xf32, #tpu.memory_space<vmem>>, vector<1x1x32x32xf32>
        %316 = vector.shape_cast %315 : vector<1x1x32x32xf32> to vector<32x32xf32>
        %cst_135 = arith.constant dense<0.000000e+00> : vector<32x32xf32>
        %317 = tpu.matmul %272, %316, %cst_135 {dimension_numbers = #tpu.dot_dimension_numbers<[1], [0], [0], [1], [0, 0, 1, 1], [], []>} : vector<32x32xf32>, vector<32x32xf32>, vector<32x32xf32> -> vector<32x32xf32>
        %cst_136 = arith.constant dense<0.000000e+00> : vector<32x32xf32>
        %318 = tpu.matmul %317, %280, %cst_136 {dimension_numbers = #tpu.dot_dimension_numbers<[1], [0], [0], [1], [0, 0, 1, 1], [], []>} : vector<32x32xf32>, vector<32x32xf32>, vector<32x32xf32> -> vector<32x32xf32>
        %cst_137 = arith.constant 4.000000e+00 : f32
        %319 = vector.broadcast %cst_137 : f32 to vector<32x32xf32>
        %320 = arith.mulf %319, %316 : vector<32x32xf32>
        %321 = arith.addf %318, %320 : vector<32x32xf32>
        %cst_138 = arith.constant 0.0769230798 : f32
        %322 = vector.broadcast %cst_138 : f32 to vector<32x32xf32>
        %323 = arith.mulf %321, %322 : vector<32x32xf32>
        %324 = arith.select %293, %323, %316 : vector<32x32xi1>, vector<32x32xf32>
        %cst_139 = arith.constant 2.000000e+00 : f32
        %325 = vector.broadcast %cst_139 : f32 to vector<32x32xf32>
        %326 = arith.mulf %325, %316 : vector<32x32xf32>
        %327 = arith.subf %326, %324 : vector<32x32xf32>
        %cst_140 = arith.constant 0.000000e+00 : f32
        %cst_141 = arith.constant 1.000000e+00 : f32
        %328 = vector.broadcast %cst_140 : f32 to vector<32x32xf32>
        %329 = arith.maximumf %328, %327 : vector<32x32xf32>
        %330 = vector.broadcast %cst_141 : f32 to vector<32x32xf32>
        %331 = arith.minimumf %330, %329 : vector<32x32xf32>
        %c0_142 = arith.constant 0 : index
        %c0_143 = arith.constant 0 : index
        %c0_144 = arith.constant 0 : index
        %c0_145 = arith.constant 0 : index
        %332 = vector.load %arg7[%c0_142, %c0_143, %c0_144, %c0_145] : memref<1x3x32x32xf32, #tpu.memory_space<vmem>>, vector<1x1x32x32xf32>
        %333 = vector.shape_cast %332 : vector<1x1x32x32xf32> to vector<32x32xf32>
        %334 = vector.shape_cast %331 : vector<32x32xf32> to vector<1x1x32x32xf32>
        tpu.vector_store %arg7[%c0_142, %c0_143, %c0_144, %c0_145], %334 {strides = array<i32>} : memref<1x3x32x32xf32, #tpu.memory_space<vmem>>, vector<1x1x32x32xf32>,
        %c0_146 = arith.constant 0 : index
        %c1_147 = arith.constant 1 : index
        %c0_148 = arith.constant 0 : index
        %c0_149 = arith.constant 0 : index
        %335 = vector.load %arg7[%c0_146, %c1_147, %c0_148, %c0_149] : memref<1x3x32x32xf32, #tpu.memory_space<vmem>>, vector<1x1x32x32xf32>
        %336 = vector.shape_cast %335 : vector<1x1x32x32xf32> to vector<32x32xf32>
        %cst_150 = arith.constant dense<0.000000e+00> : vector<32x32xf32>
        %337 = tpu.matmul %272, %336, %cst_150 {dimension_numbers = #tpu.dot_dimension_numbers<[1], [0], [0], [1], [0, 0, 1, 1], [], []>} : vector<32x32xf32>, vector<32x32xf32>, vector<32x32xf32> -> vector<32x32xf32>
        %cst_151 = arith.constant dense<0.000000e+00> : vector<32x32xf32>
        %338 = tpu.matmul %337, %280, %cst_151 {dimension_numbers = #tpu.dot_dimension_numbers<[1], [0], [0], [1], [0, 0, 1, 1], [], []>} : vector<32x32xf32>, vector<32x32xf32>, vector<32x32xf32> -> vector<32x32xf32>
        %cst_152 = arith.constant 4.000000e+00 : f32
        %339 = vector.broadcast %cst_152 : f32 to vector<32x32xf32>
        %340 = arith.mulf %339, %336 : vector<32x32xf32>
        %341 = arith.addf %338, %340 : vector<32x32xf32>
        %cst_153 = arith.constant 0.0769230798 : f32
        %342 = vector.broadcast %cst_153 : f32 to vector<32x32xf32>
        %343 = arith.mulf %341, %342 : vector<32x32xf32>
        %344 = arith.select %293, %343, %336 : vector<32x32xi1>, vector<32x32xf32>
        %cst_154 = arith.constant 2.000000e+00 : f32
        %345 = vector.broadcast %cst_154 : f32 to vector<32x32xf32>
        %346 = arith.mulf %345, %336 : vector<32x32xf32>
        %347 = arith.subf %346, %344 : vector<32x32xf32>
        %cst_155 = arith.constant 0.000000e+00 : f32
        %cst_156 = arith.constant 1.000000e+00 : f32
        %348 = vector.broadcast %cst_155 : f32 to vector<32x32xf32>
        %349 = arith.maximumf %348, %347 : vector<32x32xf32>
        %350 = vector.broadcast %cst_156 : f32 to vector<32x32xf32>
        %351 = arith.minimumf %350, %349 : vector<32x32xf32>
        %c0_157 = arith.constant 0 : index
        %c1_158 = arith.constant 1 : index
        %c0_159 = arith.constant 0 : index
        %c0_160 = arith.constant 0 : index
        %352 = vector.load %arg7[%c0_157, %c1_158, %c0_159, %c0_160] : memref<1x3x32x32xf32, #tpu.memory_space<vmem>>, vector<1x1x32x32xf32>
        %353 = vector.shape_cast %352 : vector<1x1x32x32xf32> to vector<32x32xf32>
        %354 = vector.shape_cast %351 : vector<32x32xf32> to vector<1x1x32x32xf32>
        tpu.vector_store %arg7[%c0_157, %c1_158, %c0_159, %c0_160], %354 {strides = array<i32>} : memref<1x3x32x32xf32, #tpu.memory_space<vmem>>, vector<1x1x32x32xf32>,
        %c0_161 = arith.constant 0 : index
        %c2_162 = arith.constant 2 : index
        %c0_163 = arith.constant 0 : index
        %c0_164 = arith.constant 0 : index
        %355 = vector.load %arg7[%c0_161, %c2_162, %c0_163, %c0_164] : memref<1x3x32x32xf32, #tpu.memory_space<vmem>>, vector<1x1x32x32xf32>
        %356 = vector.shape_cast %355 : vector<1x1x32x32xf32> to vector<32x32xf32>
        %cst_165 = arith.constant dense<0.000000e+00> : vector<32x32xf32>
        %357 = tpu.matmul %272, %356, %cst_165 {dimension_numbers = #tpu.dot_dimension_numbers<[1], [0], [0], [1], [0, 0, 1, 1], [], []>} : vector<32x32xf32>, vector<32x32xf32>, vector<32x32xf32> -> vector<32x32xf32>
        %cst_166 = arith.constant dense<0.000000e+00> : vector<32x32xf32>
        %358 = tpu.matmul %357, %280, %cst_166 {dimension_numbers = #tpu.dot_dimension_numbers<[1], [0], [0], [1], [0, 0, 1, 1], [], []>} : vector<32x32xf32>, vector<32x32xf32>, vector<32x32xf32> -> vector<32x32xf32>
        %cst_167 = arith.constant 4.000000e+00 : f32
        %359 = vector.broadcast %cst_167 : f32 to vector<32x32xf32>
        %360 = arith.mulf %359, %356 : vector<32x32xf32>
        %361 = arith.addf %358, %360 : vector<32x32xf32>
        %cst_168 = arith.constant 0.0769230798 : f32
        %362 = vector.broadcast %cst_168 : f32 to vector<32x32xf32>
        %363 = arith.mulf %361, %362 : vector<32x32xf32>
        %364 = arith.select %293, %363, %356 : vector<32x32xi1>, vector<32x32xf32>
        %cst_169 = arith.constant 2.000000e+00 : f32
        %365 = vector.broadcast %cst_169 : f32 to vector<32x32xf32>
        %366 = arith.mulf %365, %356 : vector<32x32xf32>
        %367 = arith.subf %366, %364 : vector<32x32xf32>
        %cst_170 = arith.constant 0.000000e+00 : f32
        %cst_171 = arith.constant 1.000000e+00 : f32
        %368 = vector.broadcast %cst_170 : f32 to vector<32x32xf32>
        %369 = arith.maximumf %368, %367 : vector<32x32xf32>
        %370 = vector.broadcast %cst_171 : f32 to vector<32x32xf32>
        %371 = arith.minimumf %370, %369 : vector<32x32xf32>
        %c0_172 = arith.constant 0 : index
        %c2_173 = arith.constant 2 : index
        %c0_174 = arith.constant 0 : index
        %c0_175 = arith.constant 0 : index
        %372 = vector.load %arg7[%c0_172, %c2_173, %c0_174, %c0_175] : memref<1x3x32x32xf32, #tpu.memory_space<vmem>>, vector<1x1x32x32xf32>
        %373 = vector.shape_cast %372 : vector<1x1x32x32xf32> to vector<32x32xf32>
        %374 = vector.shape_cast %371 : vector<32x32xf32> to vector<1x1x32x32xf32>
        tpu.vector_store %arg7[%c0_172, %c2_173, %c0_174, %c0_175], %374 {strides = array<i32>} : memref<1x3x32x32xf32, #tpu.memory_space<vmem>>, vector<1x1x32x32xf32>,
      } else {
      }
      %c2_115 = arith.constant 2 : index
      %298 = memref.load %arg2[%c2_115] : memref<4xi32, #tpu.memory_space<smem>>
      %c0_i32_116 = arith.constant 0 : i32
      %299 = arith.cmpi ne, %298, %c0_i32_116 : i32
      %300 = arith.extui %299 : i1 to i32
      %c0_i32_117 = arith.constant 0 : i32
      %301 = arith.cmpi ne, %300, %c0_i32_117 : i32
      scf.if %301 {
        %c0_131 = arith.constant 0 : index
        %c0_132 = arith.constant 0 : index
        %c0_133 = arith.constant 0 : index
        %c0_134 = arith.constant 0 : index
        %315 = vector.load %arg7[%c0_131, %c0_132, %c0_133, %c0_134] : memref<1x3x32x32xf32, #tpu.memory_space<vmem>>, vector<1x1x32x32xf32>
        %316 = vector.shape_cast %315 : vector<1x1x32x32xf32> to vector<32x32xf32>
        %cst_135 = arith.constant dense<0.000000e+00> : vector<32x32xf32>
        %317 = tpu.matmul %272, %316, %cst_135 {dimension_numbers = #tpu.dot_dimension_numbers<[1], [0], [0], [1], [0, 0, 1, 1], [], []>} : vector<32x32xf32>, vector<32x32xf32>, vector<32x32xf32> -> vector<32x32xf32>
        %cst_136 = arith.constant dense<0.000000e+00> : vector<32x32xf32>
        %318 = tpu.matmul %317, %280, %cst_136 {dimension_numbers = #tpu.dot_dimension_numbers<[1], [0], [0], [1], [0, 0, 1, 1], [], []>} : vector<32x32xf32>, vector<32x32xf32>, vector<32x32xf32> -> vector<32x32xf32>
        %cst_137 = arith.constant 4.000000e+00 : f32
        %319 = vector.broadcast %cst_137 : f32 to vector<32x32xf32>
        %320 = arith.mulf %319, %316 : vector<32x32xf32>
        %321 = arith.addf %318, %320 : vector<32x32xf32>
        %cst_138 = arith.constant 0.0769230798 : f32
        %322 = vector.broadcast %cst_138 : f32 to vector<32x32xf32>
        %323 = arith.mulf %321, %322 : vector<32x32xf32>
        %324 = arith.select %293, %323, %316 : vector<32x32xi1>, vector<32x32xf32>
        %cst_139 = arith.constant 0.000000e+00 : f32
        %cst_140 = arith.constant 1.000000e+00 : f32
        %325 = vector.broadcast %cst_139 : f32 to vector<32x32xf32>
        %326 = arith.maximumf %325, %324 : vector<32x32xf32>
        %327 = vector.broadcast %cst_140 : f32 to vector<32x32xf32>
        %328 = arith.minimumf %327, %326 : vector<32x32xf32>
        %c0_141 = arith.constant 0 : index
        %c0_142 = arith.constant 0 : index
        %c0_143 = arith.constant 0 : index
        %c0_144 = arith.constant 0 : index
        %329 = vector.load %arg7[%c0_141, %c0_142, %c0_143, %c0_144] : memref<1x3x32x32xf32, #tpu.memory_space<vmem>>, vector<1x1x32x32xf32>
        %330 = vector.shape_cast %329 : vector<1x1x32x32xf32> to vector<32x32xf32>
        %331 = vector.shape_cast %328 : vector<32x32xf32> to vector<1x1x32x32xf32>
        tpu.vector_store %arg7[%c0_141, %c0_142, %c0_143, %c0_144], %331 {strides = array<i32>} : memref<1x3x32x32xf32, #tpu.memory_space<vmem>>, vector<1x1x32x32xf32>,
        %c0_145 = arith.constant 0 : index
        %c1_146 = arith.constant 1 : index
        %c0_147 = arith.constant 0 : index
        %c0_148 = arith.constant 0 : index
        %332 = vector.load %arg7[%c0_145, %c1_146, %c0_147, %c0_148] : memref<1x3x32x32xf32, #tpu.memory_space<vmem>>, vector<1x1x32x32xf32>
        %333 = vector.shape_cast %332 : vector<1x1x32x32xf32> to vector<32x32xf32>
        %cst_149 = arith.constant dense<0.000000e+00> : vector<32x32xf32>
        %334 = tpu.matmul %272, %333, %cst_149 {dimension_numbers = #tpu.dot_dimension_numbers<[1], [0], [0], [1], [0, 0, 1, 1], [], []>} : vector<32x32xf32>, vector<32x32xf32>, vector<32x32xf32> -> vector<32x32xf32>
        %cst_150 = arith.constant dense<0.000000e+00> : vector<32x32xf32>
        %335 = tpu.matmul %334, %280, %cst_150 {dimension_numbers = #tpu.dot_dimension_numbers<[1], [0], [0], [1], [0, 0, 1, 1], [], []>} : vector<32x32xf32>, vector<32x32xf32>, vector<32x32xf32> -> vector<32x32xf32>
        %cst_151 = arith.constant 4.000000e+00 : f32
        %336 = vector.broadcast %cst_151 : f32 to vector<32x32xf32>
        %337 = arith.mulf %336, %333 : vector<32x32xf32>
        %338 = arith.addf %335, %337 : vector<32x32xf32>
        %cst_152 = arith.constant 0.0769230798 : f32
        %339 = vector.broadcast %cst_152 : f32 to vector<32x32xf32>
        %340 = arith.mulf %338, %339 : vector<32x32xf32>
        %341 = arith.select %293, %340, %333 : vector<32x32xi1>, vector<32x32xf32>
        %cst_153 = arith.constant 0.000000e+00 : f32
        %cst_154 = arith.constant 1.000000e+00 : f32
        %342 = vector.broadcast %cst_153 : f32 to vector<32x32xf32>
        %343 = arith.maximumf %342, %341 : vector<32x32xf32>
        %344 = vector.broadcast %cst_154 : f32 to vector<32x32xf32>
        %345 = arith.minimumf %344, %343 : vector<32x32xf32>
        %c0_155 = arith.constant 0 : index
        %c1_156 = arith.constant 1 : index
        %c0_157 = arith.constant 0 : index
        %c0_158 = arith.constant 0 : index
        %346 = vector.load %arg7[%c0_155, %c1_156, %c0_157, %c0_158] : memref<1x3x32x32xf32, #tpu.memory_space<vmem>>, vector<1x1x32x32xf32>
        %347 = vector.shape_cast %346 : vector<1x1x32x32xf32> to vector<32x32xf32>
        %348 = vector.shape_cast %345 : vector<32x32xf32> to vector<1x1x32x32xf32>
        tpu.vector_store %arg7[%c0_155, %c1_156, %c0_157, %c0_158], %348 {strides = array<i32>} : memref<1x3x32x32xf32, #tpu.memory_space<vmem>>, vector<1x1x32x32xf32>,
        %c0_159 = arith.constant 0 : index
        %c2_160 = arith.constant 2 : index
        %c0_161 = arith.constant 0 : index
        %c0_162 = arith.constant 0 : index
        %349 = vector.load %arg7[%c0_159, %c2_160, %c0_161, %c0_162] : memref<1x3x32x32xf32, #tpu.memory_space<vmem>>, vector<1x1x32x32xf32>
        %350 = vector.shape_cast %349 : vector<1x1x32x32xf32> to vector<32x32xf32>
        %cst_163 = arith.constant dense<0.000000e+00> : vector<32x32xf32>
        %351 = tpu.matmul %272, %350, %cst_163 {dimension_numbers = #tpu.dot_dimension_numbers<[1], [0], [0], [1], [0, 0, 1, 1], [], []>} : vector<32x32xf32>, vector<32x32xf32>, vector<32x32xf32> -> vector<32x32xf32>
        %cst_164 = arith.constant dense<0.000000e+00> : vector<32x32xf32>
        %352 = tpu.matmul %351, %280, %cst_164 {dimension_numbers = #tpu.dot_dimension_numbers<[1], [0], [0], [1], [0, 0, 1, 1], [], []>} : vector<32x32xf32>, vector<32x32xf32>, vector<32x32xf32> -> vector<32x32xf32>
        %cst_165 = arith.constant 4.000000e+00 : f32
        %353 = vector.broadcast %cst_165 : f32 to vector<32x32xf32>
        %354 = arith.mulf %353, %350 : vector<32x32xf32>
        %355 = arith.addf %352, %354 : vector<32x32xf32>
        %cst_166 = arith.constant 0.0769230798 : f32
        %356 = vector.broadcast %cst_166 : f32 to vector<32x32xf32>
        %357 = arith.mulf %355, %356 : vector<32x32xf32>
        %358 = arith.select %293, %357, %350 : vector<32x32xi1>, vector<32x32xf32>
        %cst_167 = arith.constant 0.000000e+00 : f32
        %cst_168 = arith.constant 1.000000e+00 : f32
        %359 = vector.broadcast %cst_167 : f32 to vector<32x32xf32>
        %360 = arith.maximumf %359, %358 : vector<32x32xf32>
        %361 = vector.broadcast %cst_168 : f32 to vector<32x32xf32>
        %362 = arith.minimumf %361, %360 : vector<32x32xf32>
        %c0_169 = arith.constant 0 : index
        %c2_170 = arith.constant 2 : index
        %c0_171 = arith.constant 0 : index
        %c0_172 = arith.constant 0 : index
        %363 = vector.load %arg7[%c0_169, %c2_170, %c0_171, %c0_172] : memref<1x3x32x32xf32, #tpu.memory_space<vmem>>, vector<1x1x32x32xf32>
        %364 = vector.shape_cast %363 : vector<1x1x32x32xf32> to vector<32x32xf32>
        %365 = vector.shape_cast %362 : vector<32x32xf32> to vector<1x1x32x32xf32>
        tpu.vector_store %arg7[%c0_169, %c2_170, %c0_171, %c0_172], %365 {strides = array<i32>} : memref<1x3x32x32xf32, #tpu.memory_space<vmem>>, vector<1x1x32x32xf32>,
      } else {
      }
      %c3_118 = arith.constant 3 : index
      %302 = memref.load %arg2[%c3_118] : memref<4xi32, #tpu.memory_space<smem>>
      %c0_i32_119 = arith.constant 0 : i32
      %303 = arith.cmpi ne, %302, %c0_i32_119 : i32
      %304 = arith.extui %303 : i1 to i32
      %c0_i32_120 = arith.constant 0 : i32
      %305 = arith.cmpi ne, %304, %c0_i32_120 : i32
      scf.if %305 {
        %c0_131 = arith.constant 0 : index
        %c0_132 = arith.constant 0 : index
        %c0_133 = arith.constant 0 : index
        %c0_134 = arith.constant 0 : index
        %315 = vector.load %arg7[%c0_131, %c0_132, %c0_133, %c0_134] : memref<1x3x32x32xf32, #tpu.memory_space<vmem>>, vector<1x3x32x32xf32>
        %316 = vector.shape_cast %315 : vector<1x3x32x32xf32> to vector<3x32x32xf32>
        %c0_135 = arith.constant 0 : index
        %c0_136 = arith.constant 0 : index
        %c0_137 = arith.constant 0 : index
        %c0_138 = arith.constant 0 : index
        %317 = vector.load %arg4[%c0_135, %c0_136, %c0_137, %c0_138] : memref<1x3x32x32xf32, #tpu.memory_space<vmem>>, vector<1x3x32x32xf32>
        %318 = vector.shape_cast %317 : vector<1x3x32x32xf32> to vector<3x32x32xf32>
        %319 = arith.addf %316, %318 : vector<3x32x32xf32>
        %c0_139 = arith.constant 0 : index
        %c0_140 = arith.constant 0 : index
        %c0_141 = arith.constant 0 : index
        %c0_142 = arith.constant 0 : index
        %320 = vector.load %arg7[%c0_139, %c0_140, %c0_141, %c0_142] : memref<1x3x32x32xf32, #tpu.memory_space<vmem>>, vector<1x3x32x32xf32>
        %321 = vector.shape_cast %320 : vector<1x3x32x32xf32> to vector<3x32x32xf32>
        %322 = vector.shape_cast %319 : vector<3x32x32xf32> to vector<1x3x32x32xf32>
        tpu.vector_store %arg7[%c0_139, %c0_140, %c0_141, %c0_142], %322 {strides = array<i32>} : memref<1x3x32x32xf32, #tpu.memory_space<vmem>>, vector<1x3x32x32xf32>,
      } else {
      }
      %c0_121 = arith.constant 0 : index
      %c0_122 = arith.constant 0 : index
      %c0_123 = arith.constant 0 : index
      %c0_124 = arith.constant 0 : index
      %306 = vector.load %arg7[%c0_121, %c0_122, %c0_123, %c0_124] : memref<1x3x32x32xf32, #tpu.memory_space<vmem>>, vector<1x3x32x32xf32>
      %307 = vector.shape_cast %306 : vector<1x3x32x32xf32> to vector<3x32x32xf32>
      %cst_125 = arith.constant 2.000000e+00 : f32
      %308 = vector.broadcast %cst_125 : f32 to vector<3x32x32xf32>
      %309 = arith.mulf %308, %307 : vector<3x32x32xf32>
      %cst_126 = arith.constant 1.000000e+00 : f32
      %310 = vector.broadcast %cst_126 : f32 to vector<3x32x32xf32>
      %311 = arith.subf %309, %310 : vector<3x32x32xf32>
      %c0_127 = arith.constant 0 : index
      %c0_128 = arith.constant 0 : index
      %c0_129 = arith.constant 0 : index
      %c0_130 = arith.constant 0 : index
      %312 = vector.load %arg7[%c0_127, %c0_128, %c0_129, %c0_130] : memref<1x3x32x32xf32, #tpu.memory_space<vmem>>, vector<1x3x32x32xf32>
      %313 = vector.shape_cast %312 : vector<1x3x32x32xf32> to vector<3x32x32xf32>
      %314 = vector.shape_cast %311 : vector<3x32x32xf32> to vector<1x3x32x32xf32>
      tpu.vector_store %arg7[%c0_127, %c0_128, %c0_129, %c0_130], %314 {strides = array<i32>} : memref<1x3x32x32xf32, #tpu.memory_space<vmem>>, vector<1x3x32x32xf32>,
    } else {
    }
    return
  }
  func.func @transform_0(%arg0: i32) -> i32 {
    %c0_i32 = arith.constant 0 : i32
    %c0_i32_0 = arith.constant 0 : i32
    return %c0_i32 : i32
  }
  func.func @transform_1(%arg0: i32) -> i32 {
    %c0_i32 = arith.constant 0 : i32
    %c0_i32_0 = arith.constant 0 : i32
    return %c0_i32 : i32
  }
  func.func @transform_2(%arg0: i32) -> (i32, i32, i32, i32) {
    %c0_i32 = arith.constant 0 : i32
    %c0_i32_0 = arith.constant 0 : i32
    %c0_i32_1 = arith.constant 0 : i32
    %c0_i32_2 = arith.constant 0 : i32
    return %arg0, %c0_i32, %c0_i32_0, %c0_i32_1 : i32, i32, i32, i32
  }
  func.func @transform_3(%arg0: i32) -> (i32, i32, i32, i32) {
    %c0_i32 = arith.constant 0 : i32
    %c0_i32_0 = arith.constant 0 : i32
    %c0_i32_1 = arith.constant 0 : i32
    %c0_i32_2 = arith.constant 0 : i32
    return %arg0, %c0_i32, %c0_i32_0, %c0_i32_1 : i32, i32, i32, i32
  }
  func.func @transform_4(%arg0: i32) -> (i32, i32) {
    %c0_i32 = arith.constant 0 : i32
    %c0_i32_0 = arith.constant 0 : i32
    %c0_i32_1 = arith.constant 0 : i32
    return %c0_i32, %c0_i32_0 : i32, i32
  }
  func.func @transform_5(%arg0: i32) -> (i32, i32) {
    %c0_i32 = arith.constant 0 : i32
    %c0_i32_0 = arith.constant 0 : i32
    %c0_i32_1 = arith.constant 0 : i32
    return %c0_i32, %c0_i32_0 : i32, i32
  }
  func.func @transform_6(%arg0: i32) -> (i32, i32, i32, i32) {
    %c0_i32 = arith.constant 0 : i32
    %c0_i32_0 = arith.constant 0 : i32
    %c0_i32_1 = arith.constant 0 : i32
    %c0_i32_2 = arith.constant 0 : i32
    return %arg0, %c0_i32, %c0_i32_0, %c0_i32_1 : i32, i32, i32, i32
  }
}

</mosaic_0001>

<bundles_post_ra>
// kernel: tpu_custom_call.1
= control target key start
LH: loop header
LB: loop body
LE: loop exit
PB: predicated region body
PF: predicated region fallthrough
CT: control target
= control target key end

     0   :  { %s5654_s0 = inlined_call_operand.hbm [shape: f32[4], index: 0, kind: input, shape index: {}]   ;;  %s5655_s1 = inlined_call_operand.vmem [shape: s32[4], index: 1, kind: input, shape index: {}]   ;;  %s5656_s2 = inlined_call_operand.hbm [shape: f32[2,3,32,32], index: 2, kind: input, shape index: {}]   ;;  %s5657_s3 = inlined_call_operand.hbm [shape: f32[2,3,32,32], index: 3, kind: input, shape index: {}]   ;;  %s5658_s4 = inlined_call_operand.hbm [shape: f32[32,32], index: 4, kind: input, shape index: {}]   ;;  %s5659_s5 = inlined_call_operand.hbm [shape: f32[32,32], index: 5, kind: input, shape index: {}]   ;;  %s5660_s6 = inlined_call_operand.hbm [shape: f32[2,3,32,32], index: 6, kind: output, shape index: {}]  }
   0x1   :  { %5669 = sst [smem:[#allocation22_spill]] %s5654_s0 }
   0x2   :  { %5670 = sst [smem:[#allocation23_spill]] %s5655_s1 }
   0x3   :  { %5671 = sst [smem:[#allocation24_spill]] %s5656_s2 }
   0x4   :  { %11 = vsyncpa [#allocation5], 0 }
   0x5   :  { %12 = vsyncpa [#allocation6], 0 }
   0x6   :  { %13 = vsyncpa [#allocation3], 0 }
   0x7   :  { %15 = vsyncpa [#allocation3 + $0x1], 0 }
   0x8   :  { %16 = vsyncpa [#allocation10], 0 }
   0x9   :  { %18 = vsyncpa [#allocation10 + $0x1], 0 }
   0xa   :  { %19 = vsyncpa [#allocation13], 0 }
   0xb   :  { %20 = vsyncpa [#allocation4], 0 }
   0xc   :  { %22 = vsyncpa [#allocation4 + $0x1], 0  ;;  %s4179_s21 = smov 0   ;;  %s4181_s22 = smov 0  }
   0xd   :  { %s4183_s23 = smov 0   ;;  %s4185_s24 = smov 0  }
   0xe LB: > { %s4200_s25 = sadd.s32 4294967295, %s4128_s24   ;;  %s3183_s26 = sadd.s32 4294967294, %s4128_s24   ;;  %s4128_s24 = sphi %s4185_s24, %s5723_s24   ;;  %s4124_s23 = sphi %s4183_s23, %s5722_s23   ;;  %s4120_s22 = sphi %s4181_s22, %s5721_s22   ;;  %s4116_s21 = sphi %s4179_s21, %s5720_s21  }
   0xf   : > { %p90_p0 = scmp.ne.s32.totalorder %s4120_s22, %s4116_s21  ;;  %p5661_p1 = scmp.eq.s32.totalorder %s4200_s25, 0 }
  0x10   : > { %p188_p3 = scmp.eq.s32.totalorder %s3183_s26, 1  ;;  %p3184_p5 = scmp.ge.s32.totalorder %s4128_s24, 1 }
  0x11   : > { %p4209_p4 = por %p5661_p1, %p90_p0  ;;  %p195_p7 = scmp.lt.s32.totalorder %s4128_s24, 3 }
  0x12   : > { %p4214_p6 = por %p188_p3, %p90_p0  ;;  %s4130_s30 = smov [#allocation11]  }
  0x13   : > { %s5672_s27 = scalar_select %p4209_p4, 1, 0 }
  0x14   : > { %s5673_s28 = scalar_select %p4214_p6, 1, 0 }
  0x15   : > { %p4219_p8 = pnand %p3184_p5, %p195_p7  ;;  %s227_s7 = sshll.u32 %s4130_s30, 4  ;;  %s228_s7 = int_to_ptr.vmem [resolvable:$true] %s227_s7 }
  0x16   : > { %s5676_s1 = sld [smem:[#allocation23_spill]]  ;;  %s3921_s12 = scalar_lea.vmem %s228_s7, 512 }
  0x17   : > { %p3817_p9 = pneg %p4219_p8  ;;  %p3922_p13 = scmp.ne.s32.totalorder %s228_s7, %s3921_s12 }
  0x18   : > { %p3929_p5 = scmp.lt.s32.totalorder %s228_s7, %s228_s7  ;;  %p3930_p7 = scmp.lt.s32.totalorder %s3921_s12, %s3921_s12 }
  0x19   : > { %p4228_p11 = pnand %p3817_p9, %p5661_p1 }
  0x1a   : > { %p3931_p9 = por %p3930_p7, %p3929_p5 }
  0x1b   : > { %p3912_p12 = pneg %p4228_p11 }
  0x1c   : > { %s217_s11 = sshll.u32 %s5676_s1, 4  ;;  %s218_s11 = int_to_ptr.vmem [resolvable:$true] %s217_s11 }
  0x1d   : > { %p3924_p0 = pnand %p3922_p13, %p3912_p12 }
  0x1f   : > { %p3925_p3 = pneg %p3924_p0 }
  0x21   : > { %p3932_p10 = pnand %p3931_p9, %p3925_p3 }
  0x23   : > { %3935 = shalt.err (!%p3932_p10)
}
  0x24   : > { %s5663_s13 = smov 128   ;;  %s5666_s14 = smov 8  }
  0x25   : > { %3826 = dma.hbm_to_vmem [thread:$0]  (!%p4228_p11), %s5658_s4, 512, %s228_s7, [#allocation10], %s5663_s13, %s5663_s13, %s5666_s14  }
  0x26   : > { %s4133_s17 = smov [#allocation2]   ;;  %s5677_s0 = sld [smem:[#allocation22_spill]] }
  0x27   : > { %s3947_s20 = scalar_lea.vmem %s218_s11, 16  ;;  %p3955_p3 = scmp.lt.s32.totalorder %s218_s11, %s218_s11 }
  0x28   : > { %p3948_p10 = scmp.ne.s32.totalorder %s218_s11, %s3947_s20  ;;  %p3956_p5 = scmp.lt.s32.totalorder %s3947_s20, %s3947_s20 }
  0x2a   : > { %p3950_p13 = pnand %p3948_p10, %p3912_p12  ;;  %p3957_p7 = por %p3956_p5, %p3955_p3 }
  0x2c   : > { %3820 = dma.hbm_to_smem (!%p4228_p11), %s5677_s0, 16, %s4133_s17, [#allocation5]  }
  0x2d   : > { %p3951_p0 = pneg %p3950_p13 }
  0x2f   : > { %p3958_p9 = pnand %p3957_p7, %p3951_p0 }
  0x31   : > { %3961 = shalt.err (!%p3958_p9)
}
  0x32   : > { %s4134_s26 = smov [#allocation7]   ;;  %s4135_s30 = smov [#allocation12]  }
  0x33   : > { %3823 = dma.vmem_to_smem (!%p4228_p11), %s218_s11, 16, %s4134_s26, [#allocation6]  }
  0x34   : > { %s240_s7 = sshll.u32 %s4135_s30, 4  ;;  %s241_s7 = int_to_ptr.vmem [resolvable:$true] %s240_s7 }
  0x35   : > { %s3973_s9 = scalar_lea.vmem %s241_s7, 512  ;;  %p3981_p13 = scmp.lt.s32.totalorder %s241_s7, %s241_s7 }
  0x36   : > { %p3974_p1 = scmp.ne.s32.totalorder %s241_s7, %s3973_s9  ;;  %p3982_p6 = scmp.lt.s32.totalorder %s3973_s9, %s3973_s9 }
  0x38   : > { %p3976_p2 = pnand %p3974_p1, %p3912_p12  ;;  %p3983_p4 = por %p3982_p6, %p3981_p13 }
  0x3a   : > { %p3977_p10 = pneg %p3976_p2 }
  0x3c   : > { %p3984_p3 = pnand %p3983_p4, %p3977_p10 }
  0x3e   : > { %3987 = shalt.err (!%p3984_p3)
}
  0x3f   : > { %3829 = dma.hbm_to_vmem [thread:$0]  (!%p4228_p11), %s5659_s5, 512, %s241_s7, [#allocation13], %s5663_s13, %s5663_s13, %s5666_s14  }
  0x40   : > { %s4270_s8 = sadd.s32 1, %s4128_s24   ;;  %s77_s12 = sadd.s32 1, %s4124_s23 }
  0x41   : > { %s74_s15 = ssub.s32 %s4128_s24, %s4270_s8  ;;  %p84_p1 = scmp.ne.s32.totalorder %s4124_s23, %s4120_s22 }
  0x42   : > { %p75_p2 = scmp.eq.s32.totalorder %s74_s15, 0  ;;  %p85_p4 = scmp.eq.s32.totalorder %s4128_s24, 0 }
  0x43   : > { %p5678_p6 = scmp.eq.s32.totalorder %s4200_s25, 1  ;;  %p3845_p0 = scmp.lt.s32.totalorder %s4128_s24, 2 }
  0x44   : > { %s4286_s17 = scalar_select %p75_p2, %s4124_s23, %s77_s12  }
  0x45   : > { %p4280_p12 = por %p5678_p6, %p84_p1  ;;  %p86_p5 = por %p85_p4, %p84_p1 }
  0x46   : > { %s254_s18 = sand.u32 1, %s4124_s23   ;;  %s5665_s20 = smul.u32 1536, %s4128_s24 }
  0x47   : > { %s5679_s16 = scalar_select %p4280_p12, 1, 0 }
  0x48   : > { %s4289_s19 = smul.u32 96, %s254_s18  ;;  %p4292_p11 = pnand %p3845_p0, %p86_p5 }
  0x49   : > { %s5681_s2 = sld [smem:[#allocation24_spill]]  ;;  %s4307_s15 = scalar_lea.sflag [#allocation3], %s254_s18 }
  0x4a   : > { %s258_s11 = scalar_lea.vmem [#allocation8], %s4289_s19  ;;  %p3990_p9 = pneg %p4292_p11 }
  0x4b   : > { %s265_s12 = sshll.u32 %s258_s11, 4  ;;  %s4305_s12 = int_to_ptr.vmem [resolvable:$true] %s265_s12 }
  0x4f   : > { %s4302_s10 = scalar_lea.hbm %s5681_s2, %s5665_s20  ;;  %s3993_s30 = scalar_lea.hbm %s5681_s2, 3072 }
  0x50   : > { %s3988_s13 = scalar_lea.hbm %s4302_s10, 1536  ;;  %p3994_p3 = scmp.lt.s32.totalorder %s4302_s10, %s5681_s2 }
  0x51   : > { %p3989_p7 = scmp.ne.s32.totalorder %s4302_s10, %s3988_s13  ;;  %p3995_p1 = scmp.lt.s32.totalorder %s3993_s30, %s3988_s13 }
  0x53   : > { %p3991_p10 = pnand %p3990_p9, %p3989_p7  ;;  %p3996_p2 = por %p3995_p1, %p3994_p3 }
  0x55   : > { %p3992_p13 = pneg %p3991_p10 }
  0x57   : > { %p3997_p4 = pnand %p3996_p2, %p3992_p13 }
  0x59   : > { %4000 = shalt.err (!%p3997_p4)
}
  0x5a   : > { %s4001_s18 = scalar_lea.vmem %s4305_s12, 1536  ;;  %s4136_s11 = smov [#allocation8]  }
  0x5b   : > { %p4002_p6 = scmp.ne.s32.totalorder %s4305_s12, %s4001_s18  ;;  %s4006_s7 = sshll.u32 %s4136_s11, 4  ;;  %s4007_s7 = int_to_ptr.vmem [resolvable:$false] %s4006_s7 }
  0x5c   : > { %s4008_s9 = scalar_lea.vmem %s4007_s7, 3072  ;;  %p4009_p7 = scmp.lt.s32.totalorder %s4305_s12, %s4007_s7 }
  0x5d   : > { %p4004_p0 = pnand %p4002_p6, %p3990_p9  ;;  %p4010_p10 = scmp.lt.s32.totalorder %s4008_s9, %s4001_s18 }
  0x5f   : > { %p4005_p5 = pneg %p4004_p0  ;;  %p4011_p12 = por %p4010_p10, %p4009_p7 }
  0x61   : > { %p4012_p3 = pnand %p4011_p12, %p4005_p5 }
  0x63   : > { %4015 = shalt.err (!%p4012_p3)
}
  0x64   : > { %s5682_s13 = smov 8   ;;  %s5683_s14 = smov 128  }
  0x65   : > { %3833 = dma.hbm_to_vmem [thread:$0]  (!%p4292_p11), %s4302_s10, 1536, %s4305_s12, %s4307_s15, %s5683_s14, %s5683_s14, %s5682_s13  }
  0x66   : > { %s5684_s20 = smul.u32 1536, %s4128_s24  ;;  %s279_s7 = scalar_lea.vmem [#allocation9], %s4289_s19 }
  0x67   : > { %s286_s9 = sshll.u32 %s279_s7, 4  ;;  %s5685_s0 = sand.u32 1, %s4128_s24   ;;  %s4345_s9 = int_to_ptr.vmem [resolvable:$true] %s286_s9 }
  0x68   : > { %s4342_s18 = scalar_lea.hbm %s5657_s3, %s5684_s20  ;;  %s276_s1 = scalar_lea.sflag [#allocation10], %s5685_s0 }
  0x69   : > { %s4016_s2 = scalar_lea.hbm %s4342_s18, 1536  ;;  %s4021_s15 = scalar_lea.hbm %s5657_s3, 3072 }
  0x6a   : > { %p4017_p12 = scmp.ne.s32.totalorder %s4342_s18, %s4016_s2  ;;  %p4022_p2 = scmp.lt.s32.totalorder %s4342_s18, %s5657_s3 }
  0x6b   : > { %p4023_p4 = scmp.lt.s32.totalorder %s4021_s15, %s4016_s2 }
  0x6c   : > { %p4019_p13 = pnand %p4017_p12, %p3990_p9 }
  0x6d   : > { %p4024_p6 = por %p4023_p4, %p4022_p2 }
  0x6e   : > { %p4020_p1 = pneg %p4019_p13 }
  0x70   : > { %p4025_p0 = pnand %p4024_p6, %p4020_p1 }
  0x72   : > { %4028 = shalt.err (!%p4025_p0)
}
  0x73   : > { %s4029_s0 = scalar_lea.vmem %s4345_s9, 1536  ;;  %s4137_s19 = smov [#allocation9]  }
  0x74   : > { %p4030_p5 = scmp.ne.s32.totalorder %s4345_s9, %s4029_s0  ;;  %s4034_s11 = sshll.u32 %s4137_s19, 4  ;;  %s4035_s11 = int_to_ptr.vmem [resolvable:$false] %s4034_s11 }
  0x75   : > { %s4036_s7 = scalar_lea.vmem %s4035_s11, 3072  ;;  %p4037_p3 = scmp.lt.s32.totalorder %s4345_s9, %s4035_s11 }
  0x76   : > { %p4032_p7 = pnand %p4030_p5, %p3990_p9  ;;  %p4038_p12 = scmp.lt.s32.totalorder %s4036_s7, %s4029_s0 }
  0x78   : > { %p4033_p10 = pneg %p4032_p7  ;;  %p4039_p13 = por %p4038_p12, %p4037_p3 }
  0x7a   : > { %p4040_p2 = pnand %p4039_p13, %p4033_p10 }
  0x7c   : > { %4043 = shalt.err (!%p4040_p2)
}
  0x7d   : > { %3836 = dma.hbm_to_vmem [thread:$0]  (!%p4292_p11), %s4342_s18, 1536, %s4345_s9, %s276_s1, %s5683_s14, %s5683_s14, %s5682_s13  }
  0x7e   : > { %298 = sbr.rel (%p4219_p8) target bundleno = 1893 (0x765), region = 44  ;;  %p5686_p9 = scmp.eq.s32.totalorder (!%p4219_p8), %s4200_s25, 0 }
  0x83   : > { %4087 = dma.done.wait (%p5686_p9), [#allocation5], 16   ;;  %p5687_p1 = pmov %p5686_p9 }
  0x85   : > { %4089 = vsyncadd (%p5687_p1), [#allocation5], 4294967280  ;;  %p5688_p4 = pmov %p5687_p1 }
  0x86   : > { %p5689_p6 = pmov %p5687_p1 }
  0x87   : > { %4091 = dma.done.wait (%p5688_p4), [#allocation6], 16  }
  0x88   : > { %4093 = vsyncadd (%p5689_p6), [#allocation6], 4294967280  ;;  %s4385_s2 = sand.u32 1, %s4120_s22   ;;  %p5690_p8 = scmp.ne.s32.totalorder %s5672_s27, 0 }
  0x89   : > { %s3791_s1 = smul.u32 96, %s4385_s2  ;;  %s309_s29 = scalar_lea.sflag [#allocation3], %s4385_s2 }
  0x8b   : > { %s4389_s26 = scalar_lea.vmem [#allocation8], %s3791_s1 }
  0x8c   : > { %4095 = dma.done.wait (%p5690_p8), %s309_s29, 1536  }
  0x8d   : > { %4097 = vsyncadd (%p5690_p8), %s309_s29, 4294965760  ;;  %s317_s13 = sand.u32 1, %s4200_s25   ;;  %s4396_s18 = scalar_lea.vmem [#allocation9], %s3791_s1 }
  0x8e   : > { %s318_s14 = scalar_lea.sflag [#allocation10], %s317_s13 }
  0x8f   : > { %4099 = dma.done.wait (%p5690_p8), %s318_s14, 1536  }
  0x90   : > { %4101 = vsyncadd (%p5690_p8), %s318_s14, 4294965760  ;;  %p5691_p11 = pmov %p5687_p1 }
  0x91   : > { %p5692_p0 = pmov %p5687_p1 }
  0x92   : > { %4103 = dma.done.wait (%p5691_p11), [#allocation10], 512  }
  0x93   : > { %4105 = vsyncadd (%p5692_p0), [#allocation10], 4294966784  ;;  %p5693_p5 = pmov %p5692_p0 }
  0x94   : > { %p5694_p7 = pmov %p5692_p0 }
  0x95   : > { %4107 = dma.done.wait (%p5693_p5), [#allocation13], 512  }
  0x96   : > { %4109 = vsyncadd (%p5694_p7), [#allocation13], 4294966784 }
  0x97   : > { %334 = sfence }
  0x98   : > { %s364_s9 = sld [smem:[#allocation7]]  ;;  %s4410_s10 = scalar_lea.vmem [#allocation14], %s3791_s1 }
  0x9e   : > { %p3197_p10 = scmp.ne.s32.totalorder %s364_s9, 0 }
  0xa0   : > { %368 = sbr.rel (%p3197_p10) target bundleno = 176 (0xb0), region = 72 }
  0xa5   : > { %v369_v0 = vld [vmem:[%s4389_s26] sm:$0xff]  ;;  %vm405_vm0 = vcmask 261120   ;;  %v370_v1 = vld [vmem:[%s4389_s26 + $0x8] sm:$0xff]  ;;  %v371_v2 = vld [vmem:[%s4389_s26 + $0x10] sm:$0xff] }
  0xa6   : > { %v381_v3 = vmul.f32 2.0, %v369_v0  ;;  %v382_v4 = vmul.f32 2.0, %v370_v1  ;;  %v383_v5 = vmul.f32 2.0, %v371_v2  ;;  %v372_v6 = vld [vmem:[%s4389_s26 + $0x18] sm:$0xff]  ;;  %v373_v7 = vld [vmem:[%s4389_s26 + $0x20] sm:$0xff]  ;;  %v374_v8 = vld [vmem:[%s4389_s26 + $0x28] sm:$0xff] }
  0xa7   : > { %v384_v9 = vmul.f32 2.0, %v372_v6  ;;  %v385_v10 = vmul.f32 2.0, %v373_v7  ;;  %v386_v11 = vmul.f32 2.0, %v374_v8  ;;  %v375_v12 = vld [vmem:[%s4389_s26 + $0x30] sm:$0xff]  ;;  %v376_v13 = vld [vmem:[%s4389_s26 + $0x38] sm:$0xff]  ;;  %v377_v14 = vld [vmem:[%s4389_s26 + $0x40] sm:$0xff] }
  0xa8   : > { %v3198_v15 = vadd.f32 -1.0, %v381_v3  ;;  %v3199_v16 = vadd.f32 -1.0, %v382_v4  ;;  %v3200_v17 = vadd.f32 -1.0, %v383_v5  ;;  %v387_v18 = vmul.f32 2.0, %v375_v12  ;;  %v378_v19 = vld [vmem:[%s4389_s26 + $0x48] sm:$0xff]  ;;  %v379_v20 = vld [vmem:[%s4389_s26 + $0x50] sm:$0xff] }
  0xa9   : > { %v3201_v21 = vadd.f32 -1.0, %v384_v9  ;;  %v3202_v22 = vadd.f32 -1.0, %v385_v10  ;;  %v3203_v23 = vadd.f32 -1.0, %v386_v11  ;;  %v388_v24 = vmul.f32 2.0, %v376_v13  ;;  %v380_v25 = vld [vmem:[%s4389_s26 + $0x58] sm:$0xff] }
  0xaa   : > { %406 = vst.msk [vmem:[%s4410_s10] sm:$0xff] %vm405_vm0, %v3198_v15  ;;  %407 = vst.msk [vmem:[%s4410_s10 + $0x8] sm:$0xff] %vm405_vm0, %v3199_v16  ;;  %v3204_v26 = vadd.f32 -1.0, %v387_v18  ;;  %v389_v27 = vmul.f32 2.0, %v377_v14  ;;  %v390_v28 = vmul.f32 2.0, %v378_v19  ;;  %v391_v29 = vmul.f32 2.0, %v379_v20 }
  0xab   : > { %408 = vst.msk [vmem:[%s4410_s10 + $0x10] sm:$0xff] %vm405_vm0, %v3200_v17  ;;  %409 = vst.msk [vmem:[%s4410_s10 + $0x18] sm:$0xff] %vm405_vm0, %v3201_v21  ;;  %v3205_v30 = vadd.f32 -1.0, %v388_v24  ;;  %v392_v31 = vmul.f32 2.0, %v380_v25 }
  0xac   : > { %410 = vst.msk [vmem:[%s4410_s10 + $0x20] sm:$0xff] %vm405_vm0, %v3202_v22  ;;  %411 = vst.msk [vmem:[%s4410_s10 + $0x28] sm:$0xff] %vm405_vm0, %v3203_v23  ;;  %v3206_v32 = vadd.f32 -1.0, %v389_v27  ;;  %v3207_v33 = vadd.f32 -1.0, %v390_v28  ;;  %v3208_v34 = vadd.f32 -1.0, %v391_v29 }
  0xad   : > { %412 = vst.msk [vmem:[%s4410_s10 + $0x30] sm:$0xff] %vm405_vm0, %v3204_v26  ;;  %413 = vst.msk [vmem:[%s4410_s10 + $0x38] sm:$0xff] %vm405_vm0, %v3205_v30  ;;  %v3209_v35 = vadd.f32 -1.0, %v392_v31 }
  0xae   : > { %414 = vst.msk [vmem:[%s4410_s10 + $0x40] sm:$0xff] %vm405_vm0, %v3206_v32  ;;  %415 = vst.msk [vmem:[%s4410_s10 + $0x48] sm:$0xff] %vm405_vm0, %v3207_v33 }
  0xaf   : > { %416 = vst.msk [vmem:[%s4410_s10 + $0x50] sm:$0xff] %vm405_vm0, %v3208_v34  ;;  %417 = vst.msk [vmem:[%s4410_s10 + $0x58] sm:$0xff] %vm405_vm0, %v3209_v35 }
  0xb0 PF: > { %s418_s27 = sld [smem:[#allocation7]] }
  0xb6   : > { %p3210_p3 = scmp.eq.s32.totalorder %s418_s27, 0 }
  0xb7   : > { %s437_s12 = sld [smem:[#allocation2]] (!%p3210_p3) }
  0xb8   : > { %422 = sbr.rel (%p3210_p3) target bundleno = 1868 (0x74c), region = 76  ;;  %s3219_s15 = sld [smem:[#allocation2 + $0x1]] (!%p3210_p3) }
  0xb9   : > { %s4470_s20 = sld [smem:[#allocation2 + $0x2]] (!%p3210_p3) }
  0xba   : > { %s4652_s1 = sld [smem:[#allocation2 + $0x3]] (!%p3210_p3) }
  0xbb   : > { %s4958_s29 = sld [smem:[#allocation7 + $0x1]] (!%p3210_p3) }
  0xbd   : > { %v423_v36 = vld [vmem:[%s4389_s26] sm:$0xff]  ;;  %v424_v37 = vld [vmem:[%s4389_s26 + $0x8] sm:$0xff]  ;;  %v425_v38 = vld [vmem:[%s4389_s26 + $0x10] sm:$0xff]  ;;  %v441_v44 = vstv %s437_s12  ;;  %vm498_vm1 = vcmask 261120  }
  0xbe   : > { %v426_v39 = vld [vmem:[%s4389_s26 + $0x18] sm:$0xff]  ;;  %v3211_v40 = vld [vmem:[%s4389_s26 + $0x20] sm:$0xff]  ;;  %v3212_v41 = vld [vmem:[%s4389_s26 + $0x28] sm:$0xff]  ;;  %v442_v45 = vmul.f32 %v441_v44, %v423_v36  ;;  %v443_v46 = vmul.f32 %v441_v44, %v424_v37  ;;  %v444_v47 = vmul.f32 %v441_v44, %v425_v38  ;;  %s523_s30 = ssub.f32 1.0, %s3219_s15 }
  0xbf   : > { %v3213_v42 = vld [vmem:[%s4389_s26 + $0x30] sm:$0xff]  ;;  %v3214_v43 = vld [vmem:[%s4389_s26 + $0x38] sm:$0xff]  ;;  %v445_v48 = vmul.f32 %v441_v44, %v426_v39  ;;  %v454_v49 = vmul.f32 %v3211_v40, %v441_v44  ;;  %v455_v50 = vmul.f32 %v3212_v41, %v441_v44  ;;  %v3215_v53 = vld [vmem:[%s4389_s26 + $0x40] sm:$0xff]  ;;  %s595_s7 = ssub.f32 1.0, %s4470_s20 }
  0xc0   : > { %v456_v51 = vmul.f32 %v3213_v42, %v441_v44  ;;  %v457_v52 = vmul.f32 %v3214_v43, %v441_v44  ;;  %v3216_v54 = vld [vmem:[%s4389_s26 + $0x48] sm:$0xff]  ;;  %v446_v55 = vmax.f32 %v442_v45, 0.0  ;;  %v447_v56 = vmax.f32 %v443_v46, 0.0  ;;  %v3217_v59 = vld [vmem:[%s4389_s26 + $0x50] sm:$0xff]  ;;  %v3218_v60 = vld [vmem:[%s4389_s26 + $0x58] sm:$0xff] }
  0xc1   : > { %v448_v57 = vmax.f32 %v444_v47, 0.0  ;;  %v449_v58 = vmax.f32 %v445_v48, 0.0  ;;  %v458_v61 = vmax.f32 %v454_v49, 0.0  ;;  %v459_v62 = vmax.f32 %v455_v50, 0.0  ;;  %p3267_p12 = scmp.eq.s32.totalorder %s4958_s29, 0 }
  0xc2   : > { %v460_v63 = vmax.f32 %v456_v51, 0.0  ;;  %v461_v0 = vmax.f32 %v457_v52, 0.0  ;;  %v4460_v1 = vmin.f32 %v446_v55, 1.0  ;;  %v451_v2 = vmin.f32 %v447_v56, 1.0 }
  0xc3   : > { %v452_v3 = vmin.f32 %v448_v57, 1.0  ;;  %v453_v4 = vmin.f32 %v449_v58, 1.0  ;;  %v4462_v5 = vmin.f32 %v458_v61, 1.0  ;;  %v463_v6 = vmin.f32 %v459_v62, 1.0 }
  0xc4   : > { %v464_v7 = vmin.f32 %v460_v63, 1.0  ;;  %v465_v8 = vmin.f32 %v461_v0, 1.0  ;;  %v466_v9 = vmul.f32 %v3215_v53, %v441_v44  ;;  %v467_v10 = vmul.f32 %v3216_v54, %v441_v44 }
  0xc5   : > { %v468_v11 = vmul.f32 %v3217_v59, %v441_v44  ;;  %v469_v12 = vmul.f32 %v3218_v60, %v441_v44  ;;  %v478_v13 = vmul.f32 0.2989, %v4460_v1  ;;  %v479_v14 = vmul.f32 0.2989, %v451_v2 }
  0xc6   : > { %v480_v15 = vmul.f32 0.2989, %v452_v3  ;;  %v470_v16 = vmax.f32 %v466_v9, 0.0  ;;  %v471_v17 = vmax.f32 %v467_v10, 0.0  ;;  %v481_v20 = vmul.f32 0.2989, %v453_v4 }
  0xc7   : > { %v472_v18 = vmax.f32 %v468_v11, 0.0  ;;  %v473_v19 = vmax.f32 %v469_v12, 0.0  ;;  %v482_v21 = vmul.f32 0.587, %v4462_v5  ;;  %v483_v22 = vmul.f32 0.587, %v463_v6 }
  0xc8   : > { %v474_v23 = vmin.f32 %v470_v16, 1.0  ;;  %v475_v24 = vmin.f32 %v471_v17, 1.0  ;;  %v484_v27 = vmul.f32 0.587, %v464_v7  ;;  %v485_v28 = vmul.f32 0.587, %v465_v8 }
  0xc9   : > { %v476_v25 = vmin.f32 %v472_v18, 1.0  ;;  %v477_v26 = vmin.f32 %v473_v19, 1.0  ;;  %v486_v29 = vadd.f32 %v482_v21, %v478_v13  ;;  %v487_v30 = vadd.f32 %v483_v22, %v479_v14 }
  0xca   : > { %v490_v31 = vmul.f32 0.114, %v474_v23  ;;  %v491_v32 = vmul.f32 0.114, %v475_v24  ;;  %v488_v34 = vadd.f32 %v484_v27, %v480_v15  ;;  %v489_v35 = vadd.f32 %v485_v28, %v481_v20 }
  0xcb   : > { %v492_v33 = vmul.f32 0.114, %v476_v25  ;;  %v493_v36 = vmul.f32 0.114, %v477_v26  ;;  %v518_v55 = vstv %s3219_s15 }
  0xcc   : > { %v494_v37 = vadd.f32 %v490_v31, %v486_v29  ;;  %v495_v38 = vadd.f32 %v491_v32, %v487_v30  ;;  %v520_v56 = vmul.f32 %v518_v55, %v451_v2  ;;  %v521_v57 = vmul.f32 %v518_v55, %v452_v3  ;;  %v4477_v3 = vld [vmem:[#allocation11] sm:$0xff] }
  0xcd   : > { %v496_v39 = vadd.f32 %v492_v33, %v488_v34  ;;  %v497_v40 = vadd.f32 %v493_v36, %v489_v35  ;;  %v522_v58 = vmul.f32 %v518_v55, %v453_v4  ;;  %v539_v59 = vmul.f32 %v518_v55, %v463_v6  ;;  %3543 = vmatprep.mubr.msk.f32.mxu0 %vm498_vm1, %v4477_v3 }
  0xce   : > { %v499_v41 = vsel %vm498_vm1, %v494_v37, 0.0  ;;  %v500_v42 = vsel %vm498_vm1, %v495_v38, 0.0  ;;  %v540_v60 = vmul.f32 %v518_v55, %v464_v7  ;;  %v541_v61 = vmul.f32 %v518_v55, %v465_v8 }
  0xcf   : > { %v501_v43 = vadd.f32 %v500_v42, %v499_v41  ;;  %v502_v44 = vsel %vm498_vm1, %v496_v39, 0.0  ;;  %v504_v45 = vsel %vm498_vm1, %v497_v40, 0.0  ;;  %v519_v62 = vmul.f32 %v518_v55, %v4460_v1 }
  0xd0   : > { %v538_v63 = vmul.f32 %v518_v55, %v4462_v5  ;;  %v554_v0 = vmul.f32 %v518_v55, %v474_v23  ;;  %v555_v9 = vmul.f32 %v518_v55, %v475_v24  ;;  %v556_v10 = vmul.f32 %v518_v55, %v476_v25 }
  0xd1   : > { %v503_v46 = vadd.f32 %v502_v44, %v501_v43  ;;  %v557_v12 = vmul.f32 %v518_v55, %v477_v26  ;;  %v4475_v2 = vstv %s4470_s20  ;;  %v4482_v30 = vstv %s595_s7 }
  0xd3   : > { %v505_v47 = vadd.f32 %v504_v45, %v503_v46 }
  0xd5   : > { %506 = vadd.xlane.f32.xlu0 %v505_v47 }
 0x15e   : > { %v507_v48 = vpop.xlane.xlu0 %506 }
 0x15f   : > { %v508_v49 = vrot.slane %v507_v48, 4 }
 0x161   : > { %v509_v50 = vadd.f32 %v508_v49, %v507_v48 }
 0x163   : > { %v510_v51 = vrot.slane %v509_v50, 2 }
 0x165   : > { %v511_v52 = vadd.f32 %v510_v51, %v509_v50 }
 0x167   : > { %v512_v53 = vrot.slane %v511_v52, 1 }
 0x169   : > { %v513_v54 = vadd.f32 %v512_v53, %v511_v52 }
 0x16b   : > { %3792 = vpush %v513_v54 }
 0x19c   : > { %s3793_s0 = spop %3792 }
 0x19d   : > { %s517_s19 = smul.f32 0.0009765625, %s3793_s0 }
 0x19f   : > { %s524_s11 = smul.f32 %s523_s30, %s517_s19 }
 0x1a1   : > { %v525_v11 = vstv %s524_s11 }
 0x1a2   : > { %v527_v13 = vadd.f32 %v525_v11, %v520_v56  ;;  %v528_v14 = vadd.f32 %v525_v11, %v521_v57  ;;  %v543_v4 = vadd.f32 %v539_v59, %v525_v11  ;;  %v544_v6 = vadd.f32 %v540_v60, %v525_v11 }
 0x1a3   : > { %v529_v7 = vadd.f32 %v525_v11, %v522_v58  ;;  %v545_v8 = vadd.f32 %v541_v61, %v525_v11  ;;  %v526_v1 = vadd.f32 %v525_v11, %v519_v62  ;;  %v542_v16 = vadd.f32 %v538_v63, %v525_v11 }
 0x1a4   : > { %v531_v5 = vmax.f32 %v527_v13, 0.0  ;;  %v532_v15 = vmax.f32 %v528_v14, 0.0  ;;  %v547_v17 = vmax.f32 %v543_v4, 0.0  ;;  %v548_v18 = vmax.f32 %v544_v6, 0.0 }
 0x1a5   : > { %v533_v19 = vmax.f32 %v529_v7, 0.0  ;;  %v549_v20 = vmax.f32 %v545_v8, 0.0  ;;  %v561_v21 = vadd.f32 %v557_v12, %v525_v11  ;;  %v560_v23 = vadd.f32 %v556_v10, %v525_v11 }
 0x1a6   : > { %v536_v22 = vmin.f32 %v532_v15, 1.0  ;;  %v535_v24 = vmin.f32 %v531_v5, 1.0  ;;  %v552_v27 = vmin.f32 %v548_v18, 1.0  ;;  %v551_v28 = vmin.f32 %v547_v17, 1.0 }
 0x1a7   : > { %v537_v25 = vmin.f32 %v533_v19, 1.0  ;;  %v553_v26 = vmin.f32 %v549_v20, 1.0  ;;  %v565_v29 = vmax.f32 %v561_v21, 0.0  ;;  %v564_v31 = vmax.f32 %v560_v23, 0.0 }
 0x1a8   : > { %v572_v32 = vmul.f32 0.2989, %v536_v22  ;;  %v530_v33 = vmax.f32 %v526_v1, 0.0  ;;  %v546_v34 = vmax.f32 %v542_v16, 0.0  ;;  %v576_v39 = vmul.f32 0.587, %v552_v27 }
 0x1a9   : > { %v573_v35 = vmul.f32 0.2989, %v537_v25  ;;  %v577_v36 = vmul.f32 0.587, %v553_v26  ;;  %v569_v37 = vmin.f32 %v565_v29, 1.0  ;;  %v568_v38 = vmin.f32 %v564_v31, 1.0 }
 0x1aa   : > { %v593_v40 = vmul.f32 %v4475_v2, %v536_v22  ;;  %v559_v42 = vadd.f32 %v555_v9, %v525_v11  ;;  %v571_v43 = vmul.f32 0.2989, %v535_v24  ;;  %v575_v44 = vmul.f32 0.587, %v551_v28 }
 0x1ab   : > { %v581_v41 = vadd.f32 %v577_v36, %v573_v35  ;;  %v585_v45 = vmul.f32 0.114, %v569_v37  ;;  %v594_v46 = vmul.f32 %v4475_v2, %v537_v25  ;;  %v580_v47 = vadd.f32 %v576_v39, %v572_v32  ;;  %v4514_v32 = vld [vmem:[#allocation12 + $0x18] sm:$0xff] }
 0x1ac   : > { %v584_v48 = vmul.f32 0.114, %v568_v38  ;;  %v616_v49 = vmul.f32 %v4475_v2, %v553_v26  ;;  %v615_v50 = vmul.f32 %v4475_v2, %v552_v27  ;;  %v563_v51 = vmax.f32 %v559_v42, 0.0  ;;  %3549 = vmatprep.subr.mxu1 %v4514_v32 }
 0x1ad   : > { %v579_v52 = vadd.f32 %v575_v44, %v571_v43  ;;  %v589_v53 = vadd.f32 %v585_v45, %v581_v41  ;;  %v632_v54 = vmul.f32 %v4475_v2, %v569_v37  ;;  %v4489_v56 = vmin.f32 %v530_v33, 1.0  ;;  %v4516_v33 = vld [vmem:[#allocation12 + $0x10] sm:$0xff]  ;;  %3550 = vmatpush3.msra.mxu1 %v4514_v32 }
 0x1ae   : > { %v588_v55 = vadd.f32 %v584_v48, %v580_v47  ;;  %v631_v57 = vmul.f32 %v4475_v2, %v568_v38  ;;  %v567_v58 = vmin.f32 %v563_v51, 1.0  ;;  %v4492_v59 = vmin.f32 %v546_v34, 1.0  ;;  %3551 = vmatprep.subr.mxu1 %v4516_v33 }
 0x1af   : > { %v558_v60 = vadd.f32 %v554_v0, %v525_v11  ;;  %v600_v61 = vmul.f32 %v4482_v30, %v589_v53  ;;  %v592_v63 = vmul.f32 %v4475_v2, %v535_v24  ;;  %v570_v9 = vmul.f32 0.2989, %v4489_v56  ;;  %3552 = vmatpush3.msra.mxu1 %v4516_v33 }
 0x1b0   : > { %v599_v62 = vmul.f32 %v4482_v30, %v588_v55  ;;  %v583_v10 = vmul.f32 0.114, %v567_v58  ;;  %v614_v12 = vmul.f32 %v4475_v2, %v551_v28  ;;  %v574_v14 = vmul.f32 0.587, %v4492_v59 }
 0x1b1   : > { %v562_v13 = vmax.f32 %v558_v60, 0.0  ;;  %v604_v4 = vadd.f32 %v600_v61, %v594_v46  ;;  %v620_v6 = vadd.f32 %v616_v49, %v600_v61  ;;  %v636_v7 = vadd.f32 %v632_v54, %v600_v61 }
 0x1b2   : > { %v603_v8 = vadd.f32 %v599_v62, %v593_v40  ;;  %v619_v1 = vadd.f32 %v615_v50, %v599_v62  ;;  %v635_v0 = vadd.f32 %v631_v57, %v599_v62  ;;  %v587_v11 = vadd.f32 %v583_v10, %v579_v52 }
 0x1b3   : > { %v4500_v5 = vmin.f32 %v562_v13, 1.0  ;;  %v608_v15 = vmax.f32 %v604_v4, 0.0  ;;  %v624_v16 = vmax.f32 %v620_v6, 0.0  ;;  %v640_v17 = vmax.f32 %v636_v7, 0.0 }
 0x1b4   : > { %v607_v18 = vmax.f32 %v603_v8, 0.0  ;;  %v623_v19 = vmax.f32 %v619_v1, 0.0  ;;  %v639_v20 = vmax.f32 %v635_v0, 0.0  ;;  %v598_v21 = vmul.f32 %v4482_v30, %v587_v11 }
 0x1b5   : > { %v578_v22 = vadd.f32 %v574_v14, %v570_v9  ;;  %v4503_v23 = vmin.f32 %v608_v15, 1.0  ;;  %v4505_v24 = vmin.f32 %v624_v16, 1.0  ;;  %v630_v26 = vmul.f32 %v4475_v2, %v567_v58 }
 0x1b6   : > { %v4507_v25 = vmin.f32 %v607_v18, 1.0  ;;  %v4510_v27 = vmin.f32 %v640_v17, 1.0  ;;  %v4512_v28 = vmin.f32 %v623_v19, 1.0  ;;  %v602_v29 = vadd.f32 %v598_v21, %v592_v63 }
 0x1b7   : > { %v618_v31 = vadd.f32 %v614_v12, %v598_v21  ;;  %v648_v34 = vmax.f32 %v4503_v23, %v4505_v24  ;;  %v656_v35 = vmin.f32 %v4503_v23, %v4505_v24  ;;  %v634_v36 = vadd.f32 %v630_v26, %v598_v21 }
 0x1b8   : > { %v582_v37 = vmul.f32 0.114, %v4500_v5  ;;  %v4524_v38 = vmin.f32 %v639_v20, 1.0  ;;  %v647_v39 = vmax.f32 %v4507_v25, %v4512_v28  ;;  %v655_v40 = vmin.f32 %v4507_v25, %v4512_v28 }
 0x1b9   : > { %v606_v41 = vmax.f32 %v602_v29, 0.0  ;;  %v4532_v42 = vmax.f32 %v648_v34, %v4510_v27  ;;  %v660_v43 = vmin.f32 %v656_v35, %v4510_v27  ;;  %v622_v44 = vmax.f32 %v618_v31, 0.0 }
 0x1ba   : > { %v586_v45 = vadd.f32 %v582_v37, %v578_v22  ;;  %v4537_v46 = vmax.f32 %v647_v39, %v4524_v38  ;;  %v659_v47 = vmin.f32 %v655_v40, %v4524_v38  ;;  %v638_v50 = vmax.f32 %v634_v36, 0.0 }
 0x1bb   : > { %vm664_vm2 = vcmp.eq.f32.partialorder %v4532_v42, %v660_v43  ;;  %v4543_v48 = vsub.f32 %v4532_v42, %v660_v43  ;;  %vm736_vm3 = vcmp.eq.f32.partialorder %v4532_v42, %v4505_v24  ;;  %v4547_v49 = vmin.f32 %v606_v41, 1.0 }
 0x1bc   : > { %vm740_vm4 = vcmp.ne.f32.partialorder %v4532_v42, %v4503_v23  ;;  %vm760_vm5 = vcmp.ne.f32.partialorder %v4532_v42, %v4505_v24  ;;  %v4554_v52 = vmin.f32 %v622_v44, 1.0  ;;  %vm663_vm7 = vcmp.eq.f32.partialorder %v4537_v46, %v659_v47 }
 0x1bd   : > { %v688_v51 = vsel %vm664_vm2, 1.0, %v4543_v48  ;;  %vm4556_vm6 = vmand %vm736_vm3, %vm740_vm4  ;;  %v4562_v54 = vsub.f32 %v4537_v46, %v659_v47  ;;  %v591_v57 = vmul.f32 %v4475_v2, %v4489_v56  ;;  %v672_v58 = vsel %vm664_vm2, 1.0, %v4532_v42 }
 0x1be   : > { %3894 = vrcp.f32 %v688_v51  ;;  %vm4564_vm8 = vmand %vm760_vm5, %vm740_vm4  ;;  %vm735_vm9 = vcmp.eq.f32.partialorder %v4537_v46, %v4512_v28  ;;  %vm739_vm10 = vcmp.ne.f32.partialorder %v4537_v46, %v4507_v25  ;;  %vm759_vm12 = vcmp.ne.f32.partialorder %v4537_v46, %v4512_v28 }
 0x1bf   : > { %v687_v60 = vsel %vm663_vm7, 1.0, %v4562_v54  ;;  %vm4578_vm11 = vmand %vm735_vm9, %vm739_vm10  ;;  %v4584_v56 = vmin.f32 %v638_v50, 1.0  ;;  %v646_v62 = vmax.f32 %v4547_v49, %v4554_v52  ;;  %v654_v9 = vmin.f32 %v4547_v49, %v4554_v52 }
 0x1c0   : > { %3896 = vrcp.f32 %v687_v60  ;;  %vm4588_vm13 = vmand %vm759_vm12, %vm739_vm10  ;;  %v597_v10 = vmul.f32 %v4482_v30, %v586_v45  ;;  %v613_v12 = vmul.f32 %v4475_v2, %v4492_v59  ;;  %v629_v13 = vmul.f32 %v4475_v2, %v4500_v5 }
 0x1c1   : > { %v4600_v14 = vmax.f32 %v646_v62, %v4584_v56  ;;  %v658_v4 = vmin.f32 %v654_v9, %v4584_v56  ;;  %3898 = vrcp.f32 %v672_v58  ;;  %v671_v1 = vsel %vm663_vm7, 1.0, %v4537_v46 }
 0x1c2   : > { %v601_v6 = vadd.f32 %v597_v10, %v591_v57  ;;  %v617_v7 = vadd.f32 %v613_v12, %v597_v10  ;;  %v633_v8 = vadd.f32 %v629_v13, %v597_v10  ;;  %3900 = vrcp.f32 %v671_v1 }
 0x1c3   : > { %vm662_vm14 = vcmp.eq.f32.partialorder %v4600_v14, %v658_v4  ;;  %v4608_v30 = vsub.f32 %v4600_v14, %v658_v4  ;;  %vm734_vm15 = vcmp.eq.f32.partialorder %v4600_v14, %v4554_v52  ;;  %vm738_vm0 = vcmp.ne.f32.partialorder %v4600_v14, %v4547_v49 }
 0x1c4   : > { %v670_v2 = vsel %vm662_vm14, 1.0, %v4600_v14  ;;  %vm4615_vm2 = vmand %vm734_vm15, %vm738_vm0  ;;  %vm758_vm3 = vcmp.ne.f32.partialorder %v4600_v14, %v4554_v52  ;;  %v605_v0 = vmax.f32 %v601_v6, 0.0  ;;  %v621_v11 = vmax.f32 %v617_v7, 0.0 }
 0x1c5   : > { %v686_v5 = vsel %vm662_vm14, 1.0, %v4608_v30  ;;  %vm4622_vm4 = vmand %vm758_vm3, %vm738_vm0  ;;  %v637_v16 = vmax.f32 %v633_v8, 0.0  ;;  %v700_v19 = vsub.f32 %v4532_v42, %v4503_v23  ;;  %v708_v20 = vsub.f32 %v4532_v42, %v4505_v24 }
 0x1c6   : > { %3902 = vrcp.f32 %v686_v5  ;;  %v4626_v17 = vmin.f32 %v605_v0, 1.0  ;;  %v4628_v18 = vmin.f32 %v621_v11, 1.0  ;;  %v716_v21 = vsub.f32 %v4532_v42, %v4510_v27 }
 0x1c7   : > { %3904 = vrcp.f32 %v670_v2  ;;  %v4636_v26 = vmin.f32 %v637_v16, 1.0  ;;  %v699_v37 = vsub.f32 %v4537_v46, %v4507_v25  ;;  %v707_v24 = vsub.f32 %v4537_v46, %v4512_v28 }
 0x1c8   : > { %v645_v29 = vmax.f32 %v4626_v17, %v4628_v18  ;;  %v653_v31 = vmin.f32 %v4626_v17, %v4628_v18  ;;  %v715_v27 = vsub.f32 %v4537_v46, %v4524_v38  ;;  %vm724_vm5 = vcmp.eq.f32.partialorder %v4532_v42, %v4503_v23 }
 0x1c9   : > { %vm723_vm7 = vcmp.eq.f32.partialorder %v4537_v46, %v4507_v25  ;;  %v698_v7 = vsub.f32 %v4600_v14, %v4547_v49  ;;  %v706_v8 = vsub.f32 %v4600_v14, %v4554_v52  ;;  %v714_v25 = vsub.f32 %v4600_v14, %v4584_v56 }
 0x1ca   : > { %v4649_v39 = vmax.f32 %v645_v29, %v4636_v26  ;;  %v657_v40 = vmin.f32 %v653_v31, %v4636_v26  ;;  %v4675_v11 = vstv %s4652_s1 }
 0x1cb   : > { %v3895_v22 = vpop.eup %3894 }
 0x1cc   : > { %v704_v34 = vmul.f32 %v3895_v22, %v700_v19  ;;  %v712_v35 = vmul.f32 %v3895_v22, %v708_v20  ;;  %v720_v36 = vmul.f32 %v3895_v22, %v716_v21  ;;  %v4667_v53 = vsub.f32 %v4649_v39, %v657_v40 }
 0x1cd   : > { %v3897_v41 = vpop.eup %3896  ;;  %vm733_vm9 = vcmp.eq.f32.partialorder %v4649_v39, %v4628_v18  ;;  %vm737_vm10 = vcmp.ne.f32.partialorder %v4649_v39, %v4626_v17  ;;  %vm757_vm12 = vcmp.ne.f32.partialorder %v4649_v39, %v4628_v18  ;;  %vm721_vm15 = vcmp.eq.f32.partialorder %v4649_v39, %v4626_v17 }
 0x1ce   : > { %v728_v43 = vsub.f32 %v720_v36, %v712_v35  ;;  %v748_v44 = vadd.f32 2.0, %v704_v34  ;;  %v768_v45 = vadd.f32 4.0, %v712_v35  ;;  %v703_v47 = vmul.f32 %v3897_v41, %v699_v37  ;;  %v3899_v9 = vpop.eup %3898 }
 0x1cf   : > { %v711_v50 = vmul.f32 %v3897_v41, %v707_v24  ;;  %v719_v28 = vmul.f32 %v3897_v41, %v715_v27  ;;  %v3901_v1 = vpop.eup %3900  ;;  %v4680_v61 = vmul.f32 %v3899_v9, %v4543_v48 }
 0x1d0   : > { %v732_v51 = vsel %vm724_vm5, %v728_v43, 0.0  ;;  %v752_v57 = vsub.f32 %v748_v44, %v720_v36  ;;  %v772_v38 = vsub.f32 %v768_v45, %v704_v34  ;;  %v747_v60 = vadd.f32 2.0, %v703_v47 }
 0x1d1   : > { %v727_v58 = vsub.f32 %v719_v28, %v711_v50  ;;  %v767_v62 = vadd.f32 4.0, %v711_v50  ;;  %v4688_v36 = vmul.f32 %v3901_v1, %v4562_v54  ;;  %v841_v43 = vsub.f32 1.0, %v4680_v61 }
 0x1d2   : > { %v756_v10 = vsel %vm4556_vm6, %v752_v57, 0.0  ;;  %v776_v12 = vsel %vm4564_vm8, %v772_v38, 0.0  ;;  %v751_v4 = vsub.f32 %v747_v60, %v719_v28  ;;  %vm661_vm6 = vcmp.eq.f32.partialorder %v4649_v39, %v657_v40 }
 0x1d3   : > { %v780_v23 = vadd.f32 %v756_v10, %v732_v51  ;;  %v731_v13 = vsel %vm723_vm7, %v727_v58, 0.0  ;;  %v771_v6 = vsub.f32 %v767_v62, %v703_v47  ;;  %v3903_v0 = vpop.eup %3902  ;;  %vm722_vm8 = vcmp.eq.f32.partialorder %v4600_v14, %v4547_v49 }
 0x1d4   : > { %v755_v2 = vsel %vm4578_vm11, %v751_v4, 0.0  ;;  %v3905_v16 = vpop.eup %3904  ;;  %v702_v20 = vmul.f32 %v3903_v0, %v698_v7  ;;  %v710_v21 = vmul.f32 %v3903_v0, %v706_v8  ;;  %v718_v22 = vmul.f32 %v3903_v0, %v714_v25  ;;  %vm4705_vm11 = vmand %vm733_vm9, %vm737_vm10 }
 0x1d5   : > { %v784_v55 = vadd.f32 %v780_v23, %v776_v12  ;;  %v775_v5 = vsel %vm4588_vm13, %v771_v6, 0.0  ;;  %v779_v52 = vadd.f32 %v755_v2, %v731_v13  ;;  %v685_v56 = vsel %vm661_vm6, 1.0, %v4667_v53  ;;  %vm4714_vm13 = vmand %vm757_vm12, %vm737_vm10 }
 0x1d6   : > { %v726_v63 = vsub.f32 %v718_v22, %v710_v21  ;;  %v746_v34 = vadd.f32 2.0, %v702_v20  ;;  %v766_v35 = vadd.f32 4.0, %v710_v21  ;;  %v4691_v24 = vmul.f32 %v3905_v16, %v4608_v30 }
 0x1d7   : > { %v788_v19 = vmul.f32 0.16666667, %v784_v55  ;;  %v783_v29 = vadd.f32 %v779_v52, %v775_v5  ;;  %3906 = vrcp.f32 %v685_v56  ;;  %v669_v45 = vsel %vm661_vm6, 1.0, %v4649_v39 }
 0x1d8   : > { %v730_v27 = vsel %vm722_vm8, %v726_v63, 0.0  ;;  %v750_v41 = vsub.f32 %v746_v34, %v718_v22  ;;  %v770_v49 = vsub.f32 %v766_v35, %v702_v20  ;;  %v840_v59 = vsub.f32 1.0, %v4688_v36 }
 0x1d9   : > { %v792_v31 = vadd.f32 1.0, %v788_v19  ;;  %v787_v37 = vmul.f32 0.16666667, %v783_v29  ;;  %v839_v57 = vsub.f32 1.0, %v4691_v24  ;;  %3908 = vrcp.f32 %v669_v45 }
 0x1da   : > { %v754_v30 = vsel %vm4615_vm2, %v750_v41, 0.0  ;;  %v774_v47 = vsel %vm4622_vm4, %v770_v49, 0.0  ;;  %v845_v62 = vmul.f32 %v841_v43, %v4532_v42  ;;  %v844_v23 = vmul.f32 %v840_v59, %v4537_v46 }
 0x1db   : > { %v796_v48 = vfloor.f32 %v792_v31  ;;  %v791_v44 = vadd.f32 1.0, %v787_v37  ;;  %v778_v28 = vadd.f32 %v754_v30, %v730_v27  ;;  %v843_v13 = vmul.f32 %v839_v57, %v4600_v14 }
 0x1dc   : > { %v849_v8 = vmax.f32 %v845_v62, 0.0  ;;  %v697_v2 = vsub.f32 %v4649_v39, %v4626_v17  ;;  %v705_v25 = vsub.f32 %v4649_v39, %v4628_v18  ;;  %v848_v52 = vmax.f32 %v844_v23, 0.0 }
 0x1dd   : > { %v800_v54 = vsub.f32 %v792_v31, %v796_v48  ;;  %v795_v50 = vfloor.f32 %v791_v44  ;;  %v782_v58 = vadd.f32 %v778_v28, %v774_v47  ;;  %v847_v16 = vmax.f32 %v843_v13, 0.0 }
 0x1de   : > { %v713_v19 = vsub.f32 %v4649_v39, %v4636_v26  ;;  %v4728_v34 = vmin.f32 %v849_v8, 1.0  ;;  %v4732_v27 = vmin.f32 %v848_v52, 1.0 }
 0x1df   : > { %v805_v40 = vadd.f32 %v4675_v11, %v800_v54  ;;  %v799_v38 = vsub.f32 %v791_v44, %v795_v50  ;;  %v786_v10 = vmul.f32 0.16666667, %v782_v58  ;;  %v4734_v26 = vmin.f32 %v847_v16, 1.0 }
 0x1e1   : > { %v809_v60 = vfloor.f32 %v805_v40  ;;  %v804_v9 = vadd.f32 %v4675_v11, %v799_v38  ;;  %v790_v6 = vadd.f32 1.0, %v786_v10 }
 0x1e3   : > { %v813_v12 = vsub.f32 %v805_v40, %v809_v60  ;;  %v808_v4 = vfloor.f32 %v804_v9  ;;  %v794_v55 = vfloor.f32 %v790_v6 }
 0x1e4   : > { %v3907_v0 = vpop.eup %3906 }
 0x1e5   : > { %v817_v7 = vmul.f32 6.0, %v813_v12  ;;  %v812_v1 = vsub.f32 %v804_v9, %v808_v4  ;;  %v798_v21 = vsub.f32 %v790_v6, %v794_v55  ;;  %v701_v22 = vmul.f32 %v3907_v0, %v697_v2 }
 0x1e6   : > { %v709_v29 = vmul.f32 %v3907_v0, %v705_v25  ;;  %v717_v63 = vmul.f32 %v3907_v0, %v713_v19  ;;  %v3909_v44 = vpop.eup %3908 }
 0x1e7   : > { %v821_v5 = vfloor.f32 %v817_v7  ;;  %v816_v20 = vmul.f32 6.0, %v812_v1  ;;  %v803_v18 = vadd.f32 %v4675_v11, %v798_v21  ;;  %v745_v49 = vadd.f32 2.0, %v701_v22 }
 0x1e8   : > { %v725_v41 = vsub.f32 %v717_v63, %v709_v29  ;;  %v765_v43 = vadd.f32 4.0, %v709_v29  ;;  %v4744_v60 = vmul.f32 %v3909_v44, %v4667_v53 }
 0x1e9   : > { %v825_v56 = vsub.f32 %v817_v7, %v821_v5  ;;  %v3225_v31 = vadd.f32 -6.0, %v821_v5  ;;  %vm829_vm14 = vcmp.ge.f32.partialorder %v821_v5, 6.0  ;;  %v820_v35 = vfloor.f32 %v816_v20 }
 0x1ea   : > { %v807_v28 = vfloor.f32 %v803_v18  ;;  %v729_v40 = vsel %vm721_vm15, %v725_v41, 0.0  ;;  %v749_v62 = vsub.f32 %v745_v49, %v717_v63  ;;  %v769_v9 = vsub.f32 %v765_v43, %v701_v22 }
 0x1eb   : > { %v857_v37 = vmul.f32 %v825_v56, %v4680_v61  ;;  %v877_v48 = vsub.f32 1.0, %v825_v56  ;;  %v4738_v45 = vsel %vm829_vm14, %v3225_v31, %v821_v5  ;;  %v824_v47 = vsub.f32 %v816_v20, %v820_v35 }
 0x1ec   : > { %vm828_vm0 = vcmp.ge.f32.partialorder %v820_v35, 6.0  ;;  %v3224_v50 = vadd.f32 -6.0, %v820_v35  ;;  %v811_v17 = vsub.f32 %v803_v18, %v807_v28  ;;  %vm901_vm2 = vcmp.eq.f32.partialorder %v4738_v45, 0.0 }
 0x1ed   : > { %v861_v54 = vsub.f32 1.0, %v857_v37  ;;  %v881_v30 = vmul.f32 %v877_v48, %v4680_v61  ;;  %v856_v38 = vmul.f32 %v824_v47, %v4688_v36  ;;  %v876_v58 = vsub.f32 1.0, %v824_v47 }
 0x1ee   : > { %vm905_vm3 = vcmp.eq.f32.partialorder %v4738_v45, 1.0  ;;  %vm909_vm4 = vcmp.eq.f32.partialorder %v4738_v45, 2.0  ;;  %v4752_v13 = vsel %vm828_vm0, %v3224_v50, %v820_v35  ;;  %vm913_vm5 = vcmp.eq.f32.partialorder %v4738_v45, 3.0 }
 0x1ef   : > { %v865_v59 = vmul.f32 %v861_v54, %v4532_v42  ;;  %v885_v57 = vsub.f32 1.0, %v881_v30  ;;  %v860_v12 = vsub.f32 1.0, %v856_v38  ;;  %v880_v23 = vmul.f32 %v876_v58, %v4688_v36 }
 0x1f0   : > { %v815_v8 = vmul.f32 6.0, %v811_v17  ;;  %v753_v36 = vsel %vm4705_vm11, %v749_v62, 0.0  ;;  %v773_v1 = vsel %vm4714_vm13, %v769_v9, 0.0  ;;  %vm917_vm7 = vcmp.eq.f32.partialorder %v4738_v45, 4.0 }
 0x1f1   : > { %v869_v10 = vmax.f32 %v865_v59, 0.0  ;;  %v889_v61 = vmul.f32 %v885_v57, %v4532_v42  ;;  %v864_v6 = vmul.f32 %v860_v12, %v4537_v46  ;;  %v884_v7 = vsub.f32 1.0, %v880_v23 }
 0x1f2   : > { %v777_v25 = vadd.f32 %v753_v36, %v729_v40  ;;  %vm900_vm6 = vcmp.eq.f32.partialorder %v4752_v13, 0.0  ;;  %vm904_vm8 = vcmp.eq.f32.partialorder %v4752_v13, 1.0  ;;  %v819_v0 = vfloor.f32 %v815_v8 }
 0x1f3   : > { %v873_v4 = vmin.f32 %v869_v10, 1.0  ;;  %v893_v53 = vmax.f32 %v889_v61, 0.0  ;;  %v888_v2 = vmul.f32 %v884_v7, %v4537_v46  ;;  %v868_v52 = vmax.f32 %v864_v6, 0.0 }
 0x1f4   : > { %v781_v19 = vadd.f32 %v777_v25, %v773_v1  ;;  %v823_v21 = vsub.f32 %v815_v8, %v819_v0  ;;  %vm827_vm9 = vcmp.ge.f32.partialorder %v819_v0, 6.0  ;;  %v3223_v22 = vadd.f32 -6.0, %v819_v0 }
 0x1f5   : > { %v4760_v55 = vmin.f32 %v893_v53, 1.0  ;;  %v941_v51 = vsel %vm913_vm5, %v873_v4, %v4728_v34  ;;  %v957_v5 = vsel %vm917_vm7, %v4532_v42, %v873_v4  ;;  %v892_v16 = vmax.f32 %v888_v2, 0.0 }
 0x1f6   : > { %vm916_vm10 = vcmp.eq.f32.partialorder %v4752_v13, 4.0  ;;  %v785_v31 = vmul.f32 0.16666667, %v781_v19  ;;  %v4781_v35 = vsel %vm827_vm9, %v3223_v22, %v819_v0  ;;  %v855_v18 = vmul.f32 %v823_v21, %v4691_v24 }
 0x1f7   : > { %v921_v15 = vsel %vm917_vm7, %v4760_v55, %v4532_v42  ;;  %v896_v56 = vmin.f32 %v892_v16, 1.0  ;;  %v875_v37 = vsub.f32 1.0, %v823_v21  ;;  %v872_v41 = vmin.f32 %v868_v52, 1.0 }
 0x1f8   : > { %v925_v20 = vsel %vm913_vm5, %v4728_v34, %v921_v15  ;;  %vm912_vm11 = vcmp.eq.f32.partialorder %v4752_v13, 3.0  ;;  %vm908_vm12 = vcmp.eq.f32.partialorder %v4752_v13, 2.0  ;;  %v859_v44 = vsub.f32 1.0, %v855_v18 }
 0x1f9   : > { %v929_v29 = vsel %vm909_vm4, %v4728_v34, %v925_v20  ;;  %v920_v49 = vsel %vm916_vm10, %v896_v56, %v4537_v46  ;;  %v879_v54 = vmul.f32 %v875_v37, %v4691_v24  ;;  %vm903_vm13 = vcmp.eq.f32.partialorder %v4781_v35, 1.0 }
 0x1fa   : > { %v933_v63 = vsel %vm905_vm3, %v873_v4, %v929_v29  ;;  %v924_v43 = vsel %vm912_vm11, %v4732_v27, %v920_v49  ;;  %vm907_vm14 = vcmp.eq.f32.partialorder %v4781_v35, 2.0  ;;  %vm911_vm15 = vcmp.eq.f32.partialorder %v4781_v35, 3.0 }
 0x1fb   : > { %v937_v48 = vsel %vm901_vm2, %v4532_v42, %v933_v63  ;;  %v928_v30 = vsel %vm908_vm12, %v4732_v27, %v924_v43  ;;  %v789_v47 = vadd.f32 1.0, %v785_v31  ;;  %v863_v28 = vmul.f32 %v859_v44, %v4600_v14 }
 0x1fc   : > { %3535 = vmatprep.subr.mxu0 %v937_v48  ;;  %v932_v50 = vsel %vm904_vm8, %v872_v41, %v928_v30  ;;  %v883_v40 = vsub.f32 1.0, %v879_v54  ;;  %vm899_vm0 = vcmp.eq.f32.partialorder %v4781_v35, 0.0  ;;  %v945_v24 = vsel %vm909_vm4, %v4532_v42, %v941_v51 }
 0x1fd   : > { %3536 = vmatpush3.msra.mxu0 %v937_v48  ;;  %v936_v59 = vsel %vm900_vm6, %v4537_v46, %v932_v50  ;;  %v793_v57 = vfloor.f32 %v789_v47  ;;  %v949_v38 = vsel %vm905_vm3, %v4532_v42, %v945_v24  ;;  %v940_v58 = vsel %vm912_vm11, %v872_v41, %v4732_v27 }
 0x1fe   : > { %3537 = vmatprep.subr.mxu0 %v936_v59  ;;  %v867_v17 = vmax.f32 %v863_v28, 0.0  ;;  %v887_v62 = vmul.f32 %v883_v40, %v4600_v14  ;;  %v4822_v9 = vsel %vm901_vm2, %v4760_v55, %v949_v38  ;;  %v944_v10 = vsel %vm908_vm12, %v4537_v46, %v940_v58 }
 0x1ff   : > { %3538 = vmatpush3.msra.mxu0 %v936_v59  ;;  %v797_v61 = vsub.f32 %v789_v47, %v793_v57  ;;  %v948_v12 = vsel %vm904_vm8, %v4537_v46, %v944_v10  ;;  %v961_v23 = vsel %vm913_vm5, %v4532_v42, %v957_v5  ;;  %v956_v4 = vsel %vm916_vm10, %v4537_v46, %v872_v41 }
 0x200   : > { %v871_v53 = vmin.f32 %v867_v17, 1.0  ;;  %v891_v6 = vmax.f32 %v887_v62, 0.0  ;;  %v4838_v7 = vsel %vm900_vm6, %v896_v56, %v948_v12  ;;  %v965_v8 = vsel %vm909_vm4, %v4760_v55, %v961_v23 }
 0x201   : > { %vm915_vm7 = vcmp.eq.f32.partialorder %v4781_v35, 4.0  ;;  %v802_v36 = vadd.f32 %v4675_v11, %v797_v61  ;;  %v969_v42 = vsel %vm905_vm3, %v4728_v34, %v965_v8  ;;  %v960_v1 = vsel %vm912_vm11, %v4537_v46, %v956_v4 }
 0x202   : > { %v895_v2 = vmin.f32 %v891_v6, 1.0  ;;  %v939_v25 = vsel %vm911_vm15, %v871_v53, %v4734_v26  ;;  %v4857_v55 = vsel %vm901_vm2, %v4728_v34, %v969_v42  ;;  %v964_v11 = vsel %vm908_vm12, %v896_v56, %v960_v1  ;;  %v976_v42 = vld [vmem:[#allocation11 + $0x10] sm:$0xff]  ;;  %v977_v1 = vld [vmem:[#allocation11 + $0x18] sm:$0xff] }
 0x203   : > { %v806_v0 = vfloor.f32 %v802_v36  ;;  %v943_v51 = vsel %vm907_vm14, %v4600_v14, %v939_v25  ;;  %v968_v46 = vsel %vm904_vm8, %v4732_v27, %v964_v11  ;;  %v955_v5 = vsel %vm915_vm7, %v4600_v14, %v871_v53 }
 0x204   : > { %v919_v15 = vsel %vm915_vm7, %v895_v2, %v4600_v14  ;;  %v947_v34 = vsel %vm903_vm13, %v4600_v14, %v943_v51  ;;  %v4875_v45 = vsel %vm900_vm6, %v4732_v27, %v968_v46  ;;  %v959_v52 = vsel %vm911_vm15, %v4600_v14, %v955_v5 }
 0x205   : > { %v923_v16 = vsel %vm911_vm15, %v4734_v26, %v919_v15  ;;  %v810_v19 = vsub.f32 %v802_v36, %v806_v0  ;;  %v951_v20 = vsel %vm899_vm0, %v895_v2, %v947_v34  ;;  %v963_v21 = vsel %vm907_vm14, %v895_v2, %v959_v52  ;;  %v975_v36 = vld [vmem:[#allocation11 + $0x8] sm:$0xff] }
 0x206   : > { %v927_v27 = vsel %vm907_vm14, %v4734_v26, %v923_v16  ;;  %v967_v13 = vsel %vm903_vm13, %v4734_v26, %v963_v21  ;;  %v838_v18 = vsub.f32 1.0, %v4744_v60  ;;  %v1554_v34 = vlaneseq }
 0x207   : > { %v931_v22 = vsel %vm903_vm13, %v871_v53, %v927_v27  ;;  %v814_v29 = vmul.f32 6.0, %v810_v19  ;;  %v4898_v56 = vsel %vm899_vm0, %v4734_v26, %v967_v13 }
 0x208   : > { %v935_v31 = vsel %vm899_vm0, %v4600_v14, %v931_v22  ;;  %v842_v48 = vmul.f32 %v838_v18, %v4649_v39  ;;  %v1560_v19 = vand.u32 127, %v1554_v34 }
 0x209   : > { %3539 = vmatprep.subr.mxu0 %v935_v31  ;;  %v818_v63 = vfloor.f32 %v814_v29 }
 0x20a   : > { %3540 = vmatpush3.msra.mxu0 %v935_v31  ;;  %v846_v54 = vmax.f32 %v842_v48, 0.0  ;;  %vm1601_vm11 = vcmp.gt.s32.totalorder %v1560_v19, 0  ;;  %vm1606_vm12 = vcmp.lt.s32.totalorder %v1560_v19, 31 }
 0x20b   : > { %v822_v37 = vsub.f32 %v814_v29, %v818_v63  ;;  %v3222_v43 = vadd.f32 -6.0, %v818_v63  ;;  %vm826_vm2 = vcmp.ge.f32.partialorder %v818_v63, 6.0  ;;  %vm4974_vm0 = vmand %vm1601_vm11, %vm1606_vm12 }
 0x20c   : > { %v850_v28 = vmin.f32 %v846_v54, 1.0 }
 0x20d   : > { %v854_v41 = vmul.f32 %v822_v37, %v4744_v60  ;;  %v874_v49 = vsub.f32 1.0, %v822_v37  ;;  %v834_v30 = vsel %vm826_vm2, %v3222_v43, %v818_v63 }
 0x20e   : > { %vm910_vm3 = vcmp.eq.f32.partialorder %v834_v30, 3.0  ;;  %vm914_vm4 = vcmp.eq.f32.partialorder %v834_v30, 4.0  ;;  %vm906_vm5 = vcmp.eq.f32.partialorder %v834_v30, 2.0  ;;  %vm902_vm6 = vcmp.eq.f32.partialorder %v834_v30, 1.0 }
 0x20f   : > { %v858_v44 = vsub.f32 1.0, %v854_v41  ;;  %v878_v26 = vmul.f32 %v874_v49, %v4744_v60  ;;  %vm898_vm8 = vcmp.eq.f32.partialorder %v834_v30, 0.0 }
 0x211   : > { %v862_v35 = vmul.f32 %v858_v44, %v4649_v39  ;;  %v882_v14 = vsub.f32 1.0, %v878_v26  ;;  %v4138_v44 = vmov 0.0  }
 0x213   : > { %v866_v47 = vmax.f32 %v862_v35, 0.0  ;;  %v886_v50 = vmul.f32 %v882_v14, %v4649_v39 }
 0x215   : > { %v870_v40 = vmin.f32 %v866_v47, 1.0  ;;  %v890_v24 = vmax.f32 %v886_v50, 0.0 }
 0x217   : > { %v894_v59 = vmin.f32 %v890_v24, 1.0  ;;  %v938_v57 = vsel %vm910_vm3, %v870_v40, %v850_v28  ;;  %v954_v38 = vsel %vm914_vm4, %v4649_v39, %v870_v40 }
 0x218   : > { %v942_v60 = vsel %vm906_vm5, %v4649_v39, %v938_v57  ;;  %v958_v58 = vsel %vm910_vm3, %v4649_v39, %v954_v38 }
 0x219   : > { %v918_v17 = vsel %vm914_vm4, %v894_v59, %v4649_v39  ;;  %v946_v62 = vsel %vm902_vm6, %v4649_v39, %v942_v60  ;;  %v962_v10 = vsel %vm906_vm5, %v894_v59, %v958_v58 }
 0x21a   : > { %v922_v61 = vsel %vm910_vm3, %v850_v28, %v918_v17  ;;  %v950_v12 = vsel %vm898_vm8, %v894_v59, %v946_v62  ;;  %v966_v23 = vsel %vm902_vm6, %v850_v28, %v962_v10 }
 0x21b   : > { %v926_v4 = vsel %vm906_vm5, %v850_v28, %v922_v61  ;;  %v970_v53 = vsel %vm898_vm8, %v850_v28, %v966_v23 }
 0x21c   : > { %v930_v6 = vsel %vm902_vm6, %v870_v40, %v926_v4 }
 0x21d   : > { %v934_v8 = vsel %vm898_vm8, %v4649_v39, %v930_v6  ;;  %v979_v39 = vld [vmem:[#allocation12 + $0x8] sm:$0xff] }
 0x21e   : > { %3541 = vmatprep.subr.mxu0 %v934_v8  ;;  %3553 = vmatprep.subr.mxu1 %v979_v39 }
 0x21f   : > { %3542 = vmatpush3.msra.mxu0 %v934_v8  ;;  %3554 = vmatpush3.msra.mxu1 %v979_v39 }
 0x220   : > { %3544 = vmatmul.mubr.msk.f32.vlgmr.msra.gmra.mxu0 %vm498_vm1, %v975_v36  ;;  %3563 = vmatprep.subr.mxu0 %v4822_v9 }
 0x221   : > { %3564 = vmatpush3.msra.mxu0 %v4822_v9  ;;  %3546 = vmatprep.mubr.msk.f32.mxu0 %vm498_vm1, %v976_v42  ;;  %v978_v9 = vld [vmem:[#allocation12] sm:$0xff] }
 0x222   : > { %3565 = vmatprep.subr.mxu0 %v4838_v7  ;;  %3555 = vmatprep.subr.mxu1 %v978_v9 }
 0x223   : > { %3566 = vmatpush3.msra.mxu0 %v4838_v7  ;;  %3556 = vmatpush3.msra.mxu1 %v978_v9 }
 0x224   : > { %3547 = vmatmul.mubr.msk.f32.gmra.mxu0 %vm498_vm1, %v977_v1  ;;  %3567 = vmatprep.subr.mxu0 %v951_v20 }
 0x225   : > { %3568 = vmatpush3.msra.mxu0 %v951_v20  ;;  %3571 = vmatprep.mubr.msk.f32.mxu0 %vm498_vm1, %v4477_v3 }
 0x226   : > { %3569 = vmatprep.subr.mxu0 %v950_v12  ;;  %3577 = vmatprep.subr.mxu1 %v4514_v32 }
 0x227   : > { %3570 = vmatpush3.msra.mxu0 %v950_v12 }
 0x228   : > { %3572 = vmatmul.mubr.msk.f32.vlgmr.msra.gmra.mxu0 %vm498_vm1, %v975_v36  ;;  %3591 = vmatprep.subr.mxu0 %v4857_v55 }
 0x229   : > { %3592 = vmatpush3.msra.mxu0 %v4857_v55  ;;  %3574 = vmatprep.mubr.msk.f32.mxu0 %vm498_vm1, %v976_v42 }
 0x22a   : > { %3593 = vmatprep.subr.mxu0 %v4875_v45 }
 0x22b   : > { %3594 = vmatpush3.msra.mxu0 %v4875_v45 }
 0x22c   : > { %3575 = vmatmul.mubr.msk.f32.gmra.mxu0 %vm498_vm1, %v977_v1  ;;  %3595 = vmatprep.subr.mxu0 %v4898_v56 }
 0x22d   : > { %3596 = vmatpush3.msra.mxu0 %v4898_v56  ;;  %3599 = vmatprep.mubr.msk.f32.mxu0 %vm498_vm1, %v4477_v3 }
 0x22e   : > { %3597 = vmatprep.subr.mxu0 %v970_v53 }
 0x22f   : > { %3598 = vmatpush3.msra.mxu0 %v970_v53 }
 0x230   : > { %3600 = vmatmul.mubr.msk.f32.vlgmr.msra.gmra.mxu0 %vm498_vm1, %v975_v36 }
 0x231   : > { %3602 = vmatprep.mubr.msk.f32.mxu0 %vm498_vm1, %v976_v42 }
 0x234   : > { %3603 = vmatmul.mubr.msk.f32.gmra.mxu0 %vm498_vm1, %v977_v1 }
 0x2e0   : > { %v3545_v7 = vpop.f32.mrf.mxu0 }
 0x2e2   : > { %v1060_v2 = vpop.f32.mrf.mxu0 }
 0x2e3   : > { %3557 = vmatprep.mubr.msk.f32.mxu1 %vm498_vm1, %v1060_v2 }
 0x2e4   : > { %v3548_v3 = vpop.f32.mrf.mxu0  ;;  %3558 = vmatmul.mubr.msk.f32.vlgmr.msra.gmra.mxu1 %vm498_vm1, %v3545_v7 }
 0x2e5   : > { %3578 = vmatpush3.msra.mxu1 %v4514_v32 }
 0x2e6   : > { %v1070_v25 = vpop.f32.mrf.mxu0  ;;  %3579 = vmatprep.subr.mxu1 %v4516_v33 }
 0x2e7   : > { %3560 = vmatprep.mubr.msk.f32.mxu1 %vm498_vm1, %v1070_v25  ;;  %3580 = vmatpush3.msra.mxu1 %v4516_v33 }
 0x2e8   : > { %3561 = vmatmul.mubr.msk.f32.gmra.mxu1 %vm498_vm1, %v3548_v3  ;;  %v3573_v55 = vpop.f32.mrf.mxu0  ;;  %3581 = vmatprep.subr.mxu1 %v979_v39 }
 0x2e9   : > { %3582 = vmatpush3.msra.mxu1 %v979_v39 }
 0x2ea   : > { %v1246_v11 = vpop.f32.mrf.mxu0  ;;  %3583 = vmatprep.subr.mxu1 %v978_v9 }
 0x2eb   : > { %3584 = vmatpush3.msra.mxu1 %v978_v9  ;;  %3585 = vmatprep.mubr.msk.f32.mxu1 %vm498_vm1, %v1246_v11 }
 0x2ec   : > { %v3576_v0 = vpop.f32.mrf.mxu0  ;;  %3586 = vmatmul.mubr.msk.f32.vlgmr.msra.gmra.mxu1 %vm498_vm1, %v3573_v55  ;;  %3605 = vmatprep.subr.mxu1 %v4514_v32 }
 0x2ed   : > { %3606 = vmatpush3.msra.mxu1 %v4514_v32 }
 0x2ee   : > { %v1256_v51 = vpop.f32.mrf.mxu0  ;;  %3607 = vmatprep.subr.mxu1 %v4516_v33 }
 0x2ef   : > { %3588 = vmatprep.mubr.msk.f32.mxu1 %vm498_vm1, %v1256_v51  ;;  %3608 = vmatpush3.msra.mxu1 %v4516_v33  ;;  %v1555_v33 = vshrl.u32 %v1554_v34, 7 }
 0x2f0   : > { %3589 = vmatmul.mubr.msk.f32.gmra.mxu1 %vm498_vm1, %v3576_v0  ;;  %v3601_v46 = vpop.f32.mrf.mxu0  ;;  %3609 = vmatprep.subr.mxu1 %v979_v39 }
 0x2f1   : > { %3610 = vmatpush3.msra.mxu1 %v979_v39  ;;  %v1556_v45 = vadd.s32 8, %v1555_v33  ;;  %v1557_v52 = vadd.s32 16, %v1555_v33  ;;  %v1558_v16 = vadd.s32 24, %v1555_v33  ;;  %vm1589_vm9 = vcmp.gt.s32.totalorder %v1555_v33, 0 }
 0x2f2   : > { %v1433_v5 = vpop.f32.mrf.mxu0  ;;  %3611 = vmatprep.subr.mxu1 %v978_v9  ;;  %v1561_v20 = vsub.s32 %v1555_v33, %v1560_v19  ;;  %vm1602_vm13 = vmand %vm1589_vm9, %vm1601_vm11 }
 0x2f3   : > { %3612 = vmatpush3.msra.mxu1 %v978_v9  ;;  %3613 = vmatprep.mubr.msk.f32.mxu1 %vm498_vm1, %v1433_v5  ;;  %v1562_v21 = vsub.s32 %v1556_v45, %v1560_v19  ;;  %v1563_v27 = vsub.s32 %v1557_v52, %v1560_v19  ;;  %v1564_v13 = vsub.s32 %v1558_v16, %v1560_v19  ;;  %vm1596_vm10 = vcmp.lt.s32.totalorder %v1558_v16, 31  ;;  %vm4969_vm15 = vmand %vm1602_vm13, %vm1606_vm12 }
 0x2f4   : > { %v3604_v15 = vpop.f32.mrf.mxu0  ;;  %3614 = vmatmul.mubr.msk.f32.vlgmr.msra.gmra.mxu1 %vm498_vm1, %v3601_v46  ;;  %v1566_v22 = vsub.s32 0, %v1561_v20  ;;  %vm1605_vm14 = vmand %vm1596_vm10, %vm1601_vm11 }
 0x2f5   : > { %v1569_v29 = vsub.s32 0, %v1562_v21  ;;  %v1572_v56 = vsub.s32 0, %v1563_v27  ;;  %v1575_v31 = vsub.s32 0, %v1564_v13  ;;  %vm4983_vm5 = vmand %vm1605_vm14, %vm1606_vm12 }
 0x2f6   : > { %v1443_v32 = vpop.f32.mrf.mxu0  ;;  %v4960_v63 = vmin.u32 %v1566_v22, %v1561_v20 }
 0x2f7   : > { %3616 = vmatprep.mubr.msk.f32.mxu1 %vm498_vm1, %v1443_v32  ;;  %v4962_v18 = vmin.u32 %v1569_v29, %v1562_v21  ;;  %v4964_v37 = vmin.u32 %v1572_v56, %v1563_v27  ;;  %v4966_v48 = vmin.u32 %v1575_v31, %v1564_v13 }
 0x2f8   : > { %3617 = vmatmul.mubr.msk.f32.gmra.mxu1 %vm498_vm1, %v3604_v15  ;;  %vm1577_vm7 = vcmp.le.s32.totalorder %v4960_v63, 1 }
 0x2f9   : > { %vm1578_vm2 = vcmp.le.s32.totalorder %v4962_v18, 1  ;;  %vm1579_vm3 = vcmp.le.s32.totalorder %v4964_v37, 1  ;;  %vm1580_vm4 = vcmp.le.s32.totalorder %v4966_v48, 1  ;;  %v4989_v26 = vsel %vm1577_vm7, 1.0, %v4138_v44 }
 0x2fa   : > { %v4993_v54 = vsel %vm1578_vm2, 1.0, %v4138_v44  ;;  %v4997_v35 = vsel %vm1579_vm3, 1.0, %v4138_v44  ;;  %v5001_v14 = vsel %vm1580_vm4, 1.0, %v4138_v44 }
 0x3a4   : > { %v3559_v30 = vpop.f32.mrf.mxu1 }
 0x3a5   : > { %1177 = vst.msk [vmem:[%s4410_s10 + $0x8] sm:$0xff] %vm498_vm1, %v3559_v30 }
 0x3a6   : > { %v1157_v47 = vpop.f32.mrf.mxu1 }
 0x3a7   : > { %1176 = vst.msk [vmem:[%s4410_s10] sm:$0xff] %vm498_vm1, %v1157_v47 }
 0x3a8   : > { %v3562_v50 = vpop.f32.mrf.mxu1 }
 0x3a9   : > { %1179 = vst.msk [vmem:[%s4410_s10 + $0x18] sm:$0xff] %vm498_vm1, %v3562_v50 }
 0x3aa   : > { %v1167_v28 = vpop.f32.mrf.mxu1 }
 0x3ab   : > { %1178 = vst.msk [vmem:[%s4410_s10 + $0x10] sm:$0xff] %vm498_vm1, %v1167_v28 }
 0x3ac   : > { %v3587_v40 = vpop.f32.mrf.mxu1 }
 0x3ad   : > { %3243 = vst.msk [vmem:[%s4410_s10 + $0x28] sm:$0xff] %vm498_vm1, %v3587_v40 }
 0x3ae   : > { %v1343_v24 = vpop.f32.mrf.mxu1 }
 0x3af   : > { %3242 = vst.msk [vmem:[%s4410_s10 + $0x20] sm:$0xff] %vm498_vm1, %v1343_v24 }
 0x3b0   : > { %v3590_v59 = vpop.f32.mrf.mxu1 }
 0x3b1   : > { %3245 = vst.msk [vmem:[%s4410_s10 + $0x38] sm:$0xff] %vm498_vm1, %v3590_v59 }
 0x3b2   : > { %v1353_v57 = vpop.f32.mrf.mxu1 }
 0x3b3   : > { %3244 = vst.msk [vmem:[%s4410_s10 + $0x30] sm:$0xff] %vm498_vm1, %v1353_v57 }
 0x3b4   : > { %v3615_v38 = vpop.f32.mrf.mxu1 }
 0x3b5   : > { %3255 = vst.msk [vmem:[%s4410_s10 + $0x48] sm:$0xff] %vm498_vm1, %v3615_v38 }
 0x3b6   : > { %v1530_v60 = vpop.f32.mrf.mxu1 }
 0x3b7   : > { %3254 = vst.msk [vmem:[%s4410_s10 + $0x40] sm:$0xff] %vm498_vm1, %v1530_v60  ;;  %1615 = sbr.rel (%p3267_p12) target bundleno = 1388 (0x56c), region = 80 }
 0x3b8   : > { %v3618_v58 = vpop.f32.mrf.mxu1 }
 0x3b9   : > { %3257 = vst.msk [vmem:[%s4410_s10 + $0x58] sm:$0xff] %vm498_vm1, %v3618_v58 }
 0x3ba   : > { %v1540_v17 = vpop.f32.mrf.mxu1 }
 0x3bb   : > { %3256 = vst.msk [vmem:[%s4410_s10 + $0x50] sm:$0xff] %vm498_vm1, %v1540_v17 }
 0x3bc   : > { %v5029_v62 = vld [vmem:[%s4410_s10 + $0x18] sm:$0xff]  ;;  %v5032_v10 = vld [vmem:[%s4410_s10 + $0x10] sm:$0xff]  ;;  %3627 = vmatprep.mubr.msk.f32.mxu0 %vm498_vm1, %v4989_v26  ;;  %v4139_v61 = vmov 1.0   ;;  %v5042_v12 = vld [vmem:[%s4410_s10 + $0x8] sm:$0xff] }
 0x3bd   : > { %3619 = vmatprep.subr.mxu0 %v5029_v62  ;;  %3633 = vmatprep.subr.msk.mxu1 %vm1580_vm4, %v4139_v61  ;;  %v5053_v23 = vld [vmem:[%s4410_s10] sm:$0xff]  ;;  %v5064_v4 = vld [vmem:[%s4410_s10 + $0x38] sm:$0xff]  ;;  %v5075_v53 = vld [vmem:[%s4410_s10 + $0x30] sm:$0xff]  ;;  %v1718_v32 = vmul.f32 4.0, %v5042_v12  ;;  %v1720_v52 = vmul.f32 4.0, %v5029_v62  ;;  %v1827_v16 = vmul.f32 2.0, %v5042_v12 }
 0x3be   : > { %3620 = vmatpush3.msra.mxu0 %v5029_v62  ;;  %3634 = vmatpush3.msk.msra.mxu1 %vm1580_vm4, %v4139_v61  ;;  %v5087_v6 = vld [vmem:[%s4410_s10 + $0x28] sm:$0xff]  ;;  %v5095_v8 = vld [vmem:[%s4410_s10 + $0x20] sm:$0xff]  ;;  %v1717_v34 = vmul.f32 4.0, %v5053_v23  ;;  %v1719_v27 = vmul.f32 4.0, %v5032_v10  ;;  %v1826_v13 = vmul.f32 2.0, %v5053_v23  ;;  %v1829_v47 = vmul.f32 2.0, %v5029_v62 }
 0x3bf   : > { %3621 = vmatprep.subr.mxu0 %v5032_v10  ;;  %3635 = vmatprep.subr.msk.mxu1 %vm1579_vm3, %v4139_v61  ;;  %v5118_v1 = vld [vmem:[%s4410_s10 + $0x48] sm:$0xff]  ;;  %v5123_v39 = vld [vmem:[%s4410_s10 + $0x40] sm:$0xff]  ;;  %v1936_v44 = vmul.f32 4.0, %v5087_v6  ;;  %v1935_v59 = vmul.f32 4.0, %v5095_v8  ;;  %v1828_v60 = vmul.f32 2.0, %v5032_v10 }
 0x3c0   : > { %3622 = vmatpush3.msra.mxu0 %v5032_v10  ;;  %3636 = vmatpush3.msk.msra.mxu1 %vm1579_vm3, %v4139_v61  ;;  %v5104_v36 = vld [vmem:[%s4410_s10 + $0x58] sm:$0xff] }
 0x3c1   : > { %3623 = vmatprep.subr.mxu0 %v5042_v12  ;;  %3637 = vmatprep.subr.msk.mxu1 %vm1578_vm2, %v4139_v61 }
 0x3c2   : > { %3624 = vmatpush3.msra.mxu0 %v5042_v12  ;;  %3638 = vmatpush3.msk.msra.mxu1 %vm1578_vm2, %v4139_v61  ;;  %v5109_v42 = vld [vmem:[%s4410_s10 + $0x50] sm:$0xff] }
 0x3c3   : > { %3625 = vmatprep.subr.mxu0 %v5053_v23  ;;  %3639 = vmatprep.subr.msk.mxu1 %vm1577_vm7, %v4139_v61 }
 0x3c4   : > { %3626 = vmatpush3.msra.mxu0 %v5053_v23  ;;  %3640 = vmatpush3.msk.msra.mxu1 %vm1577_vm7, %v4139_v61 }
 0x3c5   : > { %3628 = vmatmul.mubr.msk.f32.vlgmr.msra.gmra.mxu0 %vm498_vm1, %v4993_v54  ;;  %3647 = vmatprep.subr.mxu0 %v5064_v4 }
 0x3c6   : > { %3648 = vmatpush3.msra.mxu0 %v5064_v4  ;;  %3630 = vmatprep.mubr.msk.f32.mxu0 %vm498_vm1, %v4997_v35 }
 0x3c7   : > { %3649 = vmatprep.subr.mxu0 %v5075_v53  ;;  %3661 = vmatprep.subr.msk.mxu1 %vm1580_vm4, %v4139_v61 }
 0x3c8   : > { %3650 = vmatpush3.msra.mxu0 %v5075_v53 }
 0x3c9   : > { %3631 = vmatmul.mubr.msk.f32.gmra.mxu0 %vm498_vm1, %v5001_v14  ;;  %3651 = vmatprep.subr.mxu0 %v5087_v6 }
 0x3ca   : > { %3652 = vmatpush3.msra.mxu0 %v5087_v6  ;;  %3655 = vmatprep.mubr.msk.f32.mxu0 %vm498_vm1, %v4989_v26 }
 0x3cb   : > { %3653 = vmatprep.subr.mxu0 %v5095_v8 }
 0x3cc   : > { %3654 = vmatpush3.msra.mxu0 %v5095_v8 }
 0x3cd   : > { %3656 = vmatmul.mubr.msk.f32.vlgmr.msra.gmra.mxu0 %vm498_vm1, %v4993_v54  ;;  %3675 = vmatprep.subr.mxu0 %v5104_v36 }
 0x3ce   : > { %3676 = vmatpush3.msra.mxu0 %v5104_v36  ;;  %3658 = vmatprep.mubr.msk.f32.mxu0 %vm498_vm1, %v4997_v35 }
 0x3cf   : > { %3677 = vmatprep.subr.mxu0 %v5109_v42 }
 0x3d0   : > { %3678 = vmatpush3.msra.mxu0 %v5109_v42 }
 0x3d1   : > { %3659 = vmatmul.mubr.msk.f32.gmra.mxu0 %vm498_vm1, %v5001_v14  ;;  %3679 = vmatprep.subr.mxu0 %v5118_v1 }
 0x3d2   : > { %3680 = vmatpush3.msra.mxu0 %v5118_v1  ;;  %3683 = vmatprep.mubr.msk.f32.mxu0 %vm498_vm1, %v4989_v26 }
 0x3d3   : > { %3681 = vmatprep.subr.mxu0 %v5123_v39 }
 0x3d4   : > { %3682 = vmatpush3.msra.mxu0 %v5123_v39 }
 0x3d5   : > { %3684 = vmatmul.mubr.msk.f32.vlgmr.msra.gmra.mxu0 %vm498_vm1, %v4993_v54 }
 0x3d6   : > { %3686 = vmatprep.mubr.msk.f32.mxu0 %vm498_vm1, %v4997_v35 }
 0x3d9   : > { %3687 = vmatmul.mubr.msk.f32.gmra.mxu0 %vm498_vm1, %v5001_v14 }
 0x485   : > { %v3629_v9 = vpop.f32.mrf.mxu0 }
 0x487   : > { %v1698_v7 = vpop.f32.mrf.mxu0 }
 0x488   : > { %3641 = vmatprep.mubr.msk.f32.mxu1 %vm498_vm1, %v1698_v7 }
 0x489   : > { %v3632_v2 = vpop.f32.mrf.mxu0  ;;  %3642 = vmatmul.mubr.msk.f32.vlgmr.msra.gmra.mxu1 %vm498_vm1, %v3629_v9  ;;  %v1938_v9 = vmul.f32 4.0, %v5064_v4 }
 0x48a   : > { %3662 = vmatpush3.msk.msra.mxu1 %vm1580_vm4, %v4139_v61 }
 0x48b   : > { %v1708_v3 = vpop.f32.mrf.mxu0  ;;  %3663 = vmatprep.subr.msk.mxu1 %vm1579_vm3, %v4139_v61 }
 0x48c   : > { %3644 = vmatprep.mubr.msk.f32.mxu1 %vm498_vm1, %v1708_v3  ;;  %3664 = vmatpush3.msk.msra.mxu1 %vm1579_vm3, %v4139_v61  ;;  %v2045_v3 = vmul.f32 2.0, %v5087_v6 }
 0x48d   : > { %3645 = vmatmul.mubr.msk.f32.gmra.mxu1 %vm498_vm1, %v3632_v2  ;;  %v3657_v25 = vpop.f32.mrf.mxu0  ;;  %3665 = vmatprep.subr.msk.mxu1 %vm1578_vm2, %v4139_v61 }
 0x48e   : > { %3666 = vmatpush3.msk.msra.mxu1 %vm1578_vm2, %v4139_v61 }
 0x48f   : > { %v1916_v55 = vpop.f32.mrf.mxu0  ;;  %3667 = vmatprep.subr.msk.mxu1 %vm1577_vm7, %v4139_v61 }
 0x490   : > { %3668 = vmatpush3.msk.msra.mxu1 %vm1577_vm7, %v4139_v61  ;;  %3669 = vmatprep.mubr.msk.f32.mxu1 %vm498_vm1, %v1916_v55 }
 0x491   : > { %v3660_v11 = vpop.f32.mrf.mxu0  ;;  %3670 = vmatmul.mubr.msk.f32.vlgmr.msra.gmra.mxu1 %vm498_vm1, %v3657_v25  ;;  %3689 = vmatprep.subr.msk.mxu1 %vm1580_vm4, %v4139_v61 }
 0x492   : > { %3690 = vmatpush3.msk.msra.mxu1 %vm1580_vm4, %v4139_v61 }
 0x493   : > { %v1926_v0 = vpop.f32.mrf.mxu0  ;;  %3691 = vmatprep.subr.msk.mxu1 %vm1579_vm3, %v4139_v61 }
 0x494   : > { %3672 = vmatprep.mubr.msk.f32.mxu1 %vm498_vm1, %v1926_v0  ;;  %3692 = vmatpush3.msk.msra.mxu1 %vm1579_vm3, %v4139_v61 }
 0x495   : > { %3673 = vmatmul.mubr.msk.f32.gmra.mxu1 %vm498_vm1, %v3660_v11  ;;  %v3685_v51 = vpop.f32.mrf.mxu0  ;;  %3693 = vmatprep.subr.msk.mxu1 %vm1578_vm2, %v4139_v61 }
 0x496   : > { %3694 = vmatpush3.msk.msra.mxu1 %vm1578_vm2, %v4139_v61 }
 0x497   : > { %v2134_v46 = vpop.f32.mrf.mxu0  ;;  %3695 = vmatprep.subr.msk.mxu1 %vm1577_vm7, %v4139_v61 }
 0x498   : > { %3696 = vmatpush3.msk.msra.mxu1 %vm1577_vm7, %v4139_v61  ;;  %3697 = vmatprep.mubr.msk.f32.mxu1 %vm498_vm1, %v2134_v46 }
 0x499   : > { %v3688_v5 = vpop.f32.mrf.mxu0  ;;  %3698 = vmatmul.mubr.msk.f32.vlgmr.msra.gmra.mxu1 %vm498_vm1, %v3685_v51  ;;  %v1937_v51 = vmul.f32 4.0, %v5075_v53 }
 0x49b   : > { %v2144_v15 = vpop.f32.mrf.mxu0 }
 0x49c   : > { %3700 = vmatprep.mubr.msk.f32.mxu1 %vm498_vm1, %v2144_v15  ;;  %v2044_v15 = vmul.f32 2.0, %v5095_v8 }
 0x49d   : > { %3701 = vmatmul.mubr.msk.f32.gmra.mxu1 %vm498_vm1, %v3688_v5 }
 0x549   : > { %v3643_v33 = vpop.f32.mrf.mxu1 }
 0x54a   : > { %v1805_v45 = vadd.f32 %v3643_v33, %v1718_v32 }
 0x54b   : > { %v1799_v19 = vpop.f32.mrf.mxu1 }
 0x54c   : > { %v1819_v20 = vmul.f32 0.07692308, %v1805_v45  ;;  %v1800_v21 = vadd.f32 %v1799_v19, %v1717_v34 }
 0x54d   : > { %v3646_v22 = vpop.f32.mrf.mxu1 }
 0x54e   : > { %v1823_v29 = vsel %vm4974_vm0, %v1819_v20, %v5042_v12  ;;  %v1818_v56 = vmul.f32 0.07692308, %v1800_v21  ;;  %v1815_v31 = vadd.f32 %v3646_v22, %v1720_v52  ;;  %v2047_v20 = vmul.f32 2.0, %v5064_v4 }
 0x54f   : > { %v1831_v30 = vsub.f32 %v1827_v16, %v1823_v29  ;;  %v1809_v50 = vpop.f32.mrf.mxu1 }
 0x550   : > { %v1822_v28 = vsel %vm4969_vm15, %v1818_v56, %v5053_v23  ;;  %v1821_v40 = vmul.f32 0.07692308, %v1815_v31  ;;  %v1810_v24 = vadd.f32 %v1809_v50, %v1719_v27 }
 0x551   : > { %v1835_v57 = vmax.f32 %v1831_v30, 0.0  ;;  %v1830_v38 = vsub.f32 %v1826_v13, %v1822_v28  ;;  %v3671_v58 = vpop.f32.mrf.mxu1 }
 0x552   : > { %v1825_v17 = vsel %vm4983_vm5, %v1821_v40, %v5029_v62  ;;  %v1820_v61 = vmul.f32 0.07692308, %v1810_v24  ;;  %v2023_v12 = vadd.f32 %v3671_v58, %v1936_v44  ;;  %v2046_v44 = vmul.f32 2.0, %v5075_v53 }
 0x553   : > { %v1839_v7 = vmin.f32 %v1835_v57, 1.0  ;;  %v1834_v23 = vmax.f32 %v1830_v38, 0.0  ;;  %v1833_v2 = vsub.f32 %v1829_v47, %v1825_v17  ;;  %v2017_v25 = vpop.f32.mrf.mxu1  ;;  %v2263_v57 = vmul.f32 2.0, %v5118_v1 }
 0x554   : > { %v1824_v55 = vsel %vm4974_vm0, %v1820_v61, %v5032_v10  ;;  %v2037_v11 = vmul.f32 0.07692308, %v2023_v12  ;;  %v2018_v0 = vadd.f32 %v2017_v25, %v1935_v59  ;;  %v2154_v10 = vmul.f32 4.0, %v5118_v1 }
 0x555   : > { %1843 = vst.msk [vmem:[%s4410_s10 + $0x8] sm:$0xff] %vm498_vm1, %v1839_v7  ;;  %v1838_v62 = vmin.f32 %v1834_v23, 1.0  ;;  %v1837_v46 = vmax.f32 %v1833_v2, 0.0  ;;  %v1832_v5 = vsub.f32 %v1828_v60, %v1824_v55  ;;  %v3674_v32 = vpop.f32.mrf.mxu1  ;;  %v2262_v7 = vmul.f32 2.0, %v5123_v39 }
 0x556   : > { %v2041_v34 = vsel %vm4974_vm0, %v2037_v11, %v5087_v6  ;;  %v2036_v33 = vmul.f32 0.07692308, %v2018_v0  ;;  %v2033_v45 = vadd.f32 %v3674_v32, %v1938_v9  ;;  %v2153_v6 = vmul.f32 4.0, %v5123_v39 }
 0x557   : > { %1842 = vst.msk [vmem:[%s4410_s10] sm:$0xff] %vm498_vm1, %v1838_v62  ;;  %v1841_v52 = vmin.f32 %v1837_v46, 1.0  ;;  %v1836_v16 = vmax.f32 %v1832_v5, 0.0  ;;  %v2049_v19 = vsub.f32 %v2045_v3, %v2041_v34  ;;  %v2027_v21 = vpop.f32.mrf.mxu1  ;;  %v2265_v0 = vmul.f32 2.0, %v5104_v36 }
 0x558   : > { %v2040_v27 = vsel %vm4969_vm15, %v2036_v33, %v5095_v8  ;;  %v2039_v13 = vmul.f32 0.07692308, %v2033_v45  ;;  %v2028_v22 = vadd.f32 %v2027_v21, %v1937_v51  ;;  %v2156_v8 = vmul.f32 4.0, %v5104_v36 }
 0x559   : > { %1845 = vst.msk [vmem:[%s4410_s10 + $0x18] sm:$0xff] %vm498_vm1, %v1841_v52  ;;  %v1840_v29 = vmin.f32 %v1836_v16, 1.0  ;;  %v2053_v56 = vmax.f32 %v2049_v19, 0.0  ;;  %v2048_v31 = vsub.f32 %v2044_v15, %v2040_v27  ;;  %v3699_v30 = vpop.f32.mrf.mxu1  ;;  %v2264_v34 = vmul.f32 2.0, %v5109_v42 }
 0x55a   : > { %v2043_v47 = vsel %vm4983_vm5, %v2039_v13, %v5064_v4  ;;  %v2038_v50 = vmul.f32 0.07692308, %v2028_v22  ;;  %v2241_v28 = vadd.f32 %v3699_v30, %v2154_v10  ;;  %v2155_v4 = vmul.f32 4.0, %v5109_v42 }
 0x55b   : > { %1844 = vst.msk [vmem:[%s4410_s10 + $0x10] sm:$0xff] %vm498_vm1, %v1840_v29  ;;  %v2057_v40 = vmin.f32 %v2053_v56, 1.0  ;;  %v2052_v24 = vmax.f32 %v2048_v31, 0.0  ;;  %v2051_v59 = vsub.f32 %v2047_v20, %v2043_v47  ;;  %v2235_v38 = vpop.f32.mrf.mxu1 }
 0x55c   : > { %v2042_v60 = vsel %vm4974_vm0, %v2038_v50, %v5075_v53  ;;  %v2255_v58 = vmul.f32 0.07692308, %v2241_v28  ;;  %v2236_v17 = vadd.f32 %v2235_v38, %v2153_v6 }
 0x55d   : > { %3297 = vst.msk [vmem:[%s4410_s10 + $0x28] sm:$0xff] %vm498_vm1, %v2057_v40  ;;  %v2056_v61 = vmin.f32 %v2052_v24, 1.0  ;;  %v2055_v12 = vmax.f32 %v2051_v59, 0.0  ;;  %v2050_v9 = vsub.f32 %v2046_v44, %v2042_v60  ;;  %v3702_v23 = vpop.f32.mrf.mxu1 }
 0x55e   : > { %v2259_v2 = vsel %vm4974_vm0, %v2255_v58, %v5118_v1  ;;  %v2254_v3 = vmul.f32 0.07692308, %v2236_v17  ;;  %v2251_v25 = vadd.f32 %v3702_v23, %v2156_v8 }
 0x55f   : > { %3296 = vst.msk [vmem:[%s4410_s10 + $0x20] sm:$0xff] %vm498_vm1, %v2056_v61  ;;  %v2059_v53 = vmin.f32 %v2055_v12, 1.0  ;;  %v2054_v55 = vmax.f32 %v2050_v9, 0.0  ;;  %v2267_v11 = vsub.f32 %v2263_v57, %v2259_v2  ;;  %v2245_v51 = vpop.f32.mrf.mxu1 }
 0x560   : > { %v2258_v62 = vsel %vm4969_vm15, %v2254_v3, %v5123_v39  ;;  %v2257_v46 = vmul.f32 0.07692308, %v2251_v25  ;;  %v2246_v5 = vadd.f32 %v2245_v51, %v2155_v4 }
 0x561   : > { %3299 = vst.msk [vmem:[%s4410_s10 + $0x38] sm:$0xff] %vm498_vm1, %v2059_v53  ;;  %v2058_v1 = vmin.f32 %v2054_v55, 1.0  ;;  %v2271_v15 = vmax.f32 %v2267_v11, 0.0  ;;  %v2266_v32 = vsub.f32 %v2262_v7, %v2258_v62 }
 0x562   : > { %v2261_v33 = vsel %vm4983_vm5, %v2257_v46, %v5104_v36  ;;  %v2256_v45 = vmul.f32 0.07692308, %v2246_v5 }
 0x563   : > { %3298 = vst.msk [vmem:[%s4410_s10 + $0x30] sm:$0xff] %vm498_vm1, %v2058_v1  ;;  %v2275_v39 = vmin.f32 %v2271_v15, 1.0  ;;  %v2270_v10 = vmax.f32 %v2266_v32, 0.0  ;;  %v2269_v52 = vsub.f32 %v2265_v0, %v2261_v33 }
 0x564   : > { %v2260_v16 = vsel %vm4974_vm0, %v2256_v45, %v5109_v42 }
 0x565   : > { %3317 = vst.msk [vmem:[%s4410_s10 + $0x48] sm:$0xff] %vm498_vm1, %v2275_v39  ;;  %v2274_v19 = vmin.f32 %v2270_v10, 1.0  ;;  %v2273_v20 = vmax.f32 %v2269_v52, 0.0  ;;  %v2268_v21 = vsub.f32 %v2264_v34, %v2260_v16 }
 0x567   : > { %3316 = vst.msk [vmem:[%s4410_s10 + $0x40] sm:$0xff] %vm498_vm1, %v2274_v19  ;;  %v2277_v27 = vmin.f32 %v2273_v20, 1.0  ;;  %v2272_v36 = vmax.f32 %v2268_v21, 0.0 }
 0x569   : > { %3319 = vst.msk [vmem:[%s4410_s10 + $0x58] sm:$0xff] %vm498_vm1, %v2277_v27  ;;  %v2276_v13 = vmin.f32 %v2272_v36, 1.0 }
 0x56b   : > { %3318 = vst.msk [vmem:[%s4410_s10 + $0x50] sm:$0xff] %vm498_vm1, %v2276_v13 }
 0x56c PF: > { %s3320_s26 = sld [smem:[#allocation7 + $0x2]] }
 0x572   : > { %p3321_p13 = scmp.eq.s32.totalorder %s3320_s26, 0 }
 0x574   : > { %2286 = sbr.rel (%p3321_p13) target bundleno = 1831 (0x727), region = 84 }
 0x579   : > { %v5281_v42 = vld [vmem:[%s4410_s10 + $0x18] sm:$0xff]  ;;  %v5284_v22 = vld [vmem:[%s4410_s10 + $0x10] sm:$0xff]  ;;  %3711 = vmatprep.mubr.msk.f32.mxu0 %vm498_vm1, %v4989_v26  ;;  %v4140_v6 = vmov 1.0   ;;  %v5294_v29 = vld [vmem:[%s4410_s10 + $0x8] sm:$0xff] }
 0x57a   : > { %3703 = vmatprep.subr.mxu0 %v5281_v42  ;;  %3717 = vmatprep.subr.msk.mxu1 %vm1580_vm4, %v4140_v6  ;;  %v5305_v56 = vld [vmem:[%s4410_s10] sm:$0xff]  ;;  %v5316_v31 = vld [vmem:[%s4410_s10 + $0x38] sm:$0xff]  ;;  %v5327_v44 = vld [vmem:[%s4410_s10 + $0x30] sm:$0xff]  ;;  %v2389_v18 = vmul.f32 4.0, %v5294_v29  ;;  %v2391_v12 = vmul.f32 4.0, %v5281_v42  ;;  %v2390_v23 = vmul.f32 4.0, %v5284_v22 }
 0x57b   : > { %3704 = vmatpush3.msra.mxu0 %v5281_v42  ;;  %3718 = vmatpush3.msk.msra.mxu1 %vm1580_vm4, %v4140_v6  ;;  %v5339_v30 = vld [vmem:[%s4410_s10 + $0x28] sm:$0xff]  ;;  %v5347_v47 = vld [vmem:[%s4410_s10 + $0x20] sm:$0xff]  ;;  %v5356_v50 = vld [vmem:[%s4410_s10 + $0x58] sm:$0xff]  ;;  %v2388_v17 = vmul.f32 4.0, %v5305_v56  ;;  %v2601_v39 = vmul.f32 4.0, %v5316_v31  ;;  %v2600_v27 = vmul.f32 4.0, %v5327_v44 }
 0x57c   : > { %3705 = vmatprep.subr.mxu0 %v5284_v22  ;;  %3719 = vmatprep.subr.msk.mxu1 %vm1579_vm3, %v4140_v6  ;;  %v5361_v28 = vld [vmem:[%s4410_s10 + $0x50] sm:$0xff]  ;;  %v5370_v8 = vld [vmem:[%s4410_s10 + $0x48] sm:$0xff]  ;;  %v5375_v40 = vld [vmem:[%s4410_s10 + $0x40] sm:$0xff]  ;;  %v2599_v55 = vmul.f32 4.0, %v5339_v30  ;;  %v2598_v5 = vmul.f32 4.0, %v5347_v47 }
 0x57d   : > { %3706 = vmatpush3.msra.mxu0 %v5284_v22  ;;  %3720 = vmatpush3.msk.msra.mxu1 %vm1579_vm3, %v4140_v6 }
 0x57e   : > { %3707 = vmatprep.subr.mxu0 %v5294_v29  ;;  %3721 = vmatprep.subr.msk.mxu1 %vm1578_vm2, %v4140_v6 }
 0x57f   : > { %3708 = vmatpush3.msra.mxu0 %v5294_v29  ;;  %3722 = vmatpush3.msk.msra.mxu1 %vm1578_vm2, %v4140_v6 }
 0x580   : > { %3709 = vmatprep.subr.mxu0 %v5305_v56  ;;  %3723 = vmatprep.subr.msk.mxu1 %vm1577_vm7, %v4140_v6 }
 0x581   : > { %3710 = vmatpush3.msra.mxu0 %v5305_v56  ;;  %3724 = vmatpush3.msk.msra.mxu1 %vm1577_vm7, %v4140_v6 }
 0x582   : > { %3712 = vmatmul.mubr.msk.f32.vlgmr.msra.gmra.mxu0 %vm498_vm1, %v4993_v54  ;;  %3731 = vmatprep.subr.mxu0 %v5316_v31 }
 0x583   : > { %3732 = vmatpush3.msra.mxu0 %v5316_v31  ;;  %3714 = vmatprep.mubr.msk.f32.mxu0 %vm498_vm1, %v4997_v35 }
 0x584   : > { %3733 = vmatprep.subr.mxu0 %v5327_v44  ;;  %3745 = vmatprep.subr.msk.mxu1 %vm1580_vm4, %v4140_v6 }
 0x585   : > { %3734 = vmatpush3.msra.mxu0 %v5327_v44 }
 0x586   : > { %3715 = vmatmul.mubr.msk.f32.gmra.mxu0 %vm498_vm1, %v5001_v14  ;;  %3735 = vmatprep.subr.mxu0 %v5339_v30 }
 0x587   : > { %3736 = vmatpush3.msra.mxu0 %v5339_v30  ;;  %3739 = vmatprep.mubr.msk.f32.mxu0 %vm498_vm1, %v4989_v26 }
 0x588   : > { %3737 = vmatprep.subr.mxu0 %v5347_v47 }
 0x589   : > { %3738 = vmatpush3.msra.mxu0 %v5347_v47 }
 0x58a   : > { %3740 = vmatmul.mubr.msk.f32.vlgmr.msra.gmra.mxu0 %vm498_vm1, %v4993_v54  ;;  %3759 = vmatprep.subr.mxu0 %v5356_v50 }
 0x58b   : > { %3760 = vmatpush3.msra.mxu0 %v5356_v50  ;;  %3742 = vmatprep.mubr.msk.f32.mxu0 %vm498_vm1, %v4997_v35 }
 0x58c   : > { %3761 = vmatprep.subr.mxu0 %v5361_v28 }
 0x58d   : > { %3762 = vmatpush3.msra.mxu0 %v5361_v28 }
 0x58e   : > { %3743 = vmatmul.mubr.msk.f32.gmra.mxu0 %vm498_vm1, %v5001_v14  ;;  %3763 = vmatprep.subr.mxu0 %v5370_v8 }
 0x58f   : > { %3764 = vmatpush3.msra.mxu0 %v5370_v8  ;;  %3767 = vmatprep.mubr.msk.f32.mxu0 %vm498_vm1, %v4989_v26 }
 0x590   : > { %3765 = vmatprep.subr.mxu0 %v5375_v40 }
 0x591   : > { %3766 = vmatpush3.msra.mxu0 %v5375_v40 }
 0x592   : > { %3768 = vmatmul.mubr.msk.f32.vlgmr.msra.gmra.mxu0 %vm498_vm1, %v4993_v54 }
 0x593   : > { %3770 = vmatprep.mubr.msk.f32.mxu0 %vm498_vm1, %v4997_v35 }
 0x596   : > { %3771 = vmatmul.mubr.msk.f32.gmra.mxu0 %vm498_vm1, %v5001_v14 }
 0x642   : > { %v3713_v24 = vpop.f32.mrf.mxu0 }
 0x644   : > { %v2369_v59 = vpop.f32.mrf.mxu0 }
 0x645   : > { %3725 = vmatprep.mubr.msk.f32.mxu1 %vm498_vm1, %v2369_v59 }
 0x646   : > { %v3716_v57 = vpop.f32.mrf.mxu0  ;;  %3726 = vmatmul.mubr.msk.f32.vlgmr.msra.gmra.mxu1 %vm498_vm1, %v3713_v24  ;;  %v2809_v24 = vmul.f32 4.0, %v5370_v8 }
 0x647   : > { %3746 = vmatpush3.msk.msra.mxu1 %vm1580_vm4, %v4140_v6 }
 0x648   : > { %v2379_v26 = vpop.f32.mrf.mxu0  ;;  %3747 = vmatprep.subr.msk.mxu1 %vm1579_vm3, %v4140_v6 }
 0x649   : > { %3728 = vmatprep.mubr.msk.f32.mxu1 %vm498_vm1, %v2379_v26  ;;  %3748 = vmatpush3.msk.msra.mxu1 %vm1579_vm3, %v4140_v6 }
 0x64a   : > { %3729 = vmatmul.mubr.msk.f32.gmra.mxu1 %vm498_vm1, %v3716_v57  ;;  %v3741_v54 = vpop.f32.mrf.mxu0  ;;  %3749 = vmatprep.subr.msk.mxu1 %vm1578_vm2, %v4140_v6 }
 0x64b   : > { %3750 = vmatpush3.msk.msra.mxu1 %vm1578_vm2, %v4140_v6 }
 0x64c   : > { %v2579_v35 = vpop.f32.mrf.mxu0  ;;  %3751 = vmatprep.subr.msk.mxu1 %vm1577_vm7, %v4140_v6 }
 0x64d   : > { %3752 = vmatpush3.msk.msra.mxu1 %vm1577_vm7, %v4140_v6  ;;  %3753 = vmatprep.mubr.msk.f32.mxu1 %vm498_vm1, %v2579_v35 }
 0x64e   : > { %v3744_v14 = vpop.f32.mrf.mxu0  ;;  %3754 = vmatmul.mubr.msk.f32.vlgmr.msra.gmra.mxu1 %vm498_vm1, %v3741_v54  ;;  %3773 = vmatprep.subr.msk.mxu1 %vm1580_vm4, %v4140_v6 }
 0x64f   : > { %3774 = vmatpush3.msk.msra.mxu1 %vm1580_vm4, %v4140_v6 }
 0x650   : > { %v2589_v38 = vpop.f32.mrf.mxu0  ;;  %3775 = vmatprep.subr.msk.mxu1 %vm1579_vm3, %v4140_v6 }
 0x651   : > { %3756 = vmatprep.mubr.msk.f32.mxu1 %vm498_vm1, %v2589_v38  ;;  %3776 = vmatpush3.msk.msra.mxu1 %vm1579_vm3, %v4140_v6 }
 0x652   : > { %3757 = vmatmul.mubr.msk.f32.gmra.mxu1 %vm498_vm1, %v3744_v14  ;;  %v3769_v60 = vpop.f32.mrf.mxu0  ;;  %3777 = vmatprep.subr.msk.mxu1 %vm1578_vm2, %v4140_v6  ;;  %v2808_v14 = vmul.f32 4.0, %v5375_v40 }
 0x653   : > { %3778 = vmatpush3.msk.msra.mxu1 %vm1578_vm2, %v4140_v6 }
 0x654   : > { %v2789_v48 = vpop.f32.mrf.mxu0  ;;  %3779 = vmatprep.subr.msk.mxu1 %vm1577_vm7, %v4140_v6 }
 0x655   : > { %3780 = vmatpush3.msk.msra.mxu1 %vm1577_vm7, %v4140_v6  ;;  %3781 = vmatprep.mubr.msk.f32.mxu1 %vm498_vm1, %v2789_v48 }
 0x656   : > { %v3772_v37 = vpop.f32.mrf.mxu0  ;;  %3782 = vmatmul.mubr.msk.f32.vlgmr.msra.gmra.mxu1 %vm498_vm1, %v3769_v60 }
 0x658   : > { %v2799_v58 = vpop.f32.mrf.mxu0 }
 0x659   : > { %3784 = vmatprep.mubr.msk.f32.mxu1 %vm498_vm1, %v2799_v58 }
 0x65a   : > { %3785 = vmatmul.mubr.msk.f32.gmra.mxu1 %vm498_vm1, %v3772_v37 }
 0x706   : > { %v3727_v4 = vpop.f32.mrf.mxu1 }
 0x707   : > { %v2476_v61 = vadd.f32 %v3727_v4, %v2389_v18  ;;  %v2811_v18 = vmul.f32 4.0, %v5356_v50 }
 0x708   : > { %v2470_v63 = vpop.f32.mrf.mxu1 }
 0x709   : > { %v2490_v9 = vmul.f32 0.07692308, %v2476_v61  ;;  %v2471_v7 = vadd.f32 %v2470_v63, %v2388_v17 }
 0x70a   : > { %v3730_v2 = vpop.f32.mrf.mxu1 }
 0x70b   : > { %v2494_v3 = vsel %vm4974_vm0, %v2490_v9, %v5294_v29  ;;  %v2489_v25 = vmul.f32 0.07692308, %v2471_v7  ;;  %v2486_v53 = vadd.f32 %v3730_v2, %v2391_v12  ;;  %v2810_v9 = vmul.f32 4.0, %v5361_v28 }
 0x70c   : > { %v2498_v11 = vmax.f32 %v2494_v3, 0.0  ;;  %v2480_v0 = vpop.f32.mrf.mxu1 }
 0x70d   : > { %v2493_v51 = vsel %vm4969_vm15, %v2489_v25, %v5305_v56  ;;  %v2492_v62 = vmul.f32 0.07692308, %v2486_v53  ;;  %v2481_v46 = vadd.f32 %v2480_v0, %v2390_v23 }
 0x70e   : > { %v2502_v1 = vmin.f32 %v2498_v11, 1.0  ;;  %v2497_v15 = vmax.f32 %v2493_v51, 0.0  ;;  %v3755_v32 = vpop.f32.mrf.mxu1 }
 0x70f   : > { %v2496_v34 = vsel %vm4983_vm5, %v2492_v62, %v5281_v42  ;;  %v2491_v33 = vmul.f32 0.07692308, %v2481_v46  ;;  %v2686_v45 = vadd.f32 %v3755_v32, %v2599_v55 }
 0x710   : > { %2506 = vst.msk [vmem:[%s4410_s10 + $0x8] sm:$0xff] %vm498_vm1, %v2502_v1  ;;  %v2501_v10 = vmin.f32 %v2497_v15, 1.0  ;;  %v2500_v52 = vmax.f32 %v2496_v34, 0.0  ;;  %v2680_v16 = vpop.f32.mrf.mxu1 }
 0x711   : > { %v2495_v19 = vsel %vm4974_vm0, %v2491_v33, %v5284_v22  ;;  %v2700_v20 = vmul.f32 0.07692308, %v2686_v45  ;;  %v2681_v21 = vadd.f32 %v2680_v16, %v2598_v5 }
 0x712   : > { %2505 = vst.msk [vmem:[%s4410_s10] sm:$0xff] %vm498_vm1, %v2501_v10  ;;  %v2504_v36 = vmin.f32 %v2500_v52, 1.0  ;;  %v2499_v13 = vmax.f32 %v2495_v19, 0.0  ;;  %v3758_v42 = vpop.f32.mrf.mxu1 }
 0x713   : > { %v2704_v6 = vsel %vm4974_vm0, %v2700_v20, %v5339_v30  ;;  %v2699_v29 = vmul.f32 0.07692308, %v2681_v21  ;;  %v2696_v56 = vadd.f32 %v3758_v42, %v2601_v39 }
 0x714   : > { %2508 = vst.msk [vmem:[%s4410_s10 + $0x18] sm:$0xff] %vm498_vm1, %v2504_v36  ;;  %v2503_v22 = vmin.f32 %v2499_v13, 1.0  ;;  %v2708_v59 = vmax.f32 %v2704_v6, 0.0  ;;  %v2690_v57 = vpop.f32.mrf.mxu1 }
 0x715   : > { %v2703_v26 = vsel %vm4969_vm15, %v2699_v29, %v5347_v47  ;;  %v2702_v54 = vmul.f32 0.07692308, %v2696_v56  ;;  %v2691_v35 = vadd.f32 %v2690_v57, %v2600_v27 }
 0x716   : > { %2507 = vst.msk [vmem:[%s4410_s10 + $0x10] sm:$0xff] %vm498_vm1, %v2503_v22  ;;  %v2712_v30 = vmin.f32 %v2708_v59, 1.0  ;;  %v2707_v38 = vmax.f32 %v2703_v26, 0.0  ;;  %v3783_v60 = vpop.f32.mrf.mxu1 }
 0x717   : > { %v2706_v48 = vsel %vm4983_vm5, %v2702_v54, %v5316_v31  ;;  %v2701_v37 = vmul.f32 0.07692308, %v2691_v35  ;;  %v2896_v58 = vadd.f32 %v3783_v60, %v2809_v24 }
 0x718   : > { %3351 = vst.msk [vmem:[%s4410_s10 + $0x28] sm:$0xff] %vm498_vm1, %v2712_v30  ;;  %v2711_v47 = vmin.f32 %v2707_v38, 1.0  ;;  %v2710_v17 = vmax.f32 %v2706_v48, 0.0  ;;  %v2890_v4 = vpop.f32.mrf.mxu1 }
 0x719   : > { %v2705_v61 = vsel %vm4974_vm0, %v2701_v37, %v5327_v44  ;;  %v2910_v12 = vmul.f32 0.07692308, %v2896_v58  ;;  %v2891_v63 = vadd.f32 %v2890_v4, %v2808_v14 }
 0x71a   : > { %3350 = vst.msk [vmem:[%s4410_s10 + $0x20] sm:$0xff] %vm498_vm1, %v2711_v47  ;;  %v2714_v31 = vmin.f32 %v2710_v17, 1.0  ;;  %v2709_v7 = vmax.f32 %v2705_v61, 0.0  ;;  %v3786_v23 = vpop.f32.mrf.mxu1 }
 0x71b   : > { %v2914_v2 = vsel %vm4974_vm0, %v2910_v12, %v5370_v8  ;;  %v2909_v3 = vmul.f32 0.07692308, %v2891_v63  ;;  %v2906_v25 = vadd.f32 %v3786_v23, %v2811_v18 }
 0x71c   : > { %3353 = vst.msk [vmem:[%s4410_s10 + $0x38] sm:$0xff] %vm498_vm1, %v2714_v31  ;;  %v2713_v44 = vmin.f32 %v2709_v7, 1.0  ;;  %v2918_v53 = vmax.f32 %v2914_v2, 0.0  ;;  %v2900_v55 = vpop.f32.mrf.mxu1 }
 0x71d   : > { %v2913_v11 = vsel %vm4969_vm15, %v2909_v3, %v5375_v40  ;;  %v2912_v0 = vmul.f32 0.07692308, %v2906_v25  ;;  %v2901_v51 = vadd.f32 %v2900_v55, %v2810_v9 }
 0x71e   : > { %3352 = vst.msk [vmem:[%s4410_s10 + $0x30] sm:$0xff] %vm498_vm1, %v2713_v44  ;;  %v2922_v62 = vmin.f32 %v2918_v53, 1.0  ;;  %v2917_v8 = vmax.f32 %v2913_v11, 0.0 }
 0x71f   : > { %v2916_v46 = vsel %vm4983_vm5, %v2912_v0, %v5356_v50  ;;  %v2911_v5 = vmul.f32 0.07692308, %v2901_v51 }
 0x720   : > { %3371 = vst.msk [vmem:[%s4410_s10 + $0x48] sm:$0xff] %vm498_vm1, %v2922_v62  ;;  %v2921_v1 = vmin.f32 %v2917_v8, 1.0  ;;  %v2920_v15 = vmax.f32 %v2916_v46, 0.0 }
 0x721   : > { %v2915_v41 = vsel %vm4974_vm0, %v2911_v5, %v5361_v28 }
 0x722   : > { %3370 = vst.msk [vmem:[%s4410_s10 + $0x40] sm:$0xff] %vm498_vm1, %v2921_v1  ;;  %v2924_v40 = vmin.f32 %v2920_v15, 1.0  ;;  %v2919_v32 = vmax.f32 %v2915_v41, 0.0 }
 0x724   : > { %3373 = vst.msk [vmem:[%s4410_s10 + $0x58] sm:$0xff] %vm498_vm1, %v2924_v40  ;;  %v2923_v34 = vmin.f32 %v2919_v32, 1.0 }
 0x726   : > { %3372 = vst.msk [vmem:[%s4410_s10 + $0x50] sm:$0xff] %vm498_vm1, %v2923_v34 }
 0x727 PF: > { %s3374_s13 = sld [smem:[#allocation7 + $0x3]] }
 0x72d   : > { %p3375_p2 = scmp.eq.s32.totalorder %s3374_s13, 0 }
 0x72f   : > { %2933 = sbr.rel (%p3375_p2) target bundleno = 1856 (0x740), region = 88 }
 0x734   : > { %v2934_v49 = vld [vmem:[%s4410_s10] sm:$0xff]  ;;  %v2935_v50 = vld [vmem:[%s4410_s10 + $0x8] sm:$0xff]  ;;  %v2936_v45 = vld [vmem:[%s4410_s10 + $0x10] sm:$0xff] }
 0x735   : > { %v2946_v43 = vld [vmem:[%s4396_s18] sm:$0xff]  ;;  %v2947_v33 = vld [vmem:[%s4396_s18 + $0x8] sm:$0xff]  ;;  %v2948_v39 = vld [vmem:[%s4396_s18 + $0x10] sm:$0xff] }
 0x736   : > { %v2958_v28 = vadd.f32 %v2946_v43, %v2934_v49  ;;  %v2959_v10 = vadd.f32 %v2947_v33, %v2935_v50  ;;  %v2960_v52 = vadd.f32 %v2948_v39, %v2936_v45  ;;  %v2937_v16 = vld [vmem:[%s4410_s10 + $0x18] sm:$0xff]  ;;  %v2938_v20 = vld [vmem:[%s4410_s10 + $0x20] sm:$0xff]  ;;  %v2939_v36 = vld [vmem:[%s4410_s10 + $0x28] sm:$0xff] }
 0x737   : > { %v2949_v19 = vld [vmem:[%s4396_s18 + $0x18] sm:$0xff]  ;;  %v2950_v27 = vld [vmem:[%s4396_s18 + $0x20] sm:$0xff]  ;;  %v2951_v13 = vld [vmem:[%s4396_s18 + $0x28] sm:$0xff] }
 0x738   : > { %2970 = vst.msk [vmem:[%s4410_s10] sm:$0xff] %vm498_vm1, %v2958_v28  ;;  %v2961_v21 = vadd.f32 %v2949_v19, %v2937_v16  ;;  %2971 = vst.msk [vmem:[%s4410_s10 + $0x8] sm:$0xff] %vm498_vm1, %v2959_v10  ;;  %v2962_v42 = vadd.f32 %v2950_v27, %v2938_v20  ;;  %v2963_v6 = vadd.f32 %v2951_v13, %v2939_v36  ;;  %v2940_v29 = vld [vmem:[%s4410_s10 + $0x30] sm:$0xff]  ;;  %v2941_v24 = vld [vmem:[%s4410_s10 + $0x38] sm:$0xff] }
 0x739   : > { %2972 = vst.msk [vmem:[%s4410_s10 + $0x10] sm:$0xff] %vm498_vm1, %v2960_v52  ;;  %v2952_v56 = vld [vmem:[%s4396_s18 + $0x30] sm:$0xff]  ;;  %v2953_v59 = vld [vmem:[%s4396_s18 + $0x38] sm:$0xff]  ;;  %v2942_v57 = vld [vmem:[%s4410_s10 + $0x40] sm:$0xff] }
 0x73a   : > { %2973 = vst.msk [vmem:[%s4410_s10 + $0x18] sm:$0xff] %vm498_vm1, %v2961_v21  ;;  %v2964_v22 = vadd.f32 %v2952_v56, %v2940_v29  ;;  %v2954_v26 = vld [vmem:[%s4396_s18 + $0x40] sm:$0xff]  ;;  %2974 = vst.msk [vmem:[%s4410_s10 + $0x20] sm:$0xff] %vm498_vm1, %v2962_v42  ;;  %v2965_v54 = vadd.f32 %v2953_v59, %v2941_v24  ;;  %v2943_v14 = vld [vmem:[%s4410_s10 + $0x48] sm:$0xff] }
 0x73b   : > { %2975 = vst.msk [vmem:[%s4410_s10 + $0x28] sm:$0xff] %vm498_vm1, %v2963_v6  ;;  %v2966_v35 = vadd.f32 %v2954_v26, %v2942_v57  ;;  %v2955_v30 = vld [vmem:[%s4396_s18 + $0x48] sm:$0xff]  ;;  %v2944_v38 = vld [vmem:[%s4410_s10 + $0x50] sm:$0xff]  ;;  %v2945_v37 = vld [vmem:[%s4410_s10 + $0x58] sm:$0xff] }
 0x73c   : > { %2976 = vst.msk [vmem:[%s4410_s10 + $0x30] sm:$0xff] %vm498_vm1, %v2964_v22  ;;  %v2967_v60 = vadd.f32 %v2955_v30, %v2943_v14  ;;  %v2956_v48 = vld [vmem:[%s4396_s18 + $0x50] sm:$0xff]  ;;  %v2957_v58 = vld [vmem:[%s4396_s18 + $0x58] sm:$0xff]  ;;  %2977 = vst.msk [vmem:[%s4410_s10 + $0x38] sm:$0xff] %vm498_vm1, %v2965_v54 }
 0x73d   : > { %2978 = vst.msk [vmem:[%s4410_s10 + $0x40] sm:$0xff] %vm498_vm1, %v2966_v35  ;;  %v2968_v18 = vadd.f32 %v2956_v48, %v2944_v38  ;;  %v2969_v47 = vadd.f32 %v2957_v58, %v2945_v37 }
 0x73e   : > { %2979 = vst.msk [vmem:[%s4410_s10 + $0x48] sm:$0xff] %vm498_vm1, %v2967_v60 }
 0x73f   : > { %2980 = vst.msk [vmem:[%s4410_s10 + $0x50] sm:$0xff] %vm498_vm1, %v2968_v18  ;;  %2981 = vst.msk [vmem:[%s4410_s10 + $0x58] sm:$0xff] %vm498_vm1, %v2969_v47 }
 0x740 PF: > { %v2982_v17 = vld [vmem:[%s4410_s10] sm:$0xff]  ;;  %v2983_v4 = vld [vmem:[%s4410_s10 + $0x8] sm:$0xff]  ;;  %v2984_v61 = vld [vmem:[%s4410_s10 + $0x10] sm:$0xff] }
 0x741   : > { %v2994_v12 = vmul.f32 2.0, %v2982_v17  ;;  %v2995_v63 = vmul.f32 2.0, %v2983_v4  ;;  %v2996_v9 = vmul.f32 2.0, %v2984_v61  ;;  %v2985_v31 = vld [vmem:[%s4410_s10 + $0x18] sm:$0xff]  ;;  %v2986_v7 = vld [vmem:[%s4410_s10 + $0x20] sm:$0xff] }
 0x742   : > { %v2987_v23 = vld [vmem:[%s4410_s10 + $0x28] sm:$0xff]  ;;  %v2997_v2 = vmul.f32 2.0, %v2985_v31  ;;  %v2998_v3 = vmul.f32 2.0, %v2986_v7 }
 0x743   : > { %v2999_v25 = vmul.f32 2.0, %v2987_v23  ;;  %v2988_v44 = vld [vmem:[%s4410_s10 + $0x30] sm:$0xff]  ;;  %v2989_v53 = vld [vmem:[%s4410_s10 + $0x38] sm:$0xff]  ;;  %v3376_v11 = vadd.f32 -1.0, %v2994_v12  ;;  %v3377_v0 = vadd.f32 -1.0, %v2995_v63  ;;  %v3378_v51 = vadd.f32 -1.0, %v2996_v9 }
 0x744   : > { %v2990_v55 = vld [vmem:[%s4410_s10 + $0x40] sm:$0xff]  ;;  %v3000_v62 = vmul.f32 2.0, %v2988_v44  ;;  %v3379_v5 = vadd.f32 -1.0, %v2997_v2  ;;  %v3380_v1 = vadd.f32 -1.0, %v2998_v3  ;;  %v3001_v41 = vmul.f32 2.0, %v2989_v53 }
 0x745   : > { %v2991_v8 = vld [vmem:[%s4410_s10 + $0x48] sm:$0xff]  ;;  %v3381_v15 = vadd.f32 -1.0, %v2999_v25  ;;  %3018 = vst.msk [vmem:[%s4410_s10] sm:$0xff] %vm498_vm1, %v3376_v11  ;;  %3019 = vst.msk [vmem:[%s4410_s10 + $0x8] sm:$0xff] %vm498_vm1, %v3377_v0  ;;  %v3002_v34 = vmul.f32 2.0, %v2990_v55 }
 0x746   : > { %v2992_v46 = vld [vmem:[%s4410_s10 + $0x50] sm:$0xff]  ;;  %v2993_v40 = vld [vmem:[%s4410_s10 + $0x58] sm:$0xff]  ;;  %3020 = vst.msk [vmem:[%s4410_s10 + $0x10] sm:$0xff] %vm498_vm1, %v3378_v51  ;;  %v3382_v32 = vadd.f32 -1.0, %v3000_v62  ;;  %v3003_v49 = vmul.f32 2.0, %v2991_v8  ;;  %3021 = vst.msk [vmem:[%s4410_s10 + $0x18] sm:$0xff] %vm498_vm1, %v3379_v5 }
 0x747   : > { %v3004_v43 = vmul.f32 2.0, %v2992_v46  ;;  %3022 = vst.msk [vmem:[%s4410_s10 + $0x20] sm:$0xff] %vm498_vm1, %v3380_v1  ;;  %3023 = vst.msk [vmem:[%s4410_s10 + $0x28] sm:$0xff] %vm498_vm1, %v3381_v15  ;;  %v3383_v50 = vadd.f32 -1.0, %v3001_v41  ;;  %v3005_v28 = vmul.f32 2.0, %v2993_v40  ;;  %v3384_v33 = vadd.f32 -1.0, %v3002_v34 }
 0x748   : > { %3024 = vst.msk [vmem:[%s4410_s10 + $0x30] sm:$0xff] %vm498_vm1, %v3382_v32  ;;  %v3385_v45 = vadd.f32 -1.0, %v3003_v49 }
 0x749   : > { %v3386_v39 = vadd.f32 -1.0, %v3004_v43  ;;  %3025 = vst.msk [vmem:[%s4410_s10 + $0x38] sm:$0xff] %vm498_vm1, %v3383_v50  ;;  %v3387_v10 = vadd.f32 -1.0, %v3005_v28  ;;  %3026 = vst.msk [vmem:[%s4410_s10 + $0x40] sm:$0xff] %vm498_vm1, %v3384_v33 }
 0x74a   : > { %3027 = vst.msk [vmem:[%s4410_s10 + $0x48] sm:$0xff] %vm498_vm1, %v3385_v45 }
 0x74b   : > { %3028 = vst.msk [vmem:[%s4410_s10 + $0x50] sm:$0xff] %vm498_vm1, %v3386_v39  ;;  %3029 = vst.msk [vmem:[%s4410_s10 + $0x58] sm:$0xff] %vm498_vm1, %v3387_v10 }
 0x74c PF: > { %s3794_s14 = smul.u32 1536, %s4200_s25  ;;  %s3044_s18 = sshll.u32 %s4410_s10, 4  ;;  %s5611_s18 = int_to_ptr.vmem [resolvable:$true] %s3044_s18 }
 0x74d   : > { %s3031_s15 = scalar_lea.sflag [#allocation4], %s4385_s2  ;;  %s4044_s20 = scalar_lea.vmem %s5611_s18, 1536 }
 0x74e   : > { %s5609_s12 = scalar_lea.hbm %s5660_s6, %s3794_s14  ;;  %p4045_p9 = scmp.ne.s32.totalorder %s5611_s18, %s4044_s20 }
 0x74f   : > { %p5717_p1 = scmp.ne.s32.totalorder %s5679_s16, 0  ;;  %s4141_s30 = smov [#allocation14]  }
 0x750   : > { %s4048_s0 = sshll.u32 %s4141_s30, 4  ;;  %s4049_s0 = int_to_ptr.vmem [resolvable:$false] %s4048_s0 }
 0x751   : > { %p4046_p4 = pnand %p4045_p9, %p5717_p1  ;;  %s4050_s25 = scalar_lea.vmem %s4049_s0, 3072 }
 0x752   : > { %p4051_p8 = scmp.lt.s32.totalorder %s5611_s18, %s4049_s0  ;;  %p4052_p11 = scmp.lt.s32.totalorder %s4050_s25, %s4044_s20 }
 0x753   : > { %p4047_p6 = pneg %p4046_p4 }
 0x754   : > { %p4053_p0 = por %p4052_p11, %p4051_p8 }
 0x756   : > { %p4054_p5 = pnand %p4053_p0, %p4047_p6 }
 0x758   : > { %4057 = shalt.err (!%p4054_p5)
}
 0x759   : > { %s4058_s10 = scalar_lea.hbm %s5609_s12, 1536  ;;  %s4062_s7 = scalar_lea.hbm %s5660_s6, 3072 }
 0x75a   : > { %p4059_p7 = scmp.ne.s32.totalorder %s5609_s12, %s4058_s10  ;;  %p4063_p12 = scmp.lt.s32.totalorder %s5609_s12, %s5660_s6 }
 0x75b   : > { %p4064_p13 = scmp.lt.s32.totalorder %s4062_s7, %s4058_s10 }
 0x75c   : > { %p4060_p10 = pnand %p4059_p7, %p5717_p1 }
 0x75d   : > { %p4065_p2 = por %p4064_p13, %p4063_p12 }
 0x75e   : > { %p4061_p3 = pneg %p4060_p10 }
 0x760   : > { %p4066_p9 = pnand %p4065_p2, %p4061_p3 }
 0x762   : > { %4069 = shalt.err (!%p4066_p9)
}
 0x763   : > { %s4142_s26 = smov 128   ;;  %s4143_s13 = smov 8  }
 0x764   : > { %3815 = dma.vmem_to_hbm [thread:$0]  (%p5717_p1), %s5611_s18, 1536, %s5609_s12, %s3031_s15, %s4142_s26, %s4142_s26, %s4143_s13  }
 0x765 PF: > { %s3059_s14 = sand.u32 1, %s4116_s21   ;;  %p5718_p4 = scmp.ne.s32.totalorder %s5673_s28, 0 }
 0x766   : > { %p5719_p6 = scmp.ge.s32.totalorder %s4128_s24, 2  ;;  %s3060_s9 = scalar_lea.sflag [#allocation4], %s3059_s14 }
 0x768   : > { %p3838_p8 = pnand %p5719_p6, %p5718_p4 }
 0x76a   : > { %p3839_p11 = pneg %p3838_p8 }
 0x76c   : > { %4111 = dma.done.wait (%p3839_p11), %s3060_s9, 1536  }
 0x76d   : > { %4113 = vsyncadd (%p3839_p11), %s3060_s9, 4294965760  ;;  %p25_p0 = scmp.ge.s32.totalorder %s4270_s8, 4   ;;  %s5720_s21 = smov %s4120_s22 }
 0x76e   : > { %s5721_s22 = smov %s4124_s23  ;;  %s5722_s23 = smov %s4286_s17 }
 0x76f   : > { %s5723_s24 = smov %s4270_s8  ;;  %27 = sbr.rel (!%p25_p0) target bundleno = 14 (0xe), region = 144 }
 0x774   :  { %3065 = vsyncpa [#allocation3], 1 }
 0x775   :  { %3067 = vsyncpa [#allocation3 + $0x1], 1 }
 0x776   :  { %3068 = vsyncpa [#allocation10], 1 }
 0x777   :  { %3070 = vsyncpa [#allocation10 + $0x1], 1 }
 0x778   :  { %3071 = vsyncpa [#allocation13], 1 }
 0x779   :  { %3072 = vsyncpa [#allocation4], 1 }
 0x77a   :  { %3074 = vsyncpa [#allocation4 + $0x1], 1 }
 0x77b   :  { %3075 = vsyncpa [#allocation5], 1 }
 0x77c   :  { %3077 = vsyncpa [#allocation5 + $0x1], 1 }
 0x77d   :  { %3078 = vsyncpa [#allocation6], 1 }
 0x77e   :  { %3080 = vsyncpa [#allocation6 + $0x1], 1 }

</bundles_post_ra>
